<compile_context>
chip_gen: v5e
topology: v5e:2x2
jax: 0.10.0
libtpu: 0.0.40
codegen_flags: <defaults>
</compile_context>

<pallas_src>
import jax
import jax.numpy as jnp
from jax.experimental import pallas as pl
from jax.experimental.pallas import tpu as pltpu

BERT_DIM = 768
PATTERN_DIM = 60
CBK_DIM = 600      # tfidf_array_feature dim

# K dims zero-padded to the 128-lane granule (exact math: padded entries are 0).
BERT_PAD = 768
PATTERN_PAD = 128
CBK_PAD = 640


def _round_up(x, m):
    return (x + m - 1) // m * m


# ----------------------------------------------------------------------------
# Fused forward kernel: projections + bidirectional multi-layer recurrence + fc
# ----------------------------------------------------------------------------
def _make_fused_lstm_kernel(n_layers, num_dirs, hidden_dim, B, BP, T, output_size):
    H = hidden_dim
    G = 4 * H
    f32 = jnp.float32

    def cell(x_gates, h_prev, c_prev, w_hh_t):
        # x_gates already holds x_t @ W_ih^T + b_ih + b_hh (PyTorch gate order i,f,g,o)
        gates = x_gates + jnp.dot(h_prev, w_hh_t, preferred_element_type=f32)
        sig = jax.nn.sigmoid(gates)     # one full-width EUP pass -> i, f, o lanes
        tah = jnp.tanh(gates)           # one full-width EUP pass -> g lanes
        i_g = sig[:, 0 * H:1 * H]
        f_g = sig[:, 1 * H:2 * H]
        g_g = tah[:, 2 * H:3 * H]
        o_g = sig[:, 3 * H:4 * H]
        c_new = f_g * c_prev + i_g * g_g
        h_new = o_g * jnp.tanh(c_new)
        return h_new, c_new

    def kernel(fb_ref, fp_ref, ft_ref,          # (T*BP, K*) bf16, time-major rows (t, b)
               w0b_ref, w0p_ref, w0t_ref,       # (D, K*, 4H) bf16  layer-0 W_ih^T chunks
               wih_ref,                         # ((L-1)*D, D*H, 4H) f32  layer>=1 W_ih^T
               whh_ref,                         # (L*D, H, 4H) f32        W_hh^T
               bias_ref,                        # (L*D, 1, 4H) f32        b_ih + b_hh
               h0_ref, c0_ref,                  # (L*D, BP, H) f32
               fcw_ref, fcb_ref,                # (D*H, O) f32, (1, O) f32
               out_ref,                         # (B, O) f32
               xp_scr,                          # VMEM (D, T*BP, 4H) f32
               act_scr):                        # VMEM (D, T*BP, H)  f32
        fb = fb_ref[...]
        fp = fp_ref[...]
        ft = ft_ref[...]

        h_fin = [None] * num_dirs
        for layer in range(n_layers):
            # ---- all-timestep input projection, per direction (one big MXU call) ----
            if layer > 0:
                prev = act_scr[0]                                   # (T*BP, H)
                if num_dirs == 2:
                    prev = jnp.concatenate([prev, act_scr[1]], axis=-1)
            for d in range(num_dirs):
                b = bias_ref[layer * num_dirs + d]                  # (1, 4H)
                if layer == 0:
                    xp = (jnp.dot(fb, w0b_ref[d], preferred_element_type=f32)
                          + jnp.dot(fp, w0p_ref[d], preferred_element_type=f32)
                          + jnp.dot(ft, w0t_ref[d], preferred_element_type=f32))
                else:
                    xp = jnp.dot(prev, wih_ref[(layer - 1) * num_dirs + d],
                                 preferred_element_type=f32)
                xp_scr[d] = xp + b                                  # (T*BP, 4H)

            # ---- time recurrence: both directions per step, fully unrolled ----
            hc = []
            for d in range(num_dirs):
                idx = layer * num_dirs + d
                hc.append((h0_ref[idx], c0_ref[idx], whh_ref[idx]))
            is_last_layer = layer == n_layers - 1
            for s in range(T):
                for d in range(num_dirs):
                    t = s if d == 0 else T - 1 - s
                    h, c, whh = hc[d]
                    x_t = xp_scr[d, t * BP:(t + 1) * BP, :]         # aligned (BP, 4H)
                    h, c = cell(x_t, h, c, whh)
                    hc[d] = (h, c, whh)
                    if not is_last_layer:
                        act_scr[d, t * BP:(t + 1) * BP, :] = h      # feeds next layer
            h_fin = [hc[d][0] for d in range(num_dirs)]

        # ---- hidden_last concat -> dropout (identity, eval) -> fc, fused epilogue ----
        h_last = jnp.concatenate(h_fin, axis=-1) if num_dirs == 2 else h_fin[0]
        logits = jnp.dot(h_last, fcw_ref[...], preferred_element_type=f32) + fcb_ref[...]
        out_ref[...] = logits[:B, :]

    return kernel


# ----------------------------------------------------------------------------
# Parameter init (PyTorch-style uniform(-1/sqrt(H), 1/sqrt(H)), PyTorch layouts)
# ----------------------------------------------------------------------------
def init_params(key, hidden_dim, output_size, n_layers, bidirectional=True):
    in0 = BERT_DIM + PATTERN_DIM + CBK_DIM  # 1428 (concat order: bert, pattern, tfidf)
    num_dirs = 2 if bidirectional else 1
    k = 1.0 / float(hidden_dim) ** 0.5
    keys = jax.random.split(key, n_layers * num_dirs * 4 + 2)
    idx = 0
    lstm_params = []
    for layer in range(n_layers):
        in_size = in0 if layer == 0 else hidden_dim * num_dirs
        dirs = []
        for _ in range(num_dirs):
            w_ih = jax.random.uniform(keys[idx], (4 * hidden_dim, in_size),
                                      minval=-k, maxval=k); idx += 1
            w_hh = jax.random.uniform(keys[idx], (4 * hidden_dim, hidden_dim),
                                      minval=-k, maxval=k); idx += 1
            b_ih = jax.random.uniform(keys[idx], (4 * hidden_dim,),
                                      minval=-k, maxval=k); idx += 1
            b_hh = jax.random.uniform(keys[idx], (4 * hidden_dim,),
                                      minval=-k, maxval=k); idx += 1
            dirs.append(dict(w_ih=w_ih, w_hh=w_hh, b_ih=b_ih, b_hh=b_hh))
        lstm_params.append(dirs)
    fc_in = hidden_dim * num_dirs
    fc_w = jax.random.uniform(keys[idx], (output_size, fc_in),
                              minval=-k, maxval=k); idx += 1
    fc_b = jax.random.uniform(keys[idx], (output_size,), minval=-k, maxval=k)
    return dict(lstm=lstm_params, fc_w=fc_w, fc_b=fc_b)


# ----------------------------------------------------------------------------
# One-time packing: pre-transpose, split layer-0 W_ih along K, stack, cast.
# ----------------------------------------------------------------------------
def pack_params(params, hidden_dim, n_layers, bidirectional=True):
    num_dirs = 2 if bidirectional else 1
    H = hidden_dim
    G = 4 * H

    w0b, w0p, w0t = [], [], []
    for d in range(num_dirs):
        w = params["lstm"][0][d]["w_ih"].T                     # (1428, 4H)
        wb = w[0:BERT_DIM]
        wp = jnp.pad(w[BERT_DIM:BERT_DIM + PATTERN_DIM],
                     ((0, PATTERN_PAD - PATTERN_DIM), (0, 0)))
        wt = jnp.pad(w[BERT_DIM + PATTERN_DIM:],
                     ((0, CBK_PAD - CBK_DIM), (0, 0)))
        w0b.append(wb); w0p.append(wp); w0t.append(wt)
    w0b = jnp.stack(w0b).astype(jnp.bfloat16)                  # (D, 768, 4H)
    w0p = jnp.stack(w0p).astype(jnp.bfloat16)                  # (D, 128, 4H)
    w0t = jnp.stack(w0t).astype(jnp.bfloat16)                  # (D, 640, 4H)

    if n_layers > 1:
        w_ih_hi = jnp.stack([params["lstm"][l][d]["w_ih"].T
                             for l in range(1, n_layers)
                             for d in range(num_dirs)])        # ((L-1)*D, D*H, 4H)
    else:
        w_ih_hi = jnp.zeros((num_dirs, num_dirs * H, G), jnp.float32)  # unused dummy

    w_hh = jnp.stack([params["lstm"][l][d]["w_hh"].T
                      for l in range(n_layers) for d in range(num_dirs)])   # (L*D, H, 4H)
    bias = jnp.stack([(params["lstm"][l][d]["b_ih"]
                       + params["lstm"][l][d]["b_hh"]).reshape(1, G)
                      for l in range(n_layers) for d in range(num_dirs)])   # (L*D, 1, 4H)

    return dict(w0_bert=w0b, w0_pat=w0p, w0_tfidf=w0t,
                w_ih_hi=w_ih_hi, w_hh=w_hh, bias=bias,
                fc_w_t=params["fc_w"].T,                       # (D*H, O)
                fc_b=params["fc_b"].reshape(1, -1))            # (1, O)


# ----------------------------------------------------------------------------
# Forward pass (mirrors Lstm.forward; bert_feature precomputed)
# ----------------------------------------------------------------------------
def lstm_forward(packed, bert_feature, pattern_feature, tfidf_array_feature,
                 hidden, hidden_dim, output_size, n_layers, bidirectional=True):
    h0_all, c0_all = hidden                      # (n_layers*num_dirs, B, H) each
    B, T, _ = bert_feature.shape
    num_dirs = 2 if bidirectional else 1
    H = hidden_dim
    G = 4 * H
    BP = _round_up(B, 8)                         # fill the f32 sublane granule

    def prep(x, k_pad):
        # One-time input prep left to XLA (~100 KB): time-major, batch padded to BP,
        # K zero-padded to the lane granule, bf16 for the MXU.  Rows ordered (t, b).
        x = jnp.transpose(x, (1, 0, 2))
        x = jnp.pad(x, ((0, 0), (0, BP - B), (0, k_pad - x.shape[-1])))
        return x.reshape(T * BP, k_pad).astype(jnp.bfloat16)

    fb = prep(bert_feature, BERT_PAD)
    fp = prep(pattern_feature, PATTERN_PAD)
    ft = prep(tfidf_array_feature, CBK_PAD)

    pad_bh = ((0, 0), (0, BP - B), (0, 0))
    h0 = jnp.pad(h0_all, pad_bh)
    c0 = jnp.pad(c0_all, pad_bh)

    kernel = _make_fused_lstm_kernel(n_layers, num_dirs, H, B, BP, T, output_size)
    vmem = pltpu.MemorySpace.VMEM
    return pl.pallas_call(
        kernel,
        out_shape=jax.ShapeDtypeStruct((B, output_size), jnp.float32),
        in_specs=[pl.BlockSpec(memory_space=vmem)] * 13,
        out_specs=pl.BlockSpec(memory_space=vmem),
        scratch_shapes=[
            pltpu.VMEM((num_dirs, T * BP, G), jnp.float32),   # xproj, all timesteps
            pltpu.VMEM((num_dirs, T * BP, H), jnp.float32),   # per-step hidden -> next layer
        ],
    )(fb, fp, ft,
      packed["w0_bert"], packed["w0_pat"], packed["w0_tfidf"],
      packed["w_ih_hi"], packed["w_hh"], packed["bias"],
      h0, c0, packed["fc_w_t"], packed["fc_b"])


# ----------------------------------------------------------------------------
# Pure-JAX reference (same math; layer-0 projection in bf16 to match the kernel)
# ----------------------------------------------------------------------------
def reference_forward(params, bert, pat, tfd, hidden, hidden_dim, n_layers,
                      bidirectional=True):
    h0_all, c0_all = hidden
    num_dirs = 2 if bidirectional else 1
    H = hidden_dim
    hi = jax.lax.Precision.HIGHEST
    x = jnp.concatenate([bert, pat, tfd], axis=-1)
    B, T, _ = x.shape
    h_last = []
    for layer in range(n_layers):
        outs = []
        h_last = []
        for d in range(num_dirs):
            p = params["lstm"][layer][d]
            w_ih_t = p["w_ih"].T
            w_hh_t = p["w_hh"].T
            bias = p["b_ih"] + p["b_hh"]
            lhs = x.reshape(B * T, -1)
            if layer == 0:
                xproj = jnp.dot(lhs.astype(jnp.bfloat16), w_ih_t.astype(jnp.bfloat16),
                                preferred_element_type=jnp.float32)
            else:
                xproj = jnp.dot(lhs, w_ih_t, precision=hi,
                                preferred_element_type=jnp.float32)
            xproj = xproj.reshape(B, T, 4 * H) + bias
            idx = layer * num_dirs + d
            h, c = h0_all[idx], c0_all[idx]
            hs = [None] * T
            order = range(T) if d == 0 else range(T - 1, -1, -1)
            for t in order:
                g = xproj[:, t, :] + jnp.dot(h, w_hh_t, precision=hi,
                                             preferred_element_type=jnp.float32)
                i = jax.nn.sigmoid(g[:, 0:H])
                f = jax.nn.sigmoid(g[:, H:2 * H])
                gg = jnp.tanh(g[:, 2 * H:3 * H])
                o = jax.nn.sigmoid(g[:, 3 * H:4 * H])
                c = f * c + i * gg
                h = o * jnp.tanh(c)
                hs[t] = h
            outs.append(jnp.stack(hs, axis=1))
            h_last.append(h)
        x = jnp.concatenate(outs, axis=-1) if num_dirs == 2 else outs[0]
    hl = jnp.concatenate(h_last, axis=-1) if num_dirs == 2 else h_last[0]
    return jnp.dot(hl, params["fc_w"].T, precision=hi) + params["fc_b"]


if __name__ == "__main__":
    key = jax.random.PRNGKey(0)
    B, T = 2, 8
    hidden_dim, output_size, n_layers = 32, 4, 2
    bidirectional = True
    num_dirs = 2 if bidirectional else 1

    k_param, k_bert, k_pat, k_tf = jax.random.split(key, 4)
    params = init_params(k_param, hidden_dim, output_size, n_layers, bidirectional)
    packed = pack_params(params, hidden_dim, n_layers, bidirectional)

    bert_feature = jax.random.normal(k_bert, (B, T, BERT_DIM), jnp.float32)
    pattern_feature = jax.random.normal(k_pat, (B, T, PATTERN_DIM), jnp.float32)
    tfidf_array_feature = jax.random.normal(k_tf, (B, T, CBK_DIM), jnp.float32)

    # init_hidden(batch_size): zeros of shape (n_layers * num_dirs, B, H)
    hidden = (jnp.zeros((n_layers * num_dirs, B, hidden_dim), jnp.float32),
              jnp.zeros((n_layers * num_dirs, B, hidden_dim), jnp.float32))

    fwd = jax.jit(lambda pk, b, p, t, h: lstm_forward(
        pk, b, p, t, h, hidden_dim, output_size, n_layers, bidirectional))
    out = jax.block_until_ready(
        fwd(packed, bert_feature, pattern_feature, tfidf_array_feature, hidden))
    assert out.shape == (B, output_size), out.shape

    ref_fn = jax.jit(lambda pr, b, p, t, h: reference_forward(
        pr, b, p, t, h, hidden_dim, n_layers, bidirectional))
    ref = jax.block_until_ready(
        ref_fn(params, bert_feature, pattern_feature, tfidf_array_feature, hidden))
    assert jnp.allclose(out, ref, rtol=2e-2, atol=2e-2), \
        f"mismatch: max abs err {float(jnp.max(jnp.abs(out - ref)))}"

    print("KERNEL_OK")
</pallas_src>

<mosaic_0001>
module attributes {stable_mosaic.version = 11 : i64} {
  func.func @kernel(%arg0: memref<64x768xbf16, #tpu.memory_space<vmem>>, %arg1: memref<64x128xbf16, #tpu.memory_space<vmem>>, %arg2: memref<64x640xbf16, #tpu.memory_space<vmem>>, %arg3: memref<2x768x128xbf16, #tpu.memory_space<vmem>>, %arg4: memref<2x128x128xbf16, #tpu.memory_space<vmem>>, %arg5: memref<2x640x128xbf16, #tpu.memory_space<vmem>>, %arg6: memref<2x64x128xf32, #tpu.memory_space<vmem>>, %arg7: memref<4x32x128xf32, #tpu.memory_space<vmem>>, %arg8: memref<4x1x128xf32, #tpu.memory_space<vmem>>, %arg9: memref<4x8x32xf32, #tpu.memory_space<vmem>>, %arg10: memref<4x8x32xf32, #tpu.memory_space<vmem>>, %arg11: memref<64x4xf32, #tpu.memory_space<vmem>>, %arg12: memref<1x4xf32, #tpu.memory_space<vmem>>, %arg13: memref<2x4xf32, #tpu.memory_space<vmem>>, %arg14: memref<2x64x128xf32, #tpu.memory_space<vmem>>, %arg15: memref<2x64x32xf32, #tpu.memory_space<vmem>>) attributes {dimension_semantics = [], scalar_prefetch = 0 : i64, scratch_operands = 2 : i64, tpu.core_type = #tpu.core_type<tc>} {
    %c0 = arith.constant 0 : index
    %c0_0 = arith.constant 0 : index
    %0 = vector.load %arg0[%c0, %c0_0] : memref<64x768xbf16, #tpu.memory_space<vmem>>, vector<64x768xbf16>
    %c0_1 = arith.constant 0 : index
    %c0_2 = arith.constant 0 : index
    %1 = vector.load %arg1[%c0_1, %c0_2] : memref<64x128xbf16, #tpu.memory_space<vmem>>, vector<64x128xbf16>
    %c0_3 = arith.constant 0 : index
    %c0_4 = arith.constant 0 : index
    %2 = vector.load %arg2[%c0_3, %c0_4] : memref<64x640xbf16, #tpu.memory_space<vmem>>, vector<64x640xbf16>
    %c0_5 = arith.constant 0 : index
    %c0_6 = arith.constant 0 : index
    %c0_7 = arith.constant 0 : index
    %3 = vector.load %arg8[%c0_5, %c0_6, %c0_7] : memref<4x1x128xf32, #tpu.memory_space<vmem>>, vector<1x1x128xf32>
    %4 = vector.shape_cast %3 : vector<1x1x128xf32> to vector<1x128xf32>
    %c0_8 = arith.constant 0 : index
    %c0_9 = arith.constant 0 : index
    %c0_10 = arith.constant 0 : index
    %5 = vector.load %arg3[%c0_8, %c0_9, %c0_10] : memref<2x768x128xbf16, #tpu.memory_space<vmem>>, vector<1x768x128xbf16>
    %6 = vector.shape_cast %5 : vector<1x768x128xbf16> to vector<768x128xbf16>
    %cst = arith.constant dense<0.000000e+00> : vector<64x128xf32>
    %7 = tpu.matmul %0, %6, %cst {dimension_numbers = #tpu.dot_dimension_numbers<[1], [0], [0], [1], [0, 0, 1, 1], [], []>} : vector<64x768xbf16>, vector<768x128xbf16>, vector<64x128xf32> -> vector<64x128xf32>
    %c0_11 = arith.constant 0 : index
    %c0_12 = arith.constant 0 : index
    %c0_13 = arith.constant 0 : index
    %8 = vector.load %arg4[%c0_11, %c0_12, %c0_13] : memref<2x128x128xbf16, #tpu.memory_space<vmem>>, vector<1x128x128xbf16>
    %9 = vector.shape_cast %8 : vector<1x128x128xbf16> to vector<128x128xbf16>
    %cst_14 = arith.constant dense<0.000000e+00> : vector<64x128xf32>
    %10 = tpu.matmul %1, %9, %cst_14 {dimension_numbers = #tpu.dot_dimension_numbers<[1], [0], [0], [1], [0, 0, 1, 1], [], []>} : vector<64x128xbf16>, vector<128x128xbf16>, vector<64x128xf32> -> vector<64x128xf32>
    %11 = arith.addf %7, %10 : vector<64x128xf32>
    %c0_15 = arith.constant 0 : index
    %c0_16 = arith.constant 0 : index
    %c0_17 = arith.constant 0 : index
    %12 = vector.load %arg5[%c0_15, %c0_16, %c0_17] : memref<2x640x128xbf16, #tpu.memory_space<vmem>>, vector<1x640x128xbf16>
    %13 = vector.shape_cast %12 : vector<1x640x128xbf16> to vector<640x128xbf16>
    %cst_18 = arith.constant dense<0.000000e+00> : vector<64x128xf32>
    %14 = tpu.matmul %2, %13, %cst_18 {dimension_numbers = #tpu.dot_dimension_numbers<[1], [0], [0], [1], [0, 0, 1, 1], [], []>} : vector<64x640xbf16>, vector<640x128xbf16>, vector<64x128xf32> -> vector<64x128xf32>
    %15 = arith.addf %11, %14 : vector<64x128xf32>
    %16 = vector.broadcast %4 : vector<1x128xf32> to vector<64x128xf32>
    %17 = arith.addf %15, %16 : vector<64x128xf32>
    %c0_19 = arith.constant 0 : index
    %c0_20 = arith.constant 0 : index
    %c0_21 = arith.constant 0 : index
    %18 = vector.load %arg14[%c0_19, %c0_20, %c0_21] : memref<2x64x128xf32, #tpu.memory_space<vmem>>, vector<1x64x128xf32>
    %19 = vector.shape_cast %18 : vector<1x64x128xf32> to vector<64x128xf32>
    %20 = vector.shape_cast %17 : vector<64x128xf32> to vector<1x64x128xf32>
    tpu.vector_store %arg14[%c0_19, %c0_20, %c0_21], %20 {strides = array<i32>} : memref<2x64x128xf32, #tpu.memory_space<vmem>>, vector<1x64x128xf32>,
    %c1 = arith.constant 1 : index
    %c0_22 = arith.constant 0 : index
    %c0_23 = arith.constant 0 : index
    %21 = vector.load %arg8[%c1, %c0_22, %c0_23] : memref<4x1x128xf32, #tpu.memory_space<vmem>>, vector<1x1x128xf32>
    %22 = vector.shape_cast %21 : vector<1x1x128xf32> to vector<1x128xf32>
    %c1_24 = arith.constant 1 : index
    %c0_25 = arith.constant 0 : index
    %c0_26 = arith.constant 0 : index
    %23 = vector.load %arg3[%c1_24, %c0_25, %c0_26] : memref<2x768x128xbf16, #tpu.memory_space<vmem>>, vector<1x768x128xbf16>
    %24 = vector.shape_cast %23 : vector<1x768x128xbf16> to vector<768x128xbf16>
    %cst_27 = arith.constant dense<0.000000e+00> : vector<64x128xf32>
    %25 = tpu.matmul %0, %24, %cst_27 {dimension_numbers = #tpu.dot_dimension_numbers<[1], [0], [0], [1], [0, 0, 1, 1], [], []>} : vector<64x768xbf16>, vector<768x128xbf16>, vector<64x128xf32> -> vector<64x128xf32>
    %c1_28 = arith.constant 1 : index
    %c0_29 = arith.constant 0 : index
    %c0_30 = arith.constant 0 : index
    %26 = vector.load %arg4[%c1_28, %c0_29, %c0_30] : memref<2x128x128xbf16, #tpu.memory_space<vmem>>, vector<1x128x128xbf16>
    %27 = vector.shape_cast %26 : vector<1x128x128xbf16> to vector<128x128xbf16>
    %cst_31 = arith.constant dense<0.000000e+00> : vector<64x128xf32>
    %28 = tpu.matmul %1, %27, %cst_31 {dimension_numbers = #tpu.dot_dimension_numbers<[1], [0], [0], [1], [0, 0, 1, 1], [], []>} : vector<64x128xbf16>, vector<128x128xbf16>, vector<64x128xf32> -> vector<64x128xf32>
    %29 = arith.addf %25, %28 : vector<64x128xf32>
    %c1_32 = arith.constant 1 : index
    %c0_33 = arith.constant 0 : index
    %c0_34 = arith.constant 0 : index
    %30 = vector.load %arg5[%c1_32, %c0_33, %c0_34] : memref<2x640x128xbf16, #tpu.memory_space<vmem>>, vector<1x640x128xbf16>
    %31 = vector.shape_cast %30 : vector<1x640x128xbf16> to vector<640x128xbf16>
    %cst_35 = arith.constant dense<0.000000e+00> : vector<64x128xf32>
    %32 = tpu.matmul %2, %31, %cst_35 {dimension_numbers = #tpu.dot_dimension_numbers<[1], [0], [0], [1], [0, 0, 1, 1], [], []>} : vector<64x640xbf16>, vector<640x128xbf16>, vector<64x128xf32> -> vector<64x128xf32>
    %33 = arith.addf %29, %32 : vector<64x128xf32>
    %34 = vector.broadcast %22 : vector<1x128xf32> to vector<64x128xf32>
    %35 = arith.addf %33, %34 : vector<64x128xf32>
    %c1_36 = arith.constant 1 : index
    %c0_37 = arith.constant 0 : index
    %c0_38 = arith.constant 0 : index
    %36 = vector.load %arg14[%c1_36, %c0_37, %c0_38] : memref<2x64x128xf32, #tpu.memory_space<vmem>>, vector<1x64x128xf32>
    %37 = vector.shape_cast %36 : vector<1x64x128xf32> to vector<64x128xf32>
    %38 = vector.shape_cast %35 : vector<64x128xf32> to vector<1x64x128xf32>
    tpu.vector_store %arg14[%c1_36, %c0_37, %c0_38], %38 {strides = array<i32>} : memref<2x64x128xf32, #tpu.memory_space<vmem>>, vector<1x64x128xf32>,
    %c0_39 = arith.constant 0 : index
    %c0_40 = arith.constant 0 : index
    %c0_41 = arith.constant 0 : index
    %39 = vector.load %arg9[%c0_39, %c0_40, %c0_41] : memref<4x8x32xf32, #tpu.memory_space<vmem>>, vector<1x8x32xf32>
    %40 = vector.shape_cast %39 : vector<1x8x32xf32> to vector<8x32xf32>
    %c0_42 = arith.constant 0 : index
    %c0_43 = arith.constant 0 : index
    %c0_44 = arith.constant 0 : index
    %41 = vector.load %arg10[%c0_42, %c0_43, %c0_44] : memref<4x8x32xf32, #tpu.memory_space<vmem>>, vector<1x8x32xf32>
    %42 = vector.shape_cast %41 : vector<1x8x32xf32> to vector<8x32xf32>
    %c0_45 = arith.constant 0 : index
    %c0_46 = arith.constant 0 : index
    %c0_47 = arith.constant 0 : index
    %43 = vector.load %arg7[%c0_45, %c0_46, %c0_47] : memref<4x32x128xf32, #tpu.memory_space<vmem>>, vector<1x32x128xf32>
    %44 = vector.shape_cast %43 : vector<1x32x128xf32> to vector<32x128xf32>
    %c1_48 = arith.constant 1 : index
    %c0_49 = arith.constant 0 : index
    %c0_50 = arith.constant 0 : index
    %45 = vector.load %arg9[%c1_48, %c0_49, %c0_50] : memref<4x8x32xf32, #tpu.memory_space<vmem>>, vector<1x8x32xf32>
    %46 = vector.shape_cast %45 : vector<1x8x32xf32> to vector<8x32xf32>
    %c1_51 = arith.constant 1 : index
    %c0_52 = arith.constant 0 : index
    %c0_53 = arith.constant 0 : index
    %47 = vector.load %arg10[%c1_51, %c0_52, %c0_53] : memref<4x8x32xf32, #tpu.memory_space<vmem>>, vector<1x8x32xf32>
    %48 = vector.shape_cast %47 : vector<1x8x32xf32> to vector<8x32xf32>
    %c1_54 = arith.constant 1 : index
    %c0_55 = arith.constant 0 : index
    %c0_56 = arith.constant 0 : index
    %49 = vector.load %arg7[%c1_54, %c0_55, %c0_56] : memref<4x32x128xf32, #tpu.memory_space<vmem>>, vector<1x32x128xf32>
    %50 = vector.shape_cast %49 : vector<1x32x128xf32> to vector<32x128xf32>
    %c0_57 = arith.constant 0 : index
    %c0_58 = arith.constant 0 : index
    %c0_59 = arith.constant 0 : index
    %51 = vector.load %arg14[%c0_57, %c0_58, %c0_59] : memref<2x64x128xf32, #tpu.memory_space<vmem>>, vector<1x8x128xf32>
    %52 = vector.shape_cast %51 : vector<1x8x128xf32> to vector<8x128xf32>
    %cst_60 = arith.constant dense<0.000000e+00> : vector<8x128xf32>
    %53 = tpu.matmul %40, %44, %cst_60 {dimension_numbers = #tpu.dot_dimension_numbers<[1], [0], [0], [1], [0, 0, 1, 1], [], []>} : vector<8x32xf32>, vector<32x128xf32>, vector<8x128xf32> -> vector<8x128xf32>
    %54 = arith.addf %52, %53 : vector<8x128xf32>
    %55 = arith.negf %54 : vector<8x128xf32>
    %56 = math.exp %55 : vector<8x128xf32>
    %cst_61 = arith.constant 1.000000e+00 : f32
    %57 = vector.broadcast %cst_61 : f32 to vector<8x128xf32>
    %58 = arith.addf %57, %56 : vector<8x128xf32>
    %59 = arith.divf %57, %58 : vector<8x128xf32>
    %60 = math.tanh %54 : vector<8x128xf32>
    %61 = vector.extract_strided_slice %59 {offsets = [0, 0], sizes = [8, 32], strides = [1, 1]} : vector<8x128xf32> to vector<8x32xf32>
    %62 = vector.extract_strided_slice %59 {offsets = [0, 32], sizes = [8, 32], strides = [1, 1]} : vector<8x128xf32> to vector<8x32xf32>
    %63 = vector.extract_strided_slice %60 {offsets = [0, 64], sizes = [8, 32], strides = [1, 1]} : vector<8x128xf32> to vector<8x32xf32>
    %64 = vector.extract_strided_slice %59 {offsets = [0, 96], sizes = [8, 32], strides = [1, 1]} : vector<8x128xf32> to vector<8x32xf32>
    %65 = arith.mulf %62, %42 : vector<8x32xf32>
    %66 = arith.mulf %61, %63 : vector<8x32xf32>
    %67 = arith.addf %65, %66 : vector<8x32xf32>
    %68 = math.tanh %67 : vector<8x32xf32>
    %69 = arith.mulf %64, %68 : vector<8x32xf32>
    %c0_62 = arith.constant 0 : index
    %c0_63 = arith.constant 0 : index
    %c0_64 = arith.constant 0 : index
    %70 = vector.load %arg15[%c0_62, %c0_63, %c0_64] : memref<2x64x32xf32, #tpu.memory_space<vmem>>, vector<1x8x32xf32>
    %71 = vector.shape_cast %70 : vector<1x8x32xf32> to vector<8x32xf32>
    %72 = vector.shape_cast %69 : vector<8x32xf32> to vector<1x8x32xf32>
    tpu.vector_store %arg15[%c0_62, %c0_63, %c0_64], %72 {strides = array<i32>} : memref<2x64x32xf32, #tpu.memory_space<vmem>>, vector<1x8x32xf32>,
    %c1_65 = arith.constant 1 : index
    %c56 = arith.constant 56 : index
    %c0_66 = arith.constant 0 : index
    %73 = vector.load %arg14[%c1_65, %c56, %c0_66] : memref<2x64x128xf32, #tpu.memory_space<vmem>>, vector<1x8x128xf32>
    %74 = vector.shape_cast %73 : vector<1x8x128xf32> to vector<8x128xf32>
    %cst_67 = arith.constant dense<0.000000e+00> : vector<8x128xf32>
    %75 = tpu.matmul %46, %50, %cst_67 {dimension_numbers = #tpu.dot_dimension_numbers<[1], [0], [0], [1], [0, 0, 1, 1], [], []>} : vector<8x32xf32>, vector<32x128xf32>, vector<8x128xf32> -> vector<8x128xf32>
    %76 = arith.addf %74, %75 : vector<8x128xf32>
    %77 = arith.negf %76 : vector<8x128xf32>
    %78 = math.exp %77 : vector<8x128xf32>
    %cst_68 = arith.constant 1.000000e+00 : f32
    %79 = vector.broadcast %cst_68 : f32 to vector<8x128xf32>
    %80 = arith.addf %79, %78 : vector<8x128xf32>
    %81 = arith.divf %79, %80 : vector<8x128xf32>
    %82 = math.tanh %76 : vector<8x128xf32>
    %83 = vector.extract_strided_slice %81 {offsets = [0, 0], sizes = [8, 32], strides = [1, 1]} : vector<8x128xf32> to vector<8x32xf32>
    %84 = vector.extract_strided_slice %81 {offsets = [0, 32], sizes = [8, 32], strides = [1, 1]} : vector<8x128xf32> to vector<8x32xf32>
    %85 = vector.extract_strided_slice %82 {offsets = [0, 64], sizes = [8, 32], strides = [1, 1]} : vector<8x128xf32> to vector<8x32xf32>
    %86 = vector.extract_strided_slice %81 {offsets = [0, 96], sizes = [8, 32], strides = [1, 1]} : vector<8x128xf32> to vector<8x32xf32>
    %87 = arith.mulf %84, %48 : vector<8x32xf32>
    %88 = arith.mulf %83, %85 : vector<8x32xf32>
    %89 = arith.addf %87, %88 : vector<8x32xf32>
    %90 = math.tanh %89 : vector<8x32xf32>
    %91 = arith.mulf %86, %90 : vector<8x32xf32>
    %c1_69 = arith.constant 1 : index
    %c56_70 = arith.constant 56 : index
    %c0_71 = arith.constant 0 : index
    %92 = vector.load %arg15[%c1_69, %c56_70, %c0_71] : memref<2x64x32xf32, #tpu.memory_space<vmem>>, vector<1x8x32xf32>
    %93 = vector.shape_cast %92 : vector<1x8x32xf32> to vector<8x32xf32>
    %94 = vector.shape_cast %91 : vector<8x32xf32> to vector<1x8x32xf32>
    tpu.vector_store %arg15[%c1_69, %c56_70, %c0_71], %94 {strides = array<i32>} : memref<2x64x32xf32, #tpu.memory_space<vmem>>, vector<1x8x32xf32>,
    %c0_72 = arith.constant 0 : index
    %c8 = arith.constant 8 : index
    %c0_73 = arith.constant 0 : index
    %95 = vector.load %arg14[%c0_72, %c8, %c0_73] : memref<2x64x128xf32, #tpu.memory_space<vmem>>, vector<1x8x128xf32>
    %96 = vector.shape_cast %95 : vector<1x8x128xf32> to vector<8x128xf32>
    %cst_74 = arith.constant dense<0.000000e+00> : vector<8x128xf32>
    %97 = tpu.matmul %69, %44, %cst_74 {dimension_numbers = #tpu.dot_dimension_numbers<[1], [0], [0], [1], [0, 0, 1, 1], [], []>} : vector<8x32xf32>, vector<32x128xf32>, vector<8x128xf32> -> vector<8x128xf32>
    %98 = arith.addf %96, %97 : vector<8x128xf32>
    %99 = arith.negf %98 : vector<8x128xf32>
    %100 = math.exp %99 : vector<8x128xf32>
    %cst_75 = arith.constant 1.000000e+00 : f32
    %101 = vector.broadcast %cst_75 : f32 to vector<8x128xf32>
    %102 = arith.addf %101, %100 : vector<8x128xf32>
    %103 = arith.divf %101, %102 : vector<8x128xf32>
    %104 = math.tanh %98 : vector<8x128xf32>
    %105 = vector.extract_strided_slice %103 {offsets = [0, 0], sizes = [8, 32], strides = [1, 1]} : vector<8x128xf32> to vector<8x32xf32>
    %106 = vector.extract_strided_slice %103 {offsets = [0, 32], sizes = [8, 32], strides = [1, 1]} : vector<8x128xf32> to vector<8x32xf32>
    %107 = vector.extract_strided_slice %104 {offsets = [0, 64], sizes = [8, 32], strides = [1, 1]} : vector<8x128xf32> to vector<8x32xf32>
    %108 = vector.extract_strided_slice %103 {offsets = [0, 96], sizes = [8, 32], strides = [1, 1]} : vector<8x128xf32> to vector<8x32xf32>
    %109 = arith.mulf %106, %67 : vector<8x32xf32>
    %110 = arith.mulf %105, %107 : vector<8x32xf32>
    %111 = arith.addf %109, %110 : vector<8x32xf32>
    %112 = math.tanh %111 : vector<8x32xf32>
    %113 = arith.mulf %108, %112 : vector<8x32xf32>
    %c0_76 = arith.constant 0 : index
    %c8_77 = arith.constant 8 : index
    %c0_78 = arith.constant 0 : index
    %114 = vector.load %arg15[%c0_76, %c8_77, %c0_78] : memref<2x64x32xf32, #tpu.memory_space<vmem>>, vector<1x8x32xf32>
    %115 = vector.shape_cast %114 : vector<1x8x32xf32> to vector<8x32xf32>
    %116 = vector.shape_cast %113 : vector<8x32xf32> to vector<1x8x32xf32>
    tpu.vector_store %arg15[%c0_76, %c8_77, %c0_78], %116 {strides = array<i32>} : memref<2x64x32xf32, #tpu.memory_space<vmem>>, vector<1x8x32xf32>,
    %c1_79 = arith.constant 1 : index
    %c48 = arith.constant 48 : index
    %c0_80 = arith.constant 0 : index
    %117 = vector.load %arg14[%c1_79, %c48, %c0_80] : memref<2x64x128xf32, #tpu.memory_space<vmem>>, vector<1x8x128xf32>
    %118 = vector.shape_cast %117 : vector<1x8x128xf32> to vector<8x128xf32>
    %cst_81 = arith.constant dense<0.000000e+00> : vector<8x128xf32>
    %119 = tpu.matmul %91, %50, %cst_81 {dimension_numbers = #tpu.dot_dimension_numbers<[1], [0], [0], [1], [0, 0, 1, 1], [], []>} : vector<8x32xf32>, vector<32x128xf32>, vector<8x128xf32> -> vector<8x128xf32>
    %120 = arith.addf %118, %119 : vector<8x128xf32>
    %121 = arith.negf %120 : vector<8x128xf32>
    %122 = math.exp %121 : vector<8x128xf32>
    %cst_82 = arith.constant 1.000000e+00 : f32
    %123 = vector.broadcast %cst_82 : f32 to vector<8x128xf32>
    %124 = arith.addf %123, %122 : vector<8x128xf32>
    %125 = arith.divf %123, %124 : vector<8x128xf32>
    %126 = math.tanh %120 : vector<8x128xf32>
    %127 = vector.extract_strided_slice %125 {offsets = [0, 0], sizes = [8, 32], strides = [1, 1]} : vector<8x128xf32> to vector<8x32xf32>
    %128 = vector.extract_strided_slice %125 {offsets = [0, 32], sizes = [8, 32], strides = [1, 1]} : vector<8x128xf32> to vector<8x32xf32>
    %129 = vector.extract_strided_slice %126 {offsets = [0, 64], sizes = [8, 32], strides = [1, 1]} : vector<8x128xf32> to vector<8x32xf32>
    %130 = vector.extract_strided_slice %125 {offsets = [0, 96], sizes = [8, 32], strides = [1, 1]} : vector<8x128xf32> to vector<8x32xf32>
    %131 = arith.mulf %128, %89 : vector<8x32xf32>
    %132 = arith.mulf %127, %129 : vector<8x32xf32>
    %133 = arith.addf %131, %132 : vector<8x32xf32>
    %134 = math.tanh %133 : vector<8x32xf32>
    %135 = arith.mulf %130, %134 : vector<8x32xf32>
    %c1_83 = arith.constant 1 : index
    %c48_84 = arith.constant 48 : index
    %c0_85 = arith.constant 0 : index
    %136 = vector.load %arg15[%c1_83, %c48_84, %c0_85] : memref<2x64x32xf32, #tpu.memory_space<vmem>>, vector<1x8x32xf32>
    %137 = vector.shape_cast %136 : vector<1x8x32xf32> to vector<8x32xf32>
    %138 = vector.shape_cast %135 : vector<8x32xf32> to vector<1x8x32xf32>
    tpu.vector_store %arg15[%c1_83, %c48_84, %c0_85], %138 {strides = array<i32>} : memref<2x64x32xf32, #tpu.memory_space<vmem>>, vector<1x8x32xf32>,
    %c0_86 = arith.constant 0 : index
    %c16 = arith.constant 16 : index
    %c0_87 = arith.constant 0 : index
    %139 = vector.load %arg14[%c0_86, %c16, %c0_87] : memref<2x64x128xf32, #tpu.memory_space<vmem>>, vector<1x8x128xf32>
    %140 = vector.shape_cast %139 : vector<1x8x128xf32> to vector<8x128xf32>
    %cst_88 = arith.constant dense<0.000000e+00> : vector<8x128xf32>
    %141 = tpu.matmul %113, %44, %cst_88 {dimension_numbers = #tpu.dot_dimension_numbers<[1], [0], [0], [1], [0, 0, 1, 1], [], []>} : vector<8x32xf32>, vector<32x128xf32>, vector<8x128xf32> -> vector<8x128xf32>
    %142 = arith.addf %140, %141 : vector<8x128xf32>
    %143 = arith.negf %142 : vector<8x128xf32>
    %144 = math.exp %143 : vector<8x128xf32>
    %cst_89 = arith.constant 1.000000e+00 : f32
    %145 = vector.broadcast %cst_89 : f32 to vector<8x128xf32>
    %146 = arith.addf %145, %144 : vector<8x128xf32>
    %147 = arith.divf %145, %146 : vector<8x128xf32>
    %148 = math.tanh %142 : vector<8x128xf32>
    %149 = vector.extract_strided_slice %147 {offsets = [0, 0], sizes = [8, 32], strides = [1, 1]} : vector<8x128xf32> to vector<8x32xf32>
    %150 = vector.extract_strided_slice %147 {offsets = [0, 32], sizes = [8, 32], strides = [1, 1]} : vector<8x128xf32> to vector<8x32xf32>
    %151 = vector.extract_strided_slice %148 {offsets = [0, 64], sizes = [8, 32], strides = [1, 1]} : vector<8x128xf32> to vector<8x32xf32>
    %152 = vector.extract_strided_slice %147 {offsets = [0, 96], sizes = [8, 32], strides = [1, 1]} : vector<8x128xf32> to vector<8x32xf32>
    %153 = arith.mulf %150, %111 : vector<8x32xf32>
    %154 = arith.mulf %149, %151 : vector<8x32xf32>
    %155 = arith.addf %153, %154 : vector<8x32xf32>
    %156 = math.tanh %155 : vector<8x32xf32>
    %157 = arith.mulf %152, %156 : vector<8x32xf32>
    %c0_90 = arith.constant 0 : index
    %c16_91 = arith.constant 16 : index
    %c0_92 = arith.constant 0 : index
    %158 = vector.load %arg15[%c0_90, %c16_91, %c0_92] : memref<2x64x32xf32, #tpu.memory_space<vmem>>, vector<1x8x32xf32>
    %159 = vector.shape_cast %158 : vector<1x8x32xf32> to vector<8x32xf32>
    %160 = vector.shape_cast %157 : vector<8x32xf32> to vector<1x8x32xf32>
    tpu.vector_store %arg15[%c0_90, %c16_91, %c0_92], %160 {strides = array<i32>} : memref<2x64x32xf32, #tpu.memory_space<vmem>>, vector<1x8x32xf32>,
    %c1_93 = arith.constant 1 : index
    %c40 = arith.constant 40 : index
    %c0_94 = arith.constant 0 : index
    %161 = vector.load %arg14[%c1_93, %c40, %c0_94] : memref<2x64x128xf32, #tpu.memory_space<vmem>>, vector<1x8x128xf32>
    %162 = vector.shape_cast %161 : vector<1x8x128xf32> to vector<8x128xf32>
    %cst_95 = arith.constant dense<0.000000e+00> : vector<8x128xf32>
    %163 = tpu.matmul %135, %50, %cst_95 {dimension_numbers = #tpu.dot_dimension_numbers<[1], [0], [0], [1], [0, 0, 1, 1], [], []>} : vector<8x32xf32>, vector<32x128xf32>, vector<8x128xf32> -> vector<8x128xf32>
    %164 = arith.addf %162, %163 : vector<8x128xf32>
    %165 = arith.negf %164 : vector<8x128xf32>
    %166 = math.exp %165 : vector<8x128xf32>
    %cst_96 = arith.constant 1.000000e+00 : f32
    %167 = vector.broadcast %cst_96 : f32 to vector<8x128xf32>
    %168 = arith.addf %167, %166 : vector<8x128xf32>
    %169 = arith.divf %167, %168 : vector<8x128xf32>
    %170 = math.tanh %164 : vector<8x128xf32>
    %171 = vector.extract_strided_slice %169 {offsets = [0, 0], sizes = [8, 32], strides = [1, 1]} : vector<8x128xf32> to vector<8x32xf32>
    %172 = vector.extract_strided_slice %169 {offsets = [0, 32], sizes = [8, 32], strides = [1, 1]} : vector<8x128xf32> to vector<8x32xf32>
    %173 = vector.extract_strided_slice %170 {offsets = [0, 64], sizes = [8, 32], strides = [1, 1]} : vector<8x128xf32> to vector<8x32xf32>
    %174 = vector.extract_strided_slice %169 {offsets = [0, 96], sizes = [8, 32], strides = [1, 1]} : vector<8x128xf32> to vector<8x32xf32>
    %175 = arith.mulf %172, %133 : vector<8x32xf32>
    %176 = arith.mulf %171, %173 : vector<8x32xf32>
    %177 = arith.addf %175, %176 : vector<8x32xf32>
    %178 = math.tanh %177 : vector<8x32xf32>
    %179 = arith.mulf %174, %178 : vector<8x32xf32>
    %c1_97 = arith.constant 1 : index
    %c40_98 = arith.constant 40 : index
    %c0_99 = arith.constant 0 : index
    %180 = vector.load %arg15[%c1_97, %c40_98, %c0_99] : memref<2x64x32xf32, #tpu.memory_space<vmem>>, vector<1x8x32xf32>
    %181 = vector.shape_cast %180 : vector<1x8x32xf32> to vector<8x32xf32>
    %182 = vector.shape_cast %179 : vector<8x32xf32> to vector<1x8x32xf32>
    tpu.vector_store %arg15[%c1_97, %c40_98, %c0_99], %182 {strides = array<i32>} : memref<2x64x32xf32, #tpu.memory_space<vmem>>, vector<1x8x32xf32>,
    %c0_100 = arith.constant 0 : index
    %c24 = arith.constant 24 : index
    %c0_101 = arith.constant 0 : index
    %183 = vector.load %arg14[%c0_100, %c24, %c0_101] : memref<2x64x128xf32, #tpu.memory_space<vmem>>, vector<1x8x128xf32>
    %184 = vector.shape_cast %183 : vector<1x8x128xf32> to vector<8x128xf32>
    %cst_102 = arith.constant dense<0.000000e+00> : vector<8x128xf32>
    %185 = tpu.matmul %157, %44, %cst_102 {dimension_numbers = #tpu.dot_dimension_numbers<[1], [0], [0], [1], [0, 0, 1, 1], [], []>} : vector<8x32xf32>, vector<32x128xf32>, vector<8x128xf32> -> vector<8x128xf32>
    %186 = arith.addf %184, %185 : vector<8x128xf32>
    %187 = arith.negf %186 : vector<8x128xf32>
    %188 = math.exp %187 : vector<8x128xf32>
    %cst_103 = arith.constant 1.000000e+00 : f32
    %189 = vector.broadcast %cst_103 : f32 to vector<8x128xf32>
    %190 = arith.addf %189, %188 : vector<8x128xf32>
    %191 = arith.divf %189, %190 : vector<8x128xf32>
    %192 = math.tanh %186 : vector<8x128xf32>
    %193 = vector.extract_strided_slice %191 {offsets = [0, 0], sizes = [8, 32], strides = [1, 1]} : vector<8x128xf32> to vector<8x32xf32>
    %194 = vector.extract_strided_slice %191 {offsets = [0, 32], sizes = [8, 32], strides = [1, 1]} : vector<8x128xf32> to vector<8x32xf32>
    %195 = vector.extract_strided_slice %192 {offsets = [0, 64], sizes = [8, 32], strides = [1, 1]} : vector<8x128xf32> to vector<8x32xf32>
    %196 = vector.extract_strided_slice %191 {offsets = [0, 96], sizes = [8, 32], strides = [1, 1]} : vector<8x128xf32> to vector<8x32xf32>
    %197 = arith.mulf %194, %155 : vector<8x32xf32>
    %198 = arith.mulf %193, %195 : vector<8x32xf32>
    %199 = arith.addf %197, %198 : vector<8x32xf32>
    %200 = math.tanh %199 : vector<8x32xf32>
    %201 = arith.mulf %196, %200 : vector<8x32xf32>
    %c0_104 = arith.constant 0 : index
    %c24_105 = arith.constant 24 : index
    %c0_106 = arith.constant 0 : index
    %202 = vector.load %arg15[%c0_104, %c24_105, %c0_106] : memref<2x64x32xf32, #tpu.memory_space<vmem>>, vector<1x8x32xf32>
    %203 = vector.shape_cast %202 : vector<1x8x32xf32> to vector<8x32xf32>
    %204 = vector.shape_cast %201 : vector<8x32xf32> to vector<1x8x32xf32>
    tpu.vector_store %arg15[%c0_104, %c24_105, %c0_106], %204 {strides = array<i32>} : memref<2x64x32xf32, #tpu.memory_space<vmem>>, vector<1x8x32xf32>,
    %c1_107 = arith.constant 1 : index
    %c32 = arith.constant 32 : index
    %c0_108 = arith.constant 0 : index
    %205 = vector.load %arg14[%c1_107, %c32, %c0_108] : memref<2x64x128xf32, #tpu.memory_space<vmem>>, vector<1x8x128xf32>
    %206 = vector.shape_cast %205 : vector<1x8x128xf32> to vector<8x128xf32>
    %cst_109 = arith.constant dense<0.000000e+00> : vector<8x128xf32>
    %207 = tpu.matmul %179, %50, %cst_109 {dimension_numbers = #tpu.dot_dimension_numbers<[1], [0], [0], [1], [0, 0, 1, 1], [], []>} : vector<8x32xf32>, vector<32x128xf32>, vector<8x128xf32> -> vector<8x128xf32>
    %208 = arith.addf %206, %207 : vector<8x128xf32>
    %209 = arith.negf %208 : vector<8x128xf32>
    %210 = math.exp %209 : vector<8x128xf32>
    %cst_110 = arith.constant 1.000000e+00 : f32
    %211 = vector.broadcast %cst_110 : f32 to vector<8x128xf32>
    %212 = arith.addf %211, %210 : vector<8x128xf32>
    %213 = arith.divf %211, %212 : vector<8x128xf32>
    %214 = math.tanh %208 : vector<8x128xf32>
    %215 = vector.extract_strided_slice %213 {offsets = [0, 0], sizes = [8, 32], strides = [1, 1]} : vector<8x128xf32> to vector<8x32xf32>
    %216 = vector.extract_strided_slice %213 {offsets = [0, 32], sizes = [8, 32], strides = [1, 1]} : vector<8x128xf32> to vector<8x32xf32>
    %217 = vector.extract_strided_slice %214 {offsets = [0, 64], sizes = [8, 32], strides = [1, 1]} : vector<8x128xf32> to vector<8x32xf32>
    %218 = vector.extract_strided_slice %213 {offsets = [0, 96], sizes = [8, 32], strides = [1, 1]} : vector<8x128xf32> to vector<8x32xf32>
    %219 = arith.mulf %216, %177 : vector<8x32xf32>
    %220 = arith.mulf %215, %217 : vector<8x32xf32>
    %221 = arith.addf %219, %220 : vector<8x32xf32>
    %222 = math.tanh %221 : vector<8x32xf32>
    %223 = arith.mulf %218, %222 : vector<8x32xf32>
    %c1_111 = arith.constant 1 : index
    %c32_112 = arith.constant 32 : index
    %c0_113 = arith.constant 0 : index
    %224 = vector.load %arg15[%c1_111, %c32_112, %c0_113] : memref<2x64x32xf32, #tpu.memory_space<vmem>>, vector<1x8x32xf32>
    %225 = vector.shape_cast %224 : vector<1x8x32xf32> to vector<8x32xf32>
    %226 = vector.shape_cast %223 : vector<8x32xf32> to vector<1x8x32xf32>
    tpu.vector_store %arg15[%c1_111, %c32_112, %c0_113], %226 {strides = array<i32>} : memref<2x64x32xf32, #tpu.memory_space<vmem>>, vector<1x8x32xf32>,
    %c0_114 = arith.constant 0 : index
    %c32_115 = arith.constant 32 : index
    %c0_116 = arith.constant 0 : index
    %227 = vector.load %arg14[%c0_114, %c32_115, %c0_116] : memref<2x64x128xf32, #tpu.memory_space<vmem>>, vector<1x8x128xf32>
    %228 = vector.shape_cast %227 : vector<1x8x128xf32> to vector<8x128xf32>
    %cst_117 = arith.constant dense<0.000000e+00> : vector<8x128xf32>
    %229 = tpu.matmul %201, %44, %cst_117 {dimension_numbers = #tpu.dot_dimension_numbers<[1], [0], [0], [1], [0, 0, 1, 1], [], []>} : vector<8x32xf32>, vector<32x128xf32>, vector<8x128xf32> -> vector<8x128xf32>
    %230 = arith.addf %228, %229 : vector<8x128xf32>
    %231 = arith.negf %230 : vector<8x128xf32>
    %232 = math.exp %231 : vector<8x128xf32>
    %cst_118 = arith.constant 1.000000e+00 : f32
    %233 = vector.broadcast %cst_118 : f32 to vector<8x128xf32>
    %234 = arith.addf %233, %232 : vector<8x128xf32>
    %235 = arith.divf %233, %234 : vector<8x128xf32>
    %236 = math.tanh %230 : vector<8x128xf32>
    %237 = vector.extract_strided_slice %235 {offsets = [0, 0], sizes = [8, 32], strides = [1, 1]} : vector<8x128xf32> to vector<8x32xf32>
    %238 = vector.extract_strided_slice %235 {offsets = [0, 32], sizes = [8, 32], strides = [1, 1]} : vector<8x128xf32> to vector<8x32xf32>
    %239 = vector.extract_strided_slice %236 {offsets = [0, 64], sizes = [8, 32], strides = [1, 1]} : vector<8x128xf32> to vector<8x32xf32>
    %240 = vector.extract_strided_slice %235 {offsets = [0, 96], sizes = [8, 32], strides = [1, 1]} : vector<8x128xf32> to vector<8x32xf32>
    %241 = arith.mulf %238, %199 : vector<8x32xf32>
    %242 = arith.mulf %237, %239 : vector<8x32xf32>
    %243 = arith.addf %241, %242 : vector<8x32xf32>
    %244 = math.tanh %243 : vector<8x32xf32>
    %245 = arith.mulf %240, %244 : vector<8x32xf32>
    %c0_119 = arith.constant 0 : index
    %c32_120 = arith.constant 32 : index
    %c0_121 = arith.constant 0 : index
    %246 = vector.load %arg15[%c0_119, %c32_120, %c0_121] : memref<2x64x32xf32, #tpu.memory_space<vmem>>, vector<1x8x32xf32>
    %247 = vector.shape_cast %246 : vector<1x8x32xf32> to vector<8x32xf32>
    %248 = vector.shape_cast %245 : vector<8x32xf32> to vector<1x8x32xf32>
    tpu.vector_store %arg15[%c0_119, %c32_120, %c0_121], %248 {strides = array<i32>} : memref<2x64x32xf32, #tpu.memory_space<vmem>>, vector<1x8x32xf32>,
    %c1_122 = arith.constant 1 : index
    %c24_123 = arith.constant 24 : index
    %c0_124 = arith.constant 0 : index
    %249 = vector.load %arg14[%c1_122, %c24_123, %c0_124] : memref<2x64x128xf32, #tpu.memory_space<vmem>>, vector<1x8x128xf32>
    %250 = vector.shape_cast %249 : vector<1x8x128xf32> to vector<8x128xf32>
    %cst_125 = arith.constant dense<0.000000e+00> : vector<8x128xf32>
    %251 = tpu.matmul %223, %50, %cst_125 {dimension_numbers = #tpu.dot_dimension_numbers<[1], [0], [0], [1], [0, 0, 1, 1], [], []>} : vector<8x32xf32>, vector<32x128xf32>, vector<8x128xf32> -> vector<8x128xf32>
    %252 = arith.addf %250, %251 : vector<8x128xf32>
    %253 = arith.negf %252 : vector<8x128xf32>
    %254 = math.exp %253 : vector<8x128xf32>
    %cst_126 = arith.constant 1.000000e+00 : f32
    %255 = vector.broadcast %cst_126 : f32 to vector<8x128xf32>
    %256 = arith.addf %255, %254 : vector<8x128xf32>
    %257 = arith.divf %255, %256 : vector<8x128xf32>
    %258 = math.tanh %252 : vector<8x128xf32>
    %259 = vector.extract_strided_slice %257 {offsets = [0, 0], sizes = [8, 32], strides = [1, 1]} : vector<8x128xf32> to vector<8x32xf32>
    %260 = vector.extract_strided_slice %257 {offsets = [0, 32], sizes = [8, 32], strides = [1, 1]} : vector<8x128xf32> to vector<8x32xf32>
    %261 = vector.extract_strided_slice %258 {offsets = [0, 64], sizes = [8, 32], strides = [1, 1]} : vector<8x128xf32> to vector<8x32xf32>
    %262 = vector.extract_strided_slice %257 {offsets = [0, 96], sizes = [8, 32], strides = [1, 1]} : vector<8x128xf32> to vector<8x32xf32>
    %263 = arith.mulf %260, %221 : vector<8x32xf32>
    %264 = arith.mulf %259, %261 : vector<8x32xf32>
    %265 = arith.addf %263, %264 : vector<8x32xf32>
    %266 = math.tanh %265 : vector<8x32xf32>
    %267 = arith.mulf %262, %266 : vector<8x32xf32>
    %c1_127 = arith.constant 1 : index
    %c24_128 = arith.constant 24 : index
    %c0_129 = arith.constant 0 : index
    %268 = vector.load %arg15[%c1_127, %c24_128, %c0_129] : memref<2x64x32xf32, #tpu.memory_space<vmem>>, vector<1x8x32xf32>
    %269 = vector.shape_cast %268 : vector<1x8x32xf32> to vector<8x32xf32>
    %270 = vector.shape_cast %267 : vector<8x32xf32> to vector<1x8x32xf32>
    tpu.vector_store %arg15[%c1_127, %c24_128, %c0_129], %270 {strides = array<i32>} : memref<2x64x32xf32, #tpu.memory_space<vmem>>, vector<1x8x32xf32>,
    %c0_130 = arith.constant 0 : index
    %c40_131 = arith.constant 40 : index
    %c0_132 = arith.constant 0 : index
    %271 = vector.load %arg14[%c0_130, %c40_131, %c0_132] : memref<2x64x128xf32, #tpu.memory_space<vmem>>, vector<1x8x128xf32>
    %272 = vector.shape_cast %271 : vector<1x8x128xf32> to vector<8x128xf32>
    %cst_133 = arith.constant dense<0.000000e+00> : vector<8x128xf32>
    %273 = tpu.matmul %245, %44, %cst_133 {dimension_numbers = #tpu.dot_dimension_numbers<[1], [0], [0], [1], [0, 0, 1, 1], [], []>} : vector<8x32xf32>, vector<32x128xf32>, vector<8x128xf32> -> vector<8x128xf32>
    %274 = arith.addf %272, %273 : vector<8x128xf32>
    %275 = arith.negf %274 : vector<8x128xf32>
    %276 = math.exp %275 : vector<8x128xf32>
    %cst_134 = arith.constant 1.000000e+00 : f32
    %277 = vector.broadcast %cst_134 : f32 to vector<8x128xf32>
    %278 = arith.addf %277, %276 : vector<8x128xf32>
    %279 = arith.divf %277, %278 : vector<8x128xf32>
    %280 = math.tanh %274 : vector<8x128xf32>
    %281 = vector.extract_strided_slice %279 {offsets = [0, 0], sizes = [8, 32], strides = [1, 1]} : vector<8x128xf32> to vector<8x32xf32>
    %282 = vector.extract_strided_slice %279 {offsets = [0, 32], sizes = [8, 32], strides = [1, 1]} : vector<8x128xf32> to vector<8x32xf32>
    %283 = vector.extract_strided_slice %280 {offsets = [0, 64], sizes = [8, 32], strides = [1, 1]} : vector<8x128xf32> to vector<8x32xf32>
    %284 = vector.extract_strided_slice %279 {offsets = [0, 96], sizes = [8, 32], strides = [1, 1]} : vector<8x128xf32> to vector<8x32xf32>
    %285 = arith.mulf %282, %243 : vector<8x32xf32>
    %286 = arith.mulf %281, %283 : vector<8x32xf32>
    %287 = arith.addf %285, %286 : vector<8x32xf32>
    %288 = math.tanh %287 : vector<8x32xf32>
    %289 = arith.mulf %284, %288 : vector<8x32xf32>
    %c0_135 = arith.constant 0 : index
    %c40_136 = arith.constant 40 : index
    %c0_137 = arith.constant 0 : index
    %290 = vector.load %arg15[%c0_135, %c40_136, %c0_137] : memref<2x64x32xf32, #tpu.memory_space<vmem>>, vector<1x8x32xf32>
    %291 = vector.shape_cast %290 : vector<1x8x32xf32> to vector<8x32xf32>
    %292 = vector.shape_cast %289 : vector<8x32xf32> to vector<1x8x32xf32>
    tpu.vector_store %arg15[%c0_135, %c40_136, %c0_137], %292 {strides = array<i32>} : memref<2x64x32xf32, #tpu.memory_space<vmem>>, vector<1x8x32xf32>,
    %c1_138 = arith.constant 1 : index
    %c16_139 = arith.constant 16 : index
    %c0_140 = arith.constant 0 : index
    %293 = vector.load %arg14[%c1_138, %c16_139, %c0_140] : memref<2x64x128xf32, #tpu.memory_space<vmem>>, vector<1x8x128xf32>
    %294 = vector.shape_cast %293 : vector<1x8x128xf32> to vector<8x128xf32>
    %cst_141 = arith.constant dense<0.000000e+00> : vector<8x128xf32>
    %295 = tpu.matmul %267, %50, %cst_141 {dimension_numbers = #tpu.dot_dimension_numbers<[1], [0], [0], [1], [0, 0, 1, 1], [], []>} : vector<8x32xf32>, vector<32x128xf32>, vector<8x128xf32> -> vector<8x128xf32>
    %296 = arith.addf %294, %295 : vector<8x128xf32>
    %297 = arith.negf %296 : vector<8x128xf32>
    %298 = math.exp %297 : vector<8x128xf32>
    %cst_142 = arith.constant 1.000000e+00 : f32
    %299 = vector.broadcast %cst_142 : f32 to vector<8x128xf32>
    %300 = arith.addf %299, %298 : vector<8x128xf32>
    %301 = arith.divf %299, %300 : vector<8x128xf32>
    %302 = math.tanh %296 : vector<8x128xf32>
    %303 = vector.extract_strided_slice %301 {offsets = [0, 0], sizes = [8, 32], strides = [1, 1]} : vector<8x128xf32> to vector<8x32xf32>
    %304 = vector.extract_strided_slice %301 {offsets = [0, 32], sizes = [8, 32], strides = [1, 1]} : vector<8x128xf32> to vector<8x32xf32>
    %305 = vector.extract_strided_slice %302 {offsets = [0, 64], sizes = [8, 32], strides = [1, 1]} : vector<8x128xf32> to vector<8x32xf32>
    %306 = vector.extract_strided_slice %301 {offsets = [0, 96], sizes = [8, 32], strides = [1, 1]} : vector<8x128xf32> to vector<8x32xf32>
    %307 = arith.mulf %304, %265 : vector<8x32xf32>
    %308 = arith.mulf %303, %305 : vector<8x32xf32>
    %309 = arith.addf %307, %308 : vector<8x32xf32>
    %310 = math.tanh %309 : vector<8x32xf32>
    %311 = arith.mulf %306, %310 : vector<8x32xf32>
    %c1_143 = arith.constant 1 : index
    %c16_144 = arith.constant 16 : index
    %c0_145 = arith.constant 0 : index
    %312 = vector.load %arg15[%c1_143, %c16_144, %c0_145] : memref<2x64x32xf32, #tpu.memory_space<vmem>>, vector<1x8x32xf32>
    %313 = vector.shape_cast %312 : vector<1x8x32xf32> to vector<8x32xf32>
    %314 = vector.shape_cast %311 : vector<8x32xf32> to vector<1x8x32xf32>
    tpu.vector_store %arg15[%c1_143, %c16_144, %c0_145], %314 {strides = array<i32>} : memref<2x64x32xf32, #tpu.memory_space<vmem>>, vector<1x8x32xf32>,
    %c0_146 = arith.constant 0 : index
    %c48_147 = arith.constant 48 : index
    %c0_148 = arith.constant 0 : index
    %315 = vector.load %arg14[%c0_146, %c48_147, %c0_148] : memref<2x64x128xf32, #tpu.memory_space<vmem>>, vector<1x8x128xf32>
    %316 = vector.shape_cast %315 : vector<1x8x128xf32> to vector<8x128xf32>
    %cst_149 = arith.constant dense<0.000000e+00> : vector<8x128xf32>
    %317 = tpu.matmul %289, %44, %cst_149 {dimension_numbers = #tpu.dot_dimension_numbers<[1], [0], [0], [1], [0, 0, 1, 1], [], []>} : vector<8x32xf32>, vector<32x128xf32>, vector<8x128xf32> -> vector<8x128xf32>
    %318 = arith.addf %316, %317 : vector<8x128xf32>
    %319 = arith.negf %318 : vector<8x128xf32>
    %320 = math.exp %319 : vector<8x128xf32>
    %cst_150 = arith.constant 1.000000e+00 : f32
    %321 = vector.broadcast %cst_150 : f32 to vector<8x128xf32>
    %322 = arith.addf %321, %320 : vector<8x128xf32>
    %323 = arith.divf %321, %322 : vector<8x128xf32>
    %324 = math.tanh %318 : vector<8x128xf32>
    %325 = vector.extract_strided_slice %323 {offsets = [0, 0], sizes = [8, 32], strides = [1, 1]} : vector<8x128xf32> to vector<8x32xf32>
    %326 = vector.extract_strided_slice %323 {offsets = [0, 32], sizes = [8, 32], strides = [1, 1]} : vector<8x128xf32> to vector<8x32xf32>
    %327 = vector.extract_strided_slice %324 {offsets = [0, 64], sizes = [8, 32], strides = [1, 1]} : vector<8x128xf32> to vector<8x32xf32>
    %328 = vector.extract_strided_slice %323 {offsets = [0, 96], sizes = [8, 32], strides = [1, 1]} : vector<8x128xf32> to vector<8x32xf32>
    %329 = arith.mulf %326, %287 : vector<8x32xf32>
    %330 = arith.mulf %325, %327 : vector<8x32xf32>
    %331 = arith.addf %329, %330 : vector<8x32xf32>
    %332 = math.tanh %331 : vector<8x32xf32>
    %333 = arith.mulf %328, %332 : vector<8x32xf32>
    %c0_151 = arith.constant 0 : index
    %c48_152 = arith.constant 48 : index
    %c0_153 = arith.constant 0 : index
    %334 = vector.load %arg15[%c0_151, %c48_152, %c0_153] : memref<2x64x32xf32, #tpu.memory_space<vmem>>, vector<1x8x32xf32>
    %335 = vector.shape_cast %334 : vector<1x8x32xf32> to vector<8x32xf32>
    %336 = vector.shape_cast %333 : vector<8x32xf32> to vector<1x8x32xf32>
    tpu.vector_store %arg15[%c0_151, %c48_152, %c0_153], %336 {strides = array<i32>} : memref<2x64x32xf32, #tpu.memory_space<vmem>>, vector<1x8x32xf32>,
    %c1_154 = arith.constant 1 : index
    %c8_155 = arith.constant 8 : index
    %c0_156 = arith.constant 0 : index
    %337 = vector.load %arg14[%c1_154, %c8_155, %c0_156] : memref<2x64x128xf32, #tpu.memory_space<vmem>>, vector<1x8x128xf32>
    %338 = vector.shape_cast %337 : vector<1x8x128xf32> to vector<8x128xf32>
    %cst_157 = arith.constant dense<0.000000e+00> : vector<8x128xf32>
    %339 = tpu.matmul %311, %50, %cst_157 {dimension_numbers = #tpu.dot_dimension_numbers<[1], [0], [0], [1], [0, 0, 1, 1], [], []>} : vector<8x32xf32>, vector<32x128xf32>, vector<8x128xf32> -> vector<8x128xf32>
    %340 = arith.addf %338, %339 : vector<8x128xf32>
    %341 = arith.negf %340 : vector<8x128xf32>
    %342 = math.exp %341 : vector<8x128xf32>
    %cst_158 = arith.constant 1.000000e+00 : f32
    %343 = vector.broadcast %cst_158 : f32 to vector<8x128xf32>
    %344 = arith.addf %343, %342 : vector<8x128xf32>
    %345 = arith.divf %343, %344 : vector<8x128xf32>
    %346 = math.tanh %340 : vector<8x128xf32>
    %347 = vector.extract_strided_slice %345 {offsets = [0, 0], sizes = [8, 32], strides = [1, 1]} : vector<8x128xf32> to vector<8x32xf32>
    %348 = vector.extract_strided_slice %345 {offsets = [0, 32], sizes = [8, 32], strides = [1, 1]} : vector<8x128xf32> to vector<8x32xf32>
    %349 = vector.extract_strided_slice %346 {offsets = [0, 64], sizes = [8, 32], strides = [1, 1]} : vector<8x128xf32> to vector<8x32xf32>
    %350 = vector.extract_strided_slice %345 {offsets = [0, 96], sizes = [8, 32], strides = [1, 1]} : vector<8x128xf32> to vector<8x32xf32>
    %351 = arith.mulf %348, %309 : vector<8x32xf32>
    %352 = arith.mulf %347, %349 : vector<8x32xf32>
    %353 = arith.addf %351, %352 : vector<8x32xf32>
    %354 = math.tanh %353 : vector<8x32xf32>
    %355 = arith.mulf %350, %354 : vector<8x32xf32>
    %c1_159 = arith.constant 1 : index
    %c8_160 = arith.constant 8 : index
    %c0_161 = arith.constant 0 : index
    %356 = vector.load %arg15[%c1_159, %c8_160, %c0_161] : memref<2x64x32xf32, #tpu.memory_space<vmem>>, vector<1x8x32xf32>
    %357 = vector.shape_cast %356 : vector<1x8x32xf32> to vector<8x32xf32>
    %358 = vector.shape_cast %355 : vector<8x32xf32> to vector<1x8x32xf32>
    tpu.vector_store %arg15[%c1_159, %c8_160, %c0_161], %358 {strides = array<i32>} : memref<2x64x32xf32, #tpu.memory_space<vmem>>, vector<1x8x32xf32>,
    %c0_162 = arith.constant 0 : index
    %c56_163 = arith.constant 56 : index
    %c0_164 = arith.constant 0 : index
    %359 = vector.load %arg14[%c0_162, %c56_163, %c0_164] : memref<2x64x128xf32, #tpu.memory_space<vmem>>, vector<1x8x128xf32>
    %360 = vector.shape_cast %359 : vector<1x8x128xf32> to vector<8x128xf32>
    %cst_165 = arith.constant dense<0.000000e+00> : vector<8x128xf32>
    %361 = tpu.matmul %333, %44, %cst_165 {dimension_numbers = #tpu.dot_dimension_numbers<[1], [0], [0], [1], [0, 0, 1, 1], [], []>} : vector<8x32xf32>, vector<32x128xf32>, vector<8x128xf32> -> vector<8x128xf32>
    %362 = arith.addf %360, %361 : vector<8x128xf32>
    %363 = arith.negf %362 : vector<8x128xf32>
    %364 = math.exp %363 : vector<8x128xf32>
    %cst_166 = arith.constant 1.000000e+00 : f32
    %365 = vector.broadcast %cst_166 : f32 to vector<8x128xf32>
    %366 = arith.addf %365, %364 : vector<8x128xf32>
    %367 = arith.divf %365, %366 : vector<8x128xf32>
    %368 = math.tanh %362 : vector<8x128xf32>
    %369 = vector.extract_strided_slice %367 {offsets = [0, 0], sizes = [8, 32], strides = [1, 1]} : vector<8x128xf32> to vector<8x32xf32>
    %370 = vector.extract_strided_slice %367 {offsets = [0, 32], sizes = [8, 32], strides = [1, 1]} : vector<8x128xf32> to vector<8x32xf32>
    %371 = vector.extract_strided_slice %368 {offsets = [0, 64], sizes = [8, 32], strides = [1, 1]} : vector<8x128xf32> to vector<8x32xf32>
    %372 = vector.extract_strided_slice %367 {offsets = [0, 96], sizes = [8, 32], strides = [1, 1]} : vector<8x128xf32> to vector<8x32xf32>
    %373 = arith.mulf %370, %331 : vector<8x32xf32>
    %374 = arith.mulf %369, %371 : vector<8x32xf32>
    %375 = arith.addf %373, %374 : vector<8x32xf32>
    %376 = math.tanh %375 : vector<8x32xf32>
    %377 = arith.mulf %372, %376 : vector<8x32xf32>
    %c0_167 = arith.constant 0 : index
    %c56_168 = arith.constant 56 : index
    %c0_169 = arith.constant 0 : index
    %378 = vector.load %arg15[%c0_167, %c56_168, %c0_169] : memref<2x64x32xf32, #tpu.memory_space<vmem>>, vector<1x8x32xf32>
    %379 = vector.shape_cast %378 : vector<1x8x32xf32> to vector<8x32xf32>
    %380 = vector.shape_cast %377 : vector<8x32xf32> to vector<1x8x32xf32>
    tpu.vector_store %arg15[%c0_167, %c56_168, %c0_169], %380 {strides = array<i32>} : memref<2x64x32xf32, #tpu.memory_space<vmem>>, vector<1x8x32xf32>,
    %c1_170 = arith.constant 1 : index
    %c0_171 = arith.constant 0 : index
    %c0_172 = arith.constant 0 : index
    %381 = vector.load %arg14[%c1_170, %c0_171, %c0_172] : memref<2x64x128xf32, #tpu.memory_space<vmem>>, vector<1x8x128xf32>
    %382 = vector.shape_cast %381 : vector<1x8x128xf32> to vector<8x128xf32>
    %cst_173 = arith.constant dense<0.000000e+00> : vector<8x128xf32>
    %383 = tpu.matmul %355, %50, %cst_173 {dimension_numbers = #tpu.dot_dimension_numbers<[1], [0], [0], [1], [0, 0, 1, 1], [], []>} : vector<8x32xf32>, vector<32x128xf32>, vector<8x128xf32> -> vector<8x128xf32>
    %384 = arith.addf %382, %383 : vector<8x128xf32>
    %385 = arith.negf %384 : vector<8x128xf32>
    %386 = math.exp %385 : vector<8x128xf32>
    %cst_174 = arith.constant 1.000000e+00 : f32
    %387 = vector.broadcast %cst_174 : f32 to vector<8x128xf32>
    %388 = arith.addf %387, %386 : vector<8x128xf32>
    %389 = arith.divf %387, %388 : vector<8x128xf32>
    %390 = math.tanh %384 : vector<8x128xf32>
    %391 = vector.extract_strided_slice %389 {offsets = [0, 0], sizes = [8, 32], strides = [1, 1]} : vector<8x128xf32> to vector<8x32xf32>
    %392 = vector.extract_strided_slice %389 {offsets = [0, 32], sizes = [8, 32], strides = [1, 1]} : vector<8x128xf32> to vector<8x32xf32>
    %393 = vector.extract_strided_slice %390 {offsets = [0, 64], sizes = [8, 32], strides = [1, 1]} : vector<8x128xf32> to vector<8x32xf32>
    %394 = vector.extract_strided_slice %389 {offsets = [0, 96], sizes = [8, 32], strides = [1, 1]} : vector<8x128xf32> to vector<8x32xf32>
    %395 = arith.mulf %392, %353 : vector<8x32xf32>
    %396 = arith.mulf %391, %393 : vector<8x32xf32>
    %397 = arith.addf %395, %396 : vector<8x32xf32>
    %398 = math.tanh %397 : vector<8x32xf32>
    %399 = arith.mulf %394, %398 : vector<8x32xf32>
    %c1_175 = arith.constant 1 : index
    %c0_176 = arith.constant 0 : index
    %c0_177 = arith.constant 0 : index
    %400 = vector.load %arg15[%c1_175, %c0_176, %c0_177] : memref<2x64x32xf32, #tpu.memory_space<vmem>>, vector<1x8x32xf32>
    %401 = vector.shape_cast %400 : vector<1x8x32xf32> to vector<8x32xf32>
    %402 = vector.shape_cast %399 : vector<8x32xf32> to vector<1x8x32xf32>
    tpu.vector_store %arg15[%c1_175, %c0_176, %c0_177], %402 {strides = array<i32>} : memref<2x64x32xf32, #tpu.memory_space<vmem>>, vector<1x8x32xf32>,
    %c0_178 = arith.constant 0 : index
    %c0_179 = arith.constant 0 : index
    %c0_180 = arith.constant 0 : index
    %403 = vector.load %arg15[%c0_178, %c0_179, %c0_180] : memref<2x64x32xf32, #tpu.memory_space<vmem>>, vector<1x64x32xf32>
    %404 = vector.shape_cast %403 : vector<1x64x32xf32> to vector<64x32xf32>
    %c1_181 = arith.constant 1 : index
    %c0_182 = arith.constant 0 : index
    %c0_183 = arith.constant 0 : index
    %405 = vector.load %arg15[%c1_181, %c0_182, %c0_183] : memref<2x64x32xf32, #tpu.memory_space<vmem>>, vector<1x64x32xf32>
    %406 = vector.shape_cast %405 : vector<1x64x32xf32> to vector<64x32xf32>
    %407 = tpu.concatenate %404, %406 in 1 : vector<64x32xf32>, vector<64x32xf32> -> vector<64x64xf32>
    %c2 = arith.constant 2 : index
    %c0_184 = arith.constant 0 : index
    %c0_185 = arith.constant 0 : index
    %408 = vector.load %arg8[%c2, %c0_184, %c0_185] : memref<4x1x128xf32, #tpu.memory_space<vmem>>, vector<1x1x128xf32>
    %409 = vector.shape_cast %408 : vector<1x1x128xf32> to vector<1x128xf32>
    %c0_186 = arith.constant 0 : index
    %c0_187 = arith.constant 0 : index
    %c0_188 = arith.constant 0 : index
    %410 = vector.load %arg6[%c0_186, %c0_187, %c0_188] : memref<2x64x128xf32, #tpu.memory_space<vmem>>, vector<1x64x128xf32>
    %411 = vector.shape_cast %410 : vector<1x64x128xf32> to vector<64x128xf32>
    %cst_189 = arith.constant dense<0.000000e+00> : vector<64x128xf32>
    %412 = tpu.matmul %407, %411, %cst_189 {dimension_numbers = #tpu.dot_dimension_numbers<[1], [0], [0], [1], [0, 0, 1, 1], [], []>} : vector<64x64xf32>, vector<64x128xf32>, vector<64x128xf32> -> vector<64x128xf32>
    %413 = vector.broadcast %409 : vector<1x128xf32> to vector<64x128xf32>
    %414 = arith.addf %412, %413 : vector<64x128xf32>
    %c0_190 = arith.constant 0 : index
    %c0_191 = arith.constant 0 : index
    %c0_192 = arith.constant 0 : index
    %415 = vector.load %arg14[%c0_190, %c0_191, %c0_192] : memref<2x64x128xf32, #tpu.memory_space<vmem>>, vector<1x64x128xf32>
    %416 = vector.shape_cast %415 : vector<1x64x128xf32> to vector<64x128xf32>
    %417 = vector.shape_cast %414 : vector<64x128xf32> to vector<1x64x128xf32>
    tpu.vector_store %arg14[%c0_190, %c0_191, %c0_192], %417 {strides = array<i32>} : memref<2x64x128xf32, #tpu.memory_space<vmem>>, vector<1x64x128xf32>,
    %c3 = arith.constant 3 : index
    %c0_193 = arith.constant 0 : index
    %c0_194 = arith.constant 0 : index
    %418 = vector.load %arg8[%c3, %c0_193, %c0_194] : memref<4x1x128xf32, #tpu.memory_space<vmem>>, vector<1x1x128xf32>
    %419 = vector.shape_cast %418 : vector<1x1x128xf32> to vector<1x128xf32>
    %c1_195 = arith.constant 1 : index
    %c0_196 = arith.constant 0 : index
    %c0_197 = arith.constant 0 : index
    %420 = vector.load %arg6[%c1_195, %c0_196, %c0_197] : memref<2x64x128xf32, #tpu.memory_space<vmem>>, vector<1x64x128xf32>
    %421 = vector.shape_cast %420 : vector<1x64x128xf32> to vector<64x128xf32>
    %cst_198 = arith.constant dense<0.000000e+00> : vector<64x128xf32>
    %422 = tpu.matmul %407, %421, %cst_198 {dimension_numbers = #tpu.dot_dimension_numbers<[1], [0], [0], [1], [0, 0, 1, 1], [], []>} : vector<64x64xf32>, vector<64x128xf32>, vector<64x128xf32> -> vector<64x128xf32>
    %423 = vector.broadcast %419 : vector<1x128xf32> to vector<64x128xf32>
    %424 = arith.addf %422, %423 : vector<64x128xf32>
    %c1_199 = arith.constant 1 : index
    %c0_200 = arith.constant 0 : index
    %c0_201 = arith.constant 0 : index
    %425 = vector.load %arg14[%c1_199, %c0_200, %c0_201] : memref<2x64x128xf32, #tpu.memory_space<vmem>>, vector<1x64x128xf32>
    %426 = vector.shape_cast %425 : vector<1x64x128xf32> to vector<64x128xf32>
    %427 = vector.shape_cast %424 : vector<64x128xf32> to vector<1x64x128xf32>
    tpu.vector_store %arg14[%c1_199, %c0_200, %c0_201], %427 {strides = array<i32>} : memref<2x64x128xf32, #tpu.memory_space<vmem>>, vector<1x64x128xf32>,
    %c2_202 = arith.constant 2 : index
    %c0_203 = arith.constant 0 : index
    %c0_204 = arith.constant 0 : index
    %428 = vector.load %arg9[%c2_202, %c0_203, %c0_204] : memref<4x8x32xf32, #tpu.memory_space<vmem>>, vector<1x8x32xf32>
    %429 = vector.shape_cast %428 : vector<1x8x32xf32> to vector<8x32xf32>
    %c2_205 = arith.constant 2 : index
    %c0_206 = arith.constant 0 : index
    %c0_207 = arith.constant 0 : index
    %430 = vector.load %arg10[%c2_205, %c0_206, %c0_207] : memref<4x8x32xf32, #tpu.memory_space<vmem>>, vector<1x8x32xf32>
    %431 = vector.shape_cast %430 : vector<1x8x32xf32> to vector<8x32xf32>
    %c2_208 = arith.constant 2 : index
    %c0_209 = arith.constant 0 : index
    %c0_210 = arith.constant 0 : index
    %432 = vector.load %arg7[%c2_208, %c0_209, %c0_210] : memref<4x32x128xf32, #tpu.memory_space<vmem>>, vector<1x32x128xf32>
    %433 = vector.shape_cast %432 : vector<1x32x128xf32> to vector<32x128xf32>
    %c3_211 = arith.constant 3 : index
    %c0_212 = arith.constant 0 : index
    %c0_213 = arith.constant 0 : index
    %434 = vector.load %arg9[%c3_211, %c0_212, %c0_213] : memref<4x8x32xf32, #tpu.memory_space<vmem>>, vector<1x8x32xf32>
    %435 = vector.shape_cast %434 : vector<1x8x32xf32> to vector<8x32xf32>
    %c3_214 = arith.constant 3 : index
    %c0_215 = arith.constant 0 : index
    %c0_216 = arith.constant 0 : index
    %436 = vector.load %arg10[%c3_214, %c0_215, %c0_216] : memref<4x8x32xf32, #tpu.memory_space<vmem>>, vector<1x8x32xf32>
    %437 = vector.shape_cast %436 : vector<1x8x32xf32> to vector<8x32xf32>
    %c3_217 = arith.constant 3 : index
    %c0_218 = arith.constant 0 : index
    %c0_219 = arith.constant 0 : index
    %438 = vector.load %arg7[%c3_217, %c0_218, %c0_219] : memref<4x32x128xf32, #tpu.memory_space<vmem>>, vector<1x32x128xf32>
    %439 = vector.shape_cast %438 : vector<1x32x128xf32> to vector<32x128xf32>
    %c0_220 = arith.constant 0 : index
    %c0_221 = arith.constant 0 : index
    %c0_222 = arith.constant 0 : index
    %440 = vector.load %arg14[%c0_220, %c0_221, %c0_222] : memref<2x64x128xf32, #tpu.memory_space<vmem>>, vector<1x8x128xf32>
    %441 = vector.shape_cast %440 : vector<1x8x128xf32> to vector<8x128xf32>
    %cst_223 = arith.constant dense<0.000000e+00> : vector<8x128xf32>
    %442 = tpu.matmul %429, %433, %cst_223 {dimension_numbers = #tpu.dot_dimension_numbers<[1], [0], [0], [1], [0, 0, 1, 1], [], []>} : vector<8x32xf32>, vector<32x128xf32>, vector<8x128xf32> -> vector<8x128xf32>
    %443 = arith.addf %441, %442 : vector<8x128xf32>
    %444 = arith.negf %443 : vector<8x128xf32>
    %445 = math.exp %444 : vector<8x128xf32>
    %cst_224 = arith.constant 1.000000e+00 : f32
    %446 = vector.broadcast %cst_224 : f32 to vector<8x128xf32>
    %447 = arith.addf %446, %445 : vector<8x128xf32>
    %448 = arith.divf %446, %447 : vector<8x128xf32>
    %449 = math.tanh %443 : vector<8x128xf32>
    %450 = vector.extract_strided_slice %448 {offsets = [0, 0], sizes = [8, 32], strides = [1, 1]} : vector<8x128xf32> to vector<8x32xf32>
    %451 = vector.extract_strided_slice %448 {offsets = [0, 32], sizes = [8, 32], strides = [1, 1]} : vector<8x128xf32> to vector<8x32xf32>
    %452 = vector.extract_strided_slice %449 {offsets = [0, 64], sizes = [8, 32], strides = [1, 1]} : vector<8x128xf32> to vector<8x32xf32>
    %453 = vector.extract_strided_slice %448 {offsets = [0, 96], sizes = [8, 32], strides = [1, 1]} : vector<8x128xf32> to vector<8x32xf32>
    %454 = arith.mulf %451, %431 : vector<8x32xf32>
    %455 = arith.mulf %450, %452 : vector<8x32xf32>
    %456 = arith.addf %454, %455 : vector<8x32xf32>
    %457 = math.tanh %456 : vector<8x32xf32>
    %458 = arith.mulf %453, %457 : vector<8x32xf32>
    %c1_225 = arith.constant 1 : index
    %c56_226 = arith.constant 56 : index
    %c0_227 = arith.constant 0 : index
    %459 = vector.load %arg14[%c1_225, %c56_226, %c0_227] : memref<2x64x128xf32, #tpu.memory_space<vmem>>, vector<1x8x128xf32>
    %460 = vector.shape_cast %459 : vector<1x8x128xf32> to vector<8x128xf32>
    %cst_228 = arith.constant dense<0.000000e+00> : vector<8x128xf32>
    %461 = tpu.matmul %435, %439, %cst_228 {dimension_numbers = #tpu.dot_dimension_numbers<[1], [0], [0], [1], [0, 0, 1, 1], [], []>} : vector<8x32xf32>, vector<32x128xf32>, vector<8x128xf32> -> vector<8x128xf32>
    %462 = arith.addf %460, %461 : vector<8x128xf32>
    %463 = arith.negf %462 : vector<8x128xf32>
    %464 = math.exp %463 : vector<8x128xf32>
    %cst_229 = arith.constant 1.000000e+00 : f32
    %465 = vector.broadcast %cst_229 : f32 to vector<8x128xf32>
    %466 = arith.addf %465, %464 : vector<8x128xf32>
    %467 = arith.divf %465, %466 : vector<8x128xf32>
    %468 = math.tanh %462 : vector<8x128xf32>
    %469 = vector.extract_strided_slice %467 {offsets = [0, 0], sizes = [8, 32], strides = [1, 1]} : vector<8x128xf32> to vector<8x32xf32>
    %470 = vector.extract_strided_slice %467 {offsets = [0, 32], sizes = [8, 32], strides = [1, 1]} : vector<8x128xf32> to vector<8x32xf32>
    %471 = vector.extract_strided_slice %468 {offsets = [0, 64], sizes = [8, 32], strides = [1, 1]} : vector<8x128xf32> to vector<8x32xf32>
    %472 = vector.extract_strided_slice %467 {offsets = [0, 96], sizes = [8, 32], strides = [1, 1]} : vector<8x128xf32> to vector<8x32xf32>
    %473 = arith.mulf %470, %437 : vector<8x32xf32>
    %474 = arith.mulf %469, %471 : vector<8x32xf32>
    %475 = arith.addf %473, %474 : vector<8x32xf32>
    %476 = math.tanh %475 : vector<8x32xf32>
    %477 = arith.mulf %472, %476 : vector<8x32xf32>
    %c0_230 = arith.constant 0 : index
    %c8_231 = arith.constant 8 : index
    %c0_232 = arith.constant 0 : index
    %478 = vector.load %arg14[%c0_230, %c8_231, %c0_232] : memref<2x64x128xf32, #tpu.memory_space<vmem>>, vector<1x8x128xf32>
    %479 = vector.shape_cast %478 : vector<1x8x128xf32> to vector<8x128xf32>
    %cst_233 = arith.constant dense<0.000000e+00> : vector<8x128xf32>
    %480 = tpu.matmul %458, %433, %cst_233 {dimension_numbers = #tpu.dot_dimension_numbers<[1], [0], [0], [1], [0, 0, 1, 1], [], []>} : vector<8x32xf32>, vector<32x128xf32>, vector<8x128xf32> -> vector<8x128xf32>
    %481 = arith.addf %479, %480 : vector<8x128xf32>
    %482 = arith.negf %481 : vector<8x128xf32>
    %483 = math.exp %482 : vector<8x128xf32>
    %cst_234 = arith.constant 1.000000e+00 : f32
    %484 = vector.broadcast %cst_234 : f32 to vector<8x128xf32>
    %485 = arith.addf %484, %483 : vector<8x128xf32>
    %486 = arith.divf %484, %485 : vector<8x128xf32>
    %487 = math.tanh %481 : vector<8x128xf32>
    %488 = vector.extract_strided_slice %486 {offsets = [0, 0], sizes = [8, 32], strides = [1, 1]} : vector<8x128xf32> to vector<8x32xf32>
    %489 = vector.extract_strided_slice %486 {offsets = [0, 32], sizes = [8, 32], strides = [1, 1]} : vector<8x128xf32> to vector<8x32xf32>
    %490 = vector.extract_strided_slice %487 {offsets = [0, 64], sizes = [8, 32], strides = [1, 1]} : vector<8x128xf32> to vector<8x32xf32>
    %491 = vector.extract_strided_slice %486 {offsets = [0, 96], sizes = [8, 32], strides = [1, 1]} : vector<8x128xf32> to vector<8x32xf32>
    %492 = arith.mulf %489, %456 : vector<8x32xf32>
    %493 = arith.mulf %488, %490 : vector<8x32xf32>
    %494 = arith.addf %492, %493 : vector<8x32xf32>
    %495 = math.tanh %494 : vector<8x32xf32>
    %496 = arith.mulf %491, %495 : vector<8x32xf32>
    %c1_235 = arith.constant 1 : index
    %c48_236 = arith.constant 48 : index
    %c0_237 = arith.constant 0 : index
    %497 = vector.load %arg14[%c1_235, %c48_236, %c0_237] : memref<2x64x128xf32, #tpu.memory_space<vmem>>, vector<1x8x128xf32>
    %498 = vector.shape_cast %497 : vector<1x8x128xf32> to vector<8x128xf32>
    %cst_238 = arith.constant dense<0.000000e+00> : vector<8x128xf32>
    %499 = tpu.matmul %477, %439, %cst_238 {dimension_numbers = #tpu.dot_dimension_numbers<[1], [0], [0], [1], [0, 0, 1, 1], [], []>} : vector<8x32xf32>, vector<32x128xf32>, vector<8x128xf32> -> vector<8x128xf32>
    %500 = arith.addf %498, %499 : vector<8x128xf32>
    %501 = arith.negf %500 : vector<8x128xf32>
    %502 = math.exp %501 : vector<8x128xf32>
    %cst_239 = arith.constant 1.000000e+00 : f32
    %503 = vector.broadcast %cst_239 : f32 to vector<8x128xf32>
    %504 = arith.addf %503, %502 : vector<8x128xf32>
    %505 = arith.divf %503, %504 : vector<8x128xf32>
    %506 = math.tanh %500 : vector<8x128xf32>
    %507 = vector.extract_strided_slice %505 {offsets = [0, 0], sizes = [8, 32], strides = [1, 1]} : vector<8x128xf32> to vector<8x32xf32>
    %508 = vector.extract_strided_slice %505 {offsets = [0, 32], sizes = [8, 32], strides = [1, 1]} : vector<8x128xf32> to vector<8x32xf32>
    %509 = vector.extract_strided_slice %506 {offsets = [0, 64], sizes = [8, 32], strides = [1, 1]} : vector<8x128xf32> to vector<8x32xf32>
    %510 = vector.extract_strided_slice %505 {offsets = [0, 96], sizes = [8, 32], strides = [1, 1]} : vector<8x128xf32> to vector<8x32xf32>
    %511 = arith.mulf %508, %475 : vector<8x32xf32>
    %512 = arith.mulf %507, %509 : vector<8x32xf32>
    %513 = arith.addf %511, %512 : vector<8x32xf32>
    %514 = math.tanh %513 : vector<8x32xf32>
    %515 = arith.mulf %510, %514 : vector<8x32xf32>
    %c0_240 = arith.constant 0 : index
    %c16_241 = arith.constant 16 : index
    %c0_242 = arith.constant 0 : index
    %516 = vector.load %arg14[%c0_240, %c16_241, %c0_242] : memref<2x64x128xf32, #tpu.memory_space<vmem>>, vector<1x8x128xf32>
    %517 = vector.shape_cast %516 : vector<1x8x128xf32> to vector<8x128xf32>
    %cst_243 = arith.constant dense<0.000000e+00> : vector<8x128xf32>
    %518 = tpu.matmul %496, %433, %cst_243 {dimension_numbers = #tpu.dot_dimension_numbers<[1], [0], [0], [1], [0, 0, 1, 1], [], []>} : vector<8x32xf32>, vector<32x128xf32>, vector<8x128xf32> -> vector<8x128xf32>
    %519 = arith.addf %517, %518 : vector<8x128xf32>
    %520 = arith.negf %519 : vector<8x128xf32>
    %521 = math.exp %520 : vector<8x128xf32>
    %cst_244 = arith.constant 1.000000e+00 : f32
    %522 = vector.broadcast %cst_244 : f32 to vector<8x128xf32>
    %523 = arith.addf %522, %521 : vector<8x128xf32>
    %524 = arith.divf %522, %523 : vector<8x128xf32>
    %525 = math.tanh %519 : vector<8x128xf32>
    %526 = vector.extract_strided_slice %524 {offsets = [0, 0], sizes = [8, 32], strides = [1, 1]} : vector<8x128xf32> to vector<8x32xf32>
    %527 = vector.extract_strided_slice %524 {offsets = [0, 32], sizes = [8, 32], strides = [1, 1]} : vector<8x128xf32> to vector<8x32xf32>
    %528 = vector.extract_strided_slice %525 {offsets = [0, 64], sizes = [8, 32], strides = [1, 1]} : vector<8x128xf32> to vector<8x32xf32>
    %529 = vector.extract_strided_slice %524 {offsets = [0, 96], sizes = [8, 32], strides = [1, 1]} : vector<8x128xf32> to vector<8x32xf32>
    %530 = arith.mulf %527, %494 : vector<8x32xf32>
    %531 = arith.mulf %526, %528 : vector<8x32xf32>
    %532 = arith.addf %530, %531 : vector<8x32xf32>
    %533 = math.tanh %532 : vector<8x32xf32>
    %534 = arith.mulf %529, %533 : vector<8x32xf32>
    %c1_245 = arith.constant 1 : index
    %c40_246 = arith.constant 40 : index
    %c0_247 = arith.constant 0 : index
    %535 = vector.load %arg14[%c1_245, %c40_246, %c0_247] : memref<2x64x128xf32, #tpu.memory_space<vmem>>, vector<1x8x128xf32>
    %536 = vector.shape_cast %535 : vector<1x8x128xf32> to vector<8x128xf32>
    %cst_248 = arith.constant dense<0.000000e+00> : vector<8x128xf32>
    %537 = tpu.matmul %515, %439, %cst_248 {dimension_numbers = #tpu.dot_dimension_numbers<[1], [0], [0], [1], [0, 0, 1, 1], [], []>} : vector<8x32xf32>, vector<32x128xf32>, vector<8x128xf32> -> vector<8x128xf32>
    %538 = arith.addf %536, %537 : vector<8x128xf32>
    %539 = arith.negf %538 : vector<8x128xf32>
    %540 = math.exp %539 : vector<8x128xf32>
    %cst_249 = arith.constant 1.000000e+00 : f32
    %541 = vector.broadcast %cst_249 : f32 to vector<8x128xf32>
    %542 = arith.addf %541, %540 : vector<8x128xf32>
    %543 = arith.divf %541, %542 : vector<8x128xf32>
    %544 = math.tanh %538 : vector<8x128xf32>
    %545 = vector.extract_strided_slice %543 {offsets = [0, 0], sizes = [8, 32], strides = [1, 1]} : vector<8x128xf32> to vector<8x32xf32>
    %546 = vector.extract_strided_slice %543 {offsets = [0, 32], sizes = [8, 32], strides = [1, 1]} : vector<8x128xf32> to vector<8x32xf32>
    %547 = vector.extract_strided_slice %544 {offsets = [0, 64], sizes = [8, 32], strides = [1, 1]} : vector<8x128xf32> to vector<8x32xf32>
    %548 = vector.extract_strided_slice %543 {offsets = [0, 96], sizes = [8, 32], strides = [1, 1]} : vector<8x128xf32> to vector<8x32xf32>
    %549 = arith.mulf %546, %513 : vector<8x32xf32>
    %550 = arith.mulf %545, %547 : vector<8x32xf32>
    %551 = arith.addf %549, %550 : vector<8x32xf32>
    %552 = math.tanh %551 : vector<8x32xf32>
    %553 = arith.mulf %548, %552 : vector<8x32xf32>
    %c0_250 = arith.constant 0 : index
    %c24_251 = arith.constant 24 : index
    %c0_252 = arith.constant 0 : index
    %554 = vector.load %arg14[%c0_250, %c24_251, %c0_252] : memref<2x64x128xf32, #tpu.memory_space<vmem>>, vector<1x8x128xf32>
    %555 = vector.shape_cast %554 : vector<1x8x128xf32> to vector<8x128xf32>
    %cst_253 = arith.constant dense<0.000000e+00> : vector<8x128xf32>
    %556 = tpu.matmul %534, %433, %cst_253 {dimension_numbers = #tpu.dot_dimension_numbers<[1], [0], [0], [1], [0, 0, 1, 1], [], []>} : vector<8x32xf32>, vector<32x128xf32>, vector<8x128xf32> -> vector<8x128xf32>
    %557 = arith.addf %555, %556 : vector<8x128xf32>
    %558 = arith.negf %557 : vector<8x128xf32>
    %559 = math.exp %558 : vector<8x128xf32>
    %cst_254 = arith.constant 1.000000e+00 : f32
    %560 = vector.broadcast %cst_254 : f32 to vector<8x128xf32>
    %561 = arith.addf %560, %559 : vector<8x128xf32>
    %562 = arith.divf %560, %561 : vector<8x128xf32>
    %563 = math.tanh %557 : vector<8x128xf32>
    %564 = vector.extract_strided_slice %562 {offsets = [0, 0], sizes = [8, 32], strides = [1, 1]} : vector<8x128xf32> to vector<8x32xf32>
    %565 = vector.extract_strided_slice %562 {offsets = [0, 32], sizes = [8, 32], strides = [1, 1]} : vector<8x128xf32> to vector<8x32xf32>
    %566 = vector.extract_strided_slice %563 {offsets = [0, 64], sizes = [8, 32], strides = [1, 1]} : vector<8x128xf32> to vector<8x32xf32>
    %567 = vector.extract_strided_slice %562 {offsets = [0, 96], sizes = [8, 32], strides = [1, 1]} : vector<8x128xf32> to vector<8x32xf32>
    %568 = arith.mulf %565, %532 : vector<8x32xf32>
    %569 = arith.mulf %564, %566 : vector<8x32xf32>
    %570 = arith.addf %568, %569 : vector<8x32xf32>
    %571 = math.tanh %570 : vector<8x32xf32>
    %572 = arith.mulf %567, %571 : vector<8x32xf32>
    %c1_255 = arith.constant 1 : index
    %c32_256 = arith.constant 32 : index
    %c0_257 = arith.constant 0 : index
    %573 = vector.load %arg14[%c1_255, %c32_256, %c0_257] : memref<2x64x128xf32, #tpu.memory_space<vmem>>, vector<1x8x128xf32>
    %574 = vector.shape_cast %573 : vector<1x8x128xf32> to vector<8x128xf32>
    %cst_258 = arith.constant dense<0.000000e+00> : vector<8x128xf32>
    %575 = tpu.matmul %553, %439, %cst_258 {dimension_numbers = #tpu.dot_dimension_numbers<[1], [0], [0], [1], [0, 0, 1, 1], [], []>} : vector<8x32xf32>, vector<32x128xf32>, vector<8x128xf32> -> vector<8x128xf32>
    %576 = arith.addf %574, %575 : vector<8x128xf32>
    %577 = arith.negf %576 : vector<8x128xf32>
    %578 = math.exp %577 : vector<8x128xf32>
    %cst_259 = arith.constant 1.000000e+00 : f32
    %579 = vector.broadcast %cst_259 : f32 to vector<8x128xf32>
    %580 = arith.addf %579, %578 : vector<8x128xf32>
    %581 = arith.divf %579, %580 : vector<8x128xf32>
    %582 = math.tanh %576 : vector<8x128xf32>
    %583 = vector.extract_strided_slice %581 {offsets = [0, 0], sizes = [8, 32], strides = [1, 1]} : vector<8x128xf32> to vector<8x32xf32>
    %584 = vector.extract_strided_slice %581 {offsets = [0, 32], sizes = [8, 32], strides = [1, 1]} : vector<8x128xf32> to vector<8x32xf32>
    %585 = vector.extract_strided_slice %582 {offsets = [0, 64], sizes = [8, 32], strides = [1, 1]} : vector<8x128xf32> to vector<8x32xf32>
    %586 = vector.extract_strided_slice %581 {offsets = [0, 96], sizes = [8, 32], strides = [1, 1]} : vector<8x128xf32> to vector<8x32xf32>
    %587 = arith.mulf %584, %551 : vector<8x32xf32>
    %588 = arith.mulf %583, %585 : vector<8x32xf32>
    %589 = arith.addf %587, %588 : vector<8x32xf32>
    %590 = math.tanh %589 : vector<8x32xf32>
    %591 = arith.mulf %586, %590 : vector<8x32xf32>
    %c0_260 = arith.constant 0 : index
    %c32_261 = arith.constant 32 : index
    %c0_262 = arith.constant 0 : index
    %592 = vector.load %arg14[%c0_260, %c32_261, %c0_262] : memref<2x64x128xf32, #tpu.memory_space<vmem>>, vector<1x8x128xf32>
    %593 = vector.shape_cast %592 : vector<1x8x128xf32> to vector<8x128xf32>
    %cst_263 = arith.constant dense<0.000000e+00> : vector<8x128xf32>
    %594 = tpu.matmul %572, %433, %cst_263 {dimension_numbers = #tpu.dot_dimension_numbers<[1], [0], [0], [1], [0, 0, 1, 1], [], []>} : vector<8x32xf32>, vector<32x128xf32>, vector<8x128xf32> -> vector<8x128xf32>
    %595 = arith.addf %593, %594 : vector<8x128xf32>
    %596 = arith.negf %595 : vector<8x128xf32>
    %597 = math.exp %596 : vector<8x128xf32>
    %cst_264 = arith.constant 1.000000e+00 : f32
    %598 = vector.broadcast %cst_264 : f32 to vector<8x128xf32>
    %599 = arith.addf %598, %597 : vector<8x128xf32>
    %600 = arith.divf %598, %599 : vector<8x128xf32>
    %601 = math.tanh %595 : vector<8x128xf32>
    %602 = vector.extract_strided_slice %600 {offsets = [0, 0], sizes = [8, 32], strides = [1, 1]} : vector<8x128xf32> to vector<8x32xf32>
    %603 = vector.extract_strided_slice %600 {offsets = [0, 32], sizes = [8, 32], strides = [1, 1]} : vector<8x128xf32> to vector<8x32xf32>
    %604 = vector.extract_strided_slice %601 {offsets = [0, 64], sizes = [8, 32], strides = [1, 1]} : vector<8x128xf32> to vector<8x32xf32>
    %605 = vector.extract_strided_slice %600 {offsets = [0, 96], sizes = [8, 32], strides = [1, 1]} : vector<8x128xf32> to vector<8x32xf32>
    %606 = arith.mulf %603, %570 : vector<8x32xf32>
    %607 = arith.mulf %602, %604 : vector<8x32xf32>
    %608 = arith.addf %606, %607 : vector<8x32xf32>
    %609 = math.tanh %608 : vector<8x32xf32>
    %610 = arith.mulf %605, %609 : vector<8x32xf32>
    %c1_265 = arith.constant 1 : index
    %c24_266 = arith.constant 24 : index
    %c0_267 = arith.constant 0 : index
    %611 = vector.load %arg14[%c1_265, %c24_266, %c0_267] : memref<2x64x128xf32, #tpu.memory_space<vmem>>, vector<1x8x128xf32>
    %612 = vector.shape_cast %611 : vector<1x8x128xf32> to vector<8x128xf32>
    %cst_268 = arith.constant dense<0.000000e+00> : vector<8x128xf32>
    %613 = tpu.matmul %591, %439, %cst_268 {dimension_numbers = #tpu.dot_dimension_numbers<[1], [0], [0], [1], [0, 0, 1, 1], [], []>} : vector<8x32xf32>, vector<32x128xf32>, vector<8x128xf32> -> vector<8x128xf32>
    %614 = arith.addf %612, %613 : vector<8x128xf32>
    %615 = arith.negf %614 : vector<8x128xf32>
    %616 = math.exp %615 : vector<8x128xf32>
    %cst_269 = arith.constant 1.000000e+00 : f32
    %617 = vector.broadcast %cst_269 : f32 to vector<8x128xf32>
    %618 = arith.addf %617, %616 : vector<8x128xf32>
    %619 = arith.divf %617, %618 : vector<8x128xf32>
    %620 = math.tanh %614 : vector<8x128xf32>
    %621 = vector.extract_strided_slice %619 {offsets = [0, 0], sizes = [8, 32], strides = [1, 1]} : vector<8x128xf32> to vector<8x32xf32>
    %622 = vector.extract_strided_slice %619 {offsets = [0, 32], sizes = [8, 32], strides = [1, 1]} : vector<8x128xf32> to vector<8x32xf32>
    %623 = vector.extract_strided_slice %620 {offsets = [0, 64], sizes = [8, 32], strides = [1, 1]} : vector<8x128xf32> to vector<8x32xf32>
    %624 = vector.extract_strided_slice %619 {offsets = [0, 96], sizes = [8, 32], strides = [1, 1]} : vector<8x128xf32> to vector<8x32xf32>
    %625 = arith.mulf %622, %589 : vector<8x32xf32>
    %626 = arith.mulf %621, %623 : vector<8x32xf32>
    %627 = arith.addf %625, %626 : vector<8x32xf32>
    %628 = math.tanh %627 : vector<8x32xf32>
    %629 = arith.mulf %624, %628 : vector<8x32xf32>
    %c0_270 = arith.constant 0 : index
    %c40_271 = arith.constant 40 : index
    %c0_272 = arith.constant 0 : index
    %630 = vector.load %arg14[%c0_270, %c40_271, %c0_272] : memref<2x64x128xf32, #tpu.memory_space<vmem>>, vector<1x8x128xf32>
    %631 = vector.shape_cast %630 : vector<1x8x128xf32> to vector<8x128xf32>
    %cst_273 = arith.constant dense<0.000000e+00> : vector<8x128xf32>
    %632 = tpu.matmul %610, %433, %cst_273 {dimension_numbers = #tpu.dot_dimension_numbers<[1], [0], [0], [1], [0, 0, 1, 1], [], []>} : vector<8x32xf32>, vector<32x128xf32>, vector<8x128xf32> -> vector<8x128xf32>
    %633 = arith.addf %631, %632 : vector<8x128xf32>
    %634 = arith.negf %633 : vector<8x128xf32>
    %635 = math.exp %634 : vector<8x128xf32>
    %cst_274 = arith.constant 1.000000e+00 : f32
    %636 = vector.broadcast %cst_274 : f32 to vector<8x128xf32>
    %637 = arith.addf %636, %635 : vector<8x128xf32>
    %638 = arith.divf %636, %637 : vector<8x128xf32>
    %639 = math.tanh %633 : vector<8x128xf32>
    %640 = vector.extract_strided_slice %638 {offsets = [0, 0], sizes = [8, 32], strides = [1, 1]} : vector<8x128xf32> to vector<8x32xf32>
    %641 = vector.extract_strided_slice %638 {offsets = [0, 32], sizes = [8, 32], strides = [1, 1]} : vector<8x128xf32> to vector<8x32xf32>
    %642 = vector.extract_strided_slice %639 {offsets = [0, 64], sizes = [8, 32], strides = [1, 1]} : vector<8x128xf32> to vector<8x32xf32>
    %643 = vector.extract_strided_slice %638 {offsets = [0, 96], sizes = [8, 32], strides = [1, 1]} : vector<8x128xf32> to vector<8x32xf32>
    %644 = arith.mulf %641, %608 : vector<8x32xf32>
    %645 = arith.mulf %640, %642 : vector<8x32xf32>
    %646 = arith.addf %644, %645 : vector<8x32xf32>
    %647 = math.tanh %646 : vector<8x32xf32>
    %648 = arith.mulf %643, %647 : vector<8x32xf32>
    %c1_275 = arith.constant 1 : index
    %c16_276 = arith.constant 16 : index
    %c0_277 = arith.constant 0 : index
    %649 = vector.load %arg14[%c1_275, %c16_276, %c0_277] : memref<2x64x128xf32, #tpu.memory_space<vmem>>, vector<1x8x128xf32>
    %650 = vector.shape_cast %649 : vector<1x8x128xf32> to vector<8x128xf32>
    %cst_278 = arith.constant dense<0.000000e+00> : vector<8x128xf32>
    %651 = tpu.matmul %629, %439, %cst_278 {dimension_numbers = #tpu.dot_dimension_numbers<[1], [0], [0], [1], [0, 0, 1, 1], [], []>} : vector<8x32xf32>, vector<32x128xf32>, vector<8x128xf32> -> vector<8x128xf32>
    %652 = arith.addf %650, %651 : vector<8x128xf32>
    %653 = arith.negf %652 : vector<8x128xf32>
    %654 = math.exp %653 : vector<8x128xf32>
    %cst_279 = arith.constant 1.000000e+00 : f32
    %655 = vector.broadcast %cst_279 : f32 to vector<8x128xf32>
    %656 = arith.addf %655, %654 : vector<8x128xf32>
    %657 = arith.divf %655, %656 : vector<8x128xf32>
    %658 = math.tanh %652 : vector<8x128xf32>
    %659 = vector.extract_strided_slice %657 {offsets = [0, 0], sizes = [8, 32], strides = [1, 1]} : vector<8x128xf32> to vector<8x32xf32>
    %660 = vector.extract_strided_slice %657 {offsets = [0, 32], sizes = [8, 32], strides = [1, 1]} : vector<8x128xf32> to vector<8x32xf32>
    %661 = vector.extract_strided_slice %658 {offsets = [0, 64], sizes = [8, 32], strides = [1, 1]} : vector<8x128xf32> to vector<8x32xf32>
    %662 = vector.extract_strided_slice %657 {offsets = [0, 96], sizes = [8, 32], strides = [1, 1]} : vector<8x128xf32> to vector<8x32xf32>
    %663 = arith.mulf %660, %627 : vector<8x32xf32>
    %664 = arith.mulf %659, %661 : vector<8x32xf32>
    %665 = arith.addf %663, %664 : vector<8x32xf32>
    %666 = math.tanh %665 : vector<8x32xf32>
    %667 = arith.mulf %662, %666 : vector<8x32xf32>
    %c0_280 = arith.constant 0 : index
    %c48_281 = arith.constant 48 : index
    %c0_282 = arith.constant 0 : index
    %668 = vector.load %arg14[%c0_280, %c48_281, %c0_282] : memref<2x64x128xf32, #tpu.memory_space<vmem>>, vector<1x8x128xf32>
    %669 = vector.shape_cast %668 : vector<1x8x128xf32> to vector<8x128xf32>
    %cst_283 = arith.constant dense<0.000000e+00> : vector<8x128xf32>
    %670 = tpu.matmul %648, %433, %cst_283 {dimension_numbers = #tpu.dot_dimension_numbers<[1], [0], [0], [1], [0, 0, 1, 1], [], []>} : vector<8x32xf32>, vector<32x128xf32>, vector<8x128xf32> -> vector<8x128xf32>
    %671 = arith.addf %669, %670 : vector<8x128xf32>
    %672 = arith.negf %671 : vector<8x128xf32>
    %673 = math.exp %672 : vector<8x128xf32>
    %cst_284 = arith.constant 1.000000e+00 : f32
    %674 = vector.broadcast %cst_284 : f32 to vector<8x128xf32>
    %675 = arith.addf %674, %673 : vector<8x128xf32>
    %676 = arith.divf %674, %675 : vector<8x128xf32>
    %677 = math.tanh %671 : vector<8x128xf32>
    %678 = vector.extract_strided_slice %676 {offsets = [0, 0], sizes = [8, 32], strides = [1, 1]} : vector<8x128xf32> to vector<8x32xf32>
    %679 = vector.extract_strided_slice %676 {offsets = [0, 32], sizes = [8, 32], strides = [1, 1]} : vector<8x128xf32> to vector<8x32xf32>
    %680 = vector.extract_strided_slice %677 {offsets = [0, 64], sizes = [8, 32], strides = [1, 1]} : vector<8x128xf32> to vector<8x32xf32>
    %681 = vector.extract_strided_slice %676 {offsets = [0, 96], sizes = [8, 32], strides = [1, 1]} : vector<8x128xf32> to vector<8x32xf32>
    %682 = arith.mulf %679, %646 : vector<8x32xf32>
    %683 = arith.mulf %678, %680 : vector<8x32xf32>
    %684 = arith.addf %682, %683 : vector<8x32xf32>
    %685 = math.tanh %684 : vector<8x32xf32>
    %686 = arith.mulf %681, %685 : vector<8x32xf32>
    %c1_285 = arith.constant 1 : index
    %c8_286 = arith.constant 8 : index
    %c0_287 = arith.constant 0 : index
    %687 = vector.load %arg14[%c1_285, %c8_286, %c0_287] : memref<2x64x128xf32, #tpu.memory_space<vmem>>, vector<1x8x128xf32>
    %688 = vector.shape_cast %687 : vector<1x8x128xf32> to vector<8x128xf32>
    %cst_288 = arith.constant dense<0.000000e+00> : vector<8x128xf32>
    %689 = tpu.matmul %667, %439, %cst_288 {dimension_numbers = #tpu.dot_dimension_numbers<[1], [0], [0], [1], [0, 0, 1, 1], [], []>} : vector<8x32xf32>, vector<32x128xf32>, vector<8x128xf32> -> vector<8x128xf32>
    %690 = arith.addf %688, %689 : vector<8x128xf32>
    %691 = arith.negf %690 : vector<8x128xf32>
    %692 = math.exp %691 : vector<8x128xf32>
    %cst_289 = arith.constant 1.000000e+00 : f32
    %693 = vector.broadcast %cst_289 : f32 to vector<8x128xf32>
    %694 = arith.addf %693, %692 : vector<8x128xf32>
    %695 = arith.divf %693, %694 : vector<8x128xf32>
    %696 = math.tanh %690 : vector<8x128xf32>
    %697 = vector.extract_strided_slice %695 {offsets = [0, 0], sizes = [8, 32], strides = [1, 1]} : vector<8x128xf32> to vector<8x32xf32>
    %698 = vector.extract_strided_slice %695 {offsets = [0, 32], sizes = [8, 32], strides = [1, 1]} : vector<8x128xf32> to vector<8x32xf32>
    %699 = vector.extract_strided_slice %696 {offsets = [0, 64], sizes = [8, 32], strides = [1, 1]} : vector<8x128xf32> to vector<8x32xf32>
    %700 = vector.extract_strided_slice %695 {offsets = [0, 96], sizes = [8, 32], strides = [1, 1]} : vector<8x128xf32> to vector<8x32xf32>
    %701 = arith.mulf %698, %665 : vector<8x32xf32>
    %702 = arith.mulf %697, %699 : vector<8x32xf32>
    %703 = arith.addf %701, %702 : vector<8x32xf32>
    %704 = math.tanh %703 : vector<8x32xf32>
    %705 = arith.mulf %700, %704 : vector<8x32xf32>
    %c0_290 = arith.constant 0 : index
    %c56_291 = arith.constant 56 : index
    %c0_292 = arith.constant 0 : index
    %706 = vector.load %arg14[%c0_290, %c56_291, %c0_292] : memref<2x64x128xf32, #tpu.memory_space<vmem>>, vector<1x8x128xf32>
    %707 = vector.shape_cast %706 : vector<1x8x128xf32> to vector<8x128xf32>
    %cst_293 = arith.constant dense<0.000000e+00> : vector<8x128xf32>
    %708 = tpu.matmul %686, %433, %cst_293 {dimension_numbers = #tpu.dot_dimension_numbers<[1], [0], [0], [1], [0, 0, 1, 1], [], []>} : vector<8x32xf32>, vector<32x128xf32>, vector<8x128xf32> -> vector<8x128xf32>
    %709 = arith.addf %707, %708 : vector<8x128xf32>
    %710 = arith.negf %709 : vector<8x128xf32>
    %711 = math.exp %710 : vector<8x128xf32>
    %cst_294 = arith.constant 1.000000e+00 : f32
    %712 = vector.broadcast %cst_294 : f32 to vector<8x128xf32>
    %713 = arith.addf %712, %711 : vector<8x128xf32>
    %714 = arith.divf %712, %713 : vector<8x128xf32>
    %715 = math.tanh %709 : vector<8x128xf32>
    %716 = vector.extract_strided_slice %714 {offsets = [0, 0], sizes = [8, 32], strides = [1, 1]} : vector<8x128xf32> to vector<8x32xf32>
    %717 = vector.extract_strided_slice %714 {offsets = [0, 32], sizes = [8, 32], strides = [1, 1]} : vector<8x128xf32> to vector<8x32xf32>
    %718 = vector.extract_strided_slice %715 {offsets = [0, 64], sizes = [8, 32], strides = [1, 1]} : vector<8x128xf32> to vector<8x32xf32>
    %719 = vector.extract_strided_slice %714 {offsets = [0, 96], sizes = [8, 32], strides = [1, 1]} : vector<8x128xf32> to vector<8x32xf32>
    %720 = arith.mulf %717, %684 : vector<8x32xf32>
    %721 = arith.mulf %716, %718 : vector<8x32xf32>
    %722 = arith.addf %720, %721 : vector<8x32xf32>
    %723 = math.tanh %722 : vector<8x32xf32>
    %724 = arith.mulf %719, %723 : vector<8x32xf32>
    %c1_295 = arith.constant 1 : index
    %c0_296 = arith.constant 0 : index
    %c0_297 = arith.constant 0 : index
    %725 = vector.load %arg14[%c1_295, %c0_296, %c0_297] : memref<2x64x128xf32, #tpu.memory_space<vmem>>, vector<1x8x128xf32>
    %726 = vector.shape_cast %725 : vector<1x8x128xf32> to vector<8x128xf32>
    %cst_298 = arith.constant dense<0.000000e+00> : vector<8x128xf32>
    %727 = tpu.matmul %705, %439, %cst_298 {dimension_numbers = #tpu.dot_dimension_numbers<[1], [0], [0], [1], [0, 0, 1, 1], [], []>} : vector<8x32xf32>, vector<32x128xf32>, vector<8x128xf32> -> vector<8x128xf32>
    %728 = arith.addf %726, %727 : vector<8x128xf32>
    %729 = arith.negf %728 : vector<8x128xf32>
    %730 = math.exp %729 : vector<8x128xf32>
    %cst_299 = arith.constant 1.000000e+00 : f32
    %731 = vector.broadcast %cst_299 : f32 to vector<8x128xf32>
    %732 = arith.addf %731, %730 : vector<8x128xf32>
    %733 = arith.divf %731, %732 : vector<8x128xf32>
    %734 = math.tanh %728 : vector<8x128xf32>
    %735 = vector.extract_strided_slice %733 {offsets = [0, 0], sizes = [8, 32], strides = [1, 1]} : vector<8x128xf32> to vector<8x32xf32>
    %736 = vector.extract_strided_slice %733 {offsets = [0, 32], sizes = [8, 32], strides = [1, 1]} : vector<8x128xf32> to vector<8x32xf32>
    %737 = vector.extract_strided_slice %734 {offsets = [0, 64], sizes = [8, 32], strides = [1, 1]} : vector<8x128xf32> to vector<8x32xf32>
    %738 = vector.extract_strided_slice %733 {offsets = [0, 96], sizes = [8, 32], strides = [1, 1]} : vector<8x128xf32> to vector<8x32xf32>
    %739 = arith.mulf %736, %703 : vector<8x32xf32>
    %740 = arith.mulf %735, %737 : vector<8x32xf32>
    %741 = arith.addf %739, %740 : vector<8x32xf32>
    %742 = math.tanh %741 : vector<8x32xf32>
    %743 = arith.mulf %738, %742 : vector<8x32xf32>
    %744 = tpu.concatenate %724, %743 in 1 : vector<8x32xf32>, vector<8x32xf32> -> vector<8x64xf32>
    %c0_300 = arith.constant 0 : index
    %c0_301 = arith.constant 0 : index
    %745 = vector.load %arg11[%c0_300, %c0_301] : memref<64x4xf32, #tpu.memory_space<vmem>>, vector<64x4xf32>
    %cst_302 = arith.constant dense<0.000000e+00> : vector<8x4xf32>
    %746 = tpu.matmul %744, %745, %cst_302 {dimension_numbers = #tpu.dot_dimension_numbers<[1], [0], [0], [1], [0, 0, 1, 1], [], []>} : vector<8x64xf32>, vector<64x4xf32>, vector<8x4xf32> -> vector<8x4xf32>
    %c0_303 = arith.constant 0 : index
    %c0_304 = arith.constant 0 : index
    %747 = vector.load %arg12[%c0_303, %c0_304] : memref<1x4xf32, #tpu.memory_space<vmem>>, vector<1x4xf32>
    %748 = vector.broadcast %747 : vector<1x4xf32> to vector<8x4xf32>
    %749 = arith.addf %746, %748 : vector<8x4xf32>
    %750 = vector.extract_strided_slice %749 {offsets = [0, 0], sizes = [2, 4], strides = [1, 1]} : vector<8x4xf32> to vector<2x4xf32>
    %c0_305 = arith.constant 0 : index
    %c0_306 = arith.constant 0 : index
    %751 = vector.load %arg13[%c0_305, %c0_306] : memref<2x4xf32, #tpu.memory_space<vmem>>, vector<2x4xf32>
    tpu.vector_store %arg13[%c0_305, %c0_306], %750 {strides = array<i32>} : memref<2x4xf32, #tpu.memory_space<vmem>>, vector<2x4xf32>,
    return
  }
}

</mosaic_0001>

<bundles_post_ra>
// kernel: _lambda_.1
= control target key start
LH: loop header
LB: loop body
LE: loop exit
PB: predicated region body
PF: predicated region fallthrough
CT: control target
= control target key end

     0   :  { %18 = vsyncpa [#allocation5], 0  ;;  %s8317_s0 = inlined_call_operand.vmem [shape: bf16[64,768], index: 0, kind: input, shape index: {}]   ;;  %s8318_s1 = inlined_call_operand.vmem [shape: bf16[64,128], index: 1, kind: input, shape index: {}]   ;;  %s8319_s2 = inlined_call_operand.vmem [shape: bf16[64,640], index: 2, kind: input, shape index: {}]   ;;  %s8320_s3 = inlined_call_operand.hbm [shape: bf16[2,768,128], index: 3, kind: input, shape index: {}]   ;;  %s8321_s4 = inlined_call_operand.vmem [shape: bf16[2,128,128], index: 4, kind: input, shape index: {}]   ;;  %s8322_s5 = inlined_call_operand.hbm [shape: bf16[2,640,128], index: 5, kind: input, shape index: {}]   ;;  %s8323_s6 = inlined_call_operand.vmem [shape: f32[2,64,128], index: 6, kind: input, shape index: {}]   ;;  %s8324_s7 = inlined_call_operand.vmem [shape: f32[4,32,128], index: 7, kind: input, shape index: {}]   ;;  %s8325_s8 = inlined_call_operand.vmem [shape: f32[4,1,128], index: 8, kind: input, shape index: {}]   ;;  %s8326_s9 = inlined_call_operand.vmem [shape: f32[4,8,32], index: 9, kind: input, shape index: {}]   ;;  %s8327_s10 = inlined_call_operand.vmem [shape: f32[4,8,32], index: 10, kind: input, shape index: {}]   ;;  %s8328_s11 = inlined_call_operand.vmem [shape: f32[64,4], index: 11, kind: input, shape index: {}]   ;;  %s8329_s12 = inlined_call_operand.vmem [shape: f32[1,4], index: 12, kind: input, shape index: {}]   ;;  %s8330_s13 = inlined_call_operand.hbm [shape: f32[2,4], index: 13, kind: output, shape index: {}]  }
   0x1   :  { %19 = vsyncpa [#allocation8], 0 }
   0x2   :  { %20 = vsyncpa [#allocation6], 0  ;;  %s31_s27 = sshll.u32 %s8320_s3, 4  ;;  %s6751_s28 = smov [#allocation4]   ;;  %s32_s27 = int_to_ptr.hbm [resolvable:$true] %s31_s27 }
   0x3   :  { %s33_s29 = sshll.u32 %s6751_s28, 4  ;;  %s46_s15 = sshll.u32 %s8322_s5, 4  ;;  %s34_s29 = int_to_ptr.vmem [resolvable:$true] %s33_s29  ;;  %s47_s15 = int_to_ptr.hbm [resolvable:$true] %s46_s15 }
   0x4   :  { %s6752_s16 = smov 64   ;;  %s6753_s17 = smov 4  }
   0x5   :  { %39 = dma.hbm_to_vmem [thread:$0]  %s32_s27, 12288, %s34_s29, [#allocation5], %s6752_s16, %s6752_s16, %s6753_s17  }
   0x6   :  { %s6754_s18 = smov [#allocation7]  }
   0x7   :  { %s48_s19 = sshll.u32 %s6754_s18, 4  ;;  %s49_s19 = int_to_ptr.vmem [resolvable:$true] %s48_s19 }
   0x8   :  { %54 = dma.hbm_to_vmem [thread:$0]  %s47_s15, 10240, %s49_s19, [#allocation8], %s6752_s16, %s6752_s16, %s6753_s17  }
   0x9   :  { %6745 = dma.done.wait [#allocation5], 12288  }
   0xa   :  { %6746 = vsyncadd [#allocation5], 4294955008 }
   0xb   :  { %6747 = dma.done.wait [#allocation8], 10240  }
   0xc   :  { %6748 = vsyncadd [#allocation8], 4294957056  ;;  %v6262_v0 = vld [vmem:[%s8321_s4 + $0x38] sm:$0xff]  ;;  %v6261_v4 = vld [vmem:[%s8321_s4 + $0x30] sm:$0xff]  ;;  %vm2690_vm0 = vcmask 261120   ;;  %s6755_s25 = smov 32  }
   0xd   :  { %v6214_v1 = vld [vmem:[#allocation4 + $0x38] sm:$0xff]  ;;  %318 = vmatpush.bf16.msra.mxu0 %v6262_v0  ;;  %v6213_v5 = vld [vmem:[#allocation4 + $0x30] sm:$0xff]  ;;  %v6260_v8 = vld [vmem:[%s8321_s4 + $0x28] sm:$0xff]  ;;  %s5062_s29 = sshll.u32 %s8330_s13, 4  ;;  %s5063_s29 = int_to_ptr.hbm [resolvable:$true] %s5062_s29 }
   0xe   :  { %v6222_v2 = vld [vmem:[#allocation4 + $0x78] sm:$0xff]  ;;  %755 = vmatpush.bf16.msra.mxu1 %v6214_v1  ;;  %v6221_v6 = vld [vmem:[#allocation4 + $0x70] sm:$0xff]  ;;  %v6212_v9 = vld [vmem:[#allocation4 + $0x28] sm:$0xff] }
   0xf   :  { %v6230_v3 = vld [vmem:[#allocation4 + $0xb8] sm:$0xff]  ;;  %784 = vmatpush.bf16.msra.mxu2 %v6222_v2  ;;  %v6229_v7 = vld [vmem:[#allocation4 + $0xb0] sm:$0xff]  ;;  %v6220_v10 = vld [vmem:[#allocation4 + $0x68] sm:$0xff] }
  0x10   :  { %813 = vmatpush.bf16.msra.mxu3 %v6230_v3  ;;  %v6228_v11 = vld [vmem:[#allocation4 + $0xa8] sm:$0xff]  ;;  %v6259_v12 = vld [vmem:[%s8321_s4 + $0x20] sm:$0xff]  ;;  %v6258_v16 = vld [vmem:[%s8321_s4 + $0x18] sm:$0xff] }
  0x11   :  { %319 = vmatpush.bf16.msra.mxu0 %v6261_v4  ;;  %v6211_v13 = vld [vmem:[#allocation4 + $0x20] sm:$0xff]  ;;  %v6210_v17 = vld [vmem:[#allocation4 + $0x18] sm:$0xff]  ;;  %v6257_v20 = vld [vmem:[%s8321_s4 + $0x10] sm:$0xff] }
  0x12   :  { %756 = vmatpush.bf16.msra.mxu1 %v6213_v5  ;;  %v6219_v14 = vld [vmem:[#allocation4 + $0x60] sm:$0xff]  ;;  %v6218_v18 = vld [vmem:[#allocation4 + $0x58] sm:$0xff]  ;;  %v6209_v21 = vld [vmem:[#allocation4 + $0x10] sm:$0xff] }
  0x13   :  { %785 = vmatpush.bf16.msra.mxu2 %v6221_v6  ;;  %v6227_v15 = vld [vmem:[#allocation4 + $0xa0] sm:$0xff]  ;;  %v6226_v19 = vld [vmem:[#allocation4 + $0x98] sm:$0xff]  ;;  %v6217_v22 = vld [vmem:[#allocation4 + $0x50] sm:$0xff] }
  0x14   :  { %814 = vmatpush.bf16.msra.mxu3 %v6229_v7  ;;  %v6225_v23 = vld [vmem:[#allocation4 + $0x90] sm:$0xff]  ;;  %v6256_v24 = vld [vmem:[%s8321_s4 + $0x8] sm:$0xff]  ;;  %v6255_v28 = vld [vmem:[%s8321_s4] sm:$0xff] }
  0x15   :  { %320 = vmatpush.bf16.msra.mxu0 %v6260_v8  ;;  %v6208_v25 = vld [vmem:[#allocation4 + $0x8] sm:$0xff]  ;;  %v6207_v29 = vld [vmem:[#allocation4] sm:$0xff]  ;;  %v6162_v33 = vld [vmem:[%s8317_s0 + $0x14] sm:$0xf0] }
  0x16   :  { %757 = vmatpush.bf16.msra.mxu1 %v6212_v9  ;;  %v6216_v26 = vld [vmem:[#allocation4 + $0x48] sm:$0xff]  ;;  %v6215_v30 = vld [vmem:[#allocation4 + $0x40] sm:$0xff]  ;;  %v5125_v35 = vld [vmem:[%s8317_s0 + $0x18] sm:$0xf0] }
  0x17   :  { %786 = vmatpush.bf16.msra.mxu2 %v6220_v10  ;;  %v6224_v27 = vld [vmem:[#allocation4 + $0x88] sm:$0xff]  ;;  %v6223_v31 = vld [vmem:[#allocation4 + $0x80] sm:$0xff]  ;;  %v6254_v38 = vld [vmem:[#allocation4 + $0x178] sm:$0xff] }
  0x18   :  { %815 = vmatpush.bf16.msra.mxu3 %v6228_v11  ;;  %v5123_v32 = vld [vmem:[%s8317_s0] sm:$0xf]  ;;  %v6159_v34 = vld [vmem:[%s8317_s0 + $0x4] sm:$0xf]  ;;  %v5131_v36 = vld [vmem:[%s8317_s0 + $0x8] sm:$0xf] }
  0x19   :  { %321 = vmatpush.bf16.msra.mxu0 %v6259_v12  ;;  %v6163_v37 = vld [vmem:[%s8317_s0 + $0x1c] sm:$0xf0]  ;;  %v6238_v39 = vld [vmem:[#allocation4 + $0xf8] sm:$0xff]  ;;  %v6884_v41 = vor.u32 %v6162_v33, %v5123_v32  ;;  %v6886_v42 = vor.u32 %v6159_v34, %v5125_v35  ;;  %v6253_v46 = vld [vmem:[#allocation4 + $0x170] sm:$0xff] }
  0x1a   :  { %758 = vmatpush.bf16.msra.mxu1 %v6211_v13  ;;  %v6882_v40 = vld [vmem:[%s8318_s1] sm:$0xff]  ;;  %v6888_v43 = vor.u32 %v6163_v37, %v5131_v36  ;;  %v6270_v44 = vld [vmem:[#allocation7 + $0x38] sm:$0xff]  ;;  %v6237_v47 = vld [vmem:[#allocation4 + $0xf0] sm:$0xff] }
  0x1b   :  { %787 = vmatpush.bf16.msra.mxu2 %v6219_v14  ;;  %v6246_v45 = vld [vmem:[#allocation4 + $0x138] sm:$0xff]  ;;  %v6269_v48 = vld [vmem:[#allocation7 + $0x30] sm:$0xff]  ;;  %v6252_v50 = vld [vmem:[#allocation4 + $0x168] sm:$0xff] }
  0x1c   :  { %816 = vmatpush.bf16.msra.mxu3 %v6227_v15  ;;  %v6245_v49 = vld [vmem:[#allocation4 + $0x130] sm:$0xff]  ;;  %v6236_v51 = vld [vmem:[#allocation4 + $0xe8] sm:$0xff]  ;;  %v6251_v54 = vld [vmem:[#allocation4 + $0x160] sm:$0xff] }
  0x1d   :  { %322 = vmatpush.bf16.msra.mxu0 %v6258_v16  ;;  %v6268_v52 = vld [vmem:[#allocation7 + $0x28] sm:$0xff]  ;;  %v6235_v55 = vld [vmem:[#allocation4 + $0xe0] sm:$0xff]  ;;  %v5147_v56 = vld [vmem:[%s8317_s0 + $0x30] sm:$0xf] }
  0x1e   :  { %759 = vmatpush.bf16.msra.mxu1 %v6210_v17  ;;  %v6244_v53 = vld [vmem:[#allocation4 + $0x128] sm:$0xff]  ;;  %v6165_v58 = vld [vmem:[%s8317_s0 + $0x34] sm:$0xf]  ;;  %v5155_v60 = vld [vmem:[%s8317_s0 + $0x38] sm:$0xf] }
  0x1f   :  { %788 = vmatpush.bf16.msra.mxu2 %v6218_v18  ;;  %v6168_v57 = vld [vmem:[%s8317_s0 + $0x44] sm:$0xf0]  ;;  %v5149_v59 = vld [vmem:[%s8317_s0 + $0x48] sm:$0xf0]  ;;  %v6169_v61 = vld [vmem:[%s8317_s0 + $0x4c] sm:$0xf0] }
  0x20   :  { %817 = vmatpush.bf16.msra.mxu3 %v6226_v19  ;;  %v6267_v62 = vld [vmem:[#allocation7 + $0x20] sm:$0xff]  ;;  %v6250_v0 = vld [vmem:[#allocation4 + $0x158] sm:$0xff]  ;;  %v6915_v2 = vld [vmem:[%s8318_s1 + $0x8] sm:$0xff]  ;;  %v6917_v3 = vor.u32 %v6168_v57, %v5147_v56  ;;  %v6919_v4 = vor.u32 %v6165_v58, %v5149_v59  ;;  %v6921_v5 = vor.u32 %v6169_v61, %v5155_v60 }
  0x21   :  { %323 = vmatpush.bf16.msra.mxu0 %v6257_v20  ;;  %v6243_v63 = vld [vmem:[#allocation4 + $0x120] sm:$0xff]  ;;  %v6234_v1 = vld [vmem:[#allocation4 + $0xd8] sm:$0xff]  ;;  %v6249_v8 = vld [vmem:[#allocation4 + $0x150] sm:$0xff] }
  0x22   :  { %760 = vmatpush.bf16.msra.mxu1 %v6209_v21  ;;  %v6266_v6 = vld [vmem:[#allocation7 + $0x18] sm:$0xff]  ;;  %v6233_v9 = vld [vmem:[#allocation4 + $0xd0] sm:$0xff]  ;;  %v6248_v12 = vld [vmem:[#allocation4 + $0x148] sm:$0xff] }
  0x23   :  { %789 = vmatpush.bf16.msra.mxu2 %v6217_v22  ;;  %v6242_v7 = vld [vmem:[#allocation4 + $0x118] sm:$0xff]  ;;  %v6265_v10 = vld [vmem:[#allocation7 + $0x10] sm:$0xff]  ;;  %v6232_v13 = vld [vmem:[#allocation4 + $0xc8] sm:$0xff] }
  0x24   :  { %818 = vmatpush.bf16.msra.mxu3 %v6225_v23  ;;  %v6241_v11 = vld [vmem:[#allocation4 + $0x110] sm:$0xff]  ;;  %v6264_v14 = vld [vmem:[#allocation7 + $0x8] sm:$0xff]  ;;  %v6247_v16 = vld [vmem:[#allocation4 + $0x140] sm:$0xff] }
  0x25   :  { %324 = vmatpush.bf16.msra.mxu0 %v6256_v24  ;;  %v6240_v15 = vld [vmem:[#allocation4 + $0x108] sm:$0xff]  ;;  %v6231_v17 = vld [vmem:[#allocation4 + $0xc0] sm:$0xff]  ;;  %v6174_v19 = vld [vmem:[%s8317_s0 + $0x74] sm:$0xf0] }
  0x26   :  { %761 = vmatpush.bf16.msra.mxu1 %v6208_v25  ;;  %v5171_v18 = vld [vmem:[%s8317_s0 + $0x60] sm:$0xf]  ;;  %v6171_v20 = vld [vmem:[%s8317_s0 + $0x64] sm:$0xf]  ;;  %v5173_v21 = vld [vmem:[%s8317_s0 + $0x78] sm:$0xf0] }
  0x27   :  { %790 = vmatpush.bf16.msra.mxu2 %v6216_v26  ;;  %v5179_v22 = vld [vmem:[%s8317_s0 + $0x68] sm:$0xf]  ;;  %v6175_v23 = vld [vmem:[%s8317_s0 + $0x7c] sm:$0xf0]  ;;  %v6948_v26 = vld [vmem:[%s8318_s1 + $0x10] sm:$0xff] }
  0x28   :  { %819 = vmatpush.bf16.msra.mxu3 %v6224_v27  ;;  %v6263_v24 = vld [vmem:[#allocation7] sm:$0xff]  ;;  %v6950_v27 = vor.u32 %v6174_v19, %v5171_v18  ;;  %v6302_v32 = vld [vmem:[#allocation7 + $0x138] sm:$0xff]  ;;  %v6293_v34 = vld [vmem:[#allocation7 + $0xf0] sm:$0xff] }
  0x29   :  { %325 = vmatpush.bf16.msra.mxu0 %v6255_v28  ;;  %v6239_v25 = vld [vmem:[#allocation4 + $0x100] sm:$0xff]  ;;  %v6952_v28 = vor.u32 %v6171_v20, %v5173_v21  ;;  %v6286_v33 = vld [vmem:[#allocation7 + $0xb8] sm:$0xff]  ;;  %v6277_v35 = vld [vmem:[#allocation7 + $0x70] sm:$0xff] }
  0x2a   :  { %762 = vmatpush.bf16.msra.mxu1 %v6207_v29  ;;  %v6954_v29 = vor.u32 %v6175_v23, %v5179_v22  ;;  %v6301_v36 = vld [vmem:[#allocation7 + $0x130] sm:$0xff]  ;;  %v6291_v56 = vld [vmem:[#allocation7 + $0xe0] sm:$0xff]  ;;  %v6160_v60 = vld [vmem:[%s8317_s0 + $0xc] sm:$0xf] }
  0x2b   :  { %791 = vmatpush.bf16.msra.mxu2 %v6215_v30  ;;  %v6294_v30 = vld [vmem:[#allocation7 + $0xf8] sm:$0xff]  ;;  %v6285_v37 = vld [vmem:[#allocation7 + $0xb0] sm:$0xff]  ;;  %v6275_v57 = vld [vmem:[#allocation7 + $0x60] sm:$0xff] }
  0x2c   :  { %820 = vmatpush.bf16.msra.mxu3 %v6223_v31  ;;  %326 = vmatmul.bf16.vlgmr.msra.gmra.mxu0 %v6882_v40  ;;  %v6278_v31 = vld [vmem:[#allocation7 + $0x78] sm:$0xff]  ;;  %v6299_v58 = vld [vmem:[#allocation7 + $0x120] sm:$0xff]  ;;  %v6297_v18 = vld [vmem:[#allocation7 + $0x110] sm:$0xff] }
  0x2d   :  { %842 = vmatpush.bf16.msrb.mxu0 %v6238_v39  ;;  %763 = vmatmul.bf16.vlgmr.msra.gmra.mxu1 %v6884_v41  ;;  %v6180_v39 = vld [vmem:[%s8317_s0 + $0xa4] sm:$0xf0]  ;;  %v6283_v59 = vld [vmem:[#allocation7 + $0xa0] sm:$0xff]  ;;  %v6281_v19 = vld [vmem:[#allocation7 + $0x90] sm:$0xff] }
  0x2e   :  { %792 = vmatmul.bf16.vlgmr.msra.gmra.mxu2 %v6886_v42  ;;  %871 = vmatpush.bf16.msrb.mxu1 %v6246_v45  ;;  %v5197_v45 = vld [vmem:[%s8317_s0 + $0xa8] sm:$0xf0]  ;;  %v5133_v61 = vld [vmem:[%s8317_s0 + $0x20] sm:$0xf0]  ;;  %v6166_v20 = vld [vmem:[%s8317_s0 + $0x3c] sm:$0xf] }
  0x2f   :  { %900 = vmatpush.bf16.msrb.mxu2 %v6254_v38  ;;  %821 = vmatmul.bf16.vlgmr.msra.gmra.mxu3 %v6888_v43  ;;  %v5195_v38 = vld [vmem:[%s8317_s0 + $0x90] sm:$0xf]  ;;  %v5157_v21 = vld [vmem:[%s8317_s0 + $0x50] sm:$0xf0]  ;;  %v5163_v22 = vld [vmem:[%s8317_s0 + $0x40] sm:$0xf] }
  0x30   :  { %1353 = vmatpush.bf16.msrb.mxu3 %v6270_v44  ;;  %v6177_v44 = vld [vmem:[%s8317_s0 + $0x94] sm:$0xf]  ;;  %v6170_v23 = vld [vmem:[%s8317_s0 + $0x54] sm:$0xf0] }
  0x31   :  { %843 = vmatpush.bf16.msrb.mxu0 %v6237_v47  ;;  %v6181_v47 = vld [vmem:[%s8317_s0 + $0xac] sm:$0xf0] }
  0x32   :  { %872 = vmatpush.bf16.msrb.mxu1 %v6245_v49  ;;  %v6983_v49 = vor.u32 %v6180_v39, %v5195_v38  ;;  %v6296_v38 = vld [vmem:[#allocation7 + $0x108] sm:$0xff] }
  0x33   :  { %901 = vmatpush.bf16.msrb.mxu2 %v6253_v46  ;;  %v5203_v46 = vld [vmem:[%s8317_s0 + $0x98] sm:$0xf]  ;;  %v6280_v39 = vld [vmem:[#allocation7 + $0x88] sm:$0xff] }
  0x34   :  { %1354 = vmatpush.bf16.msrb.mxu3 %v6269_v48  ;;  %v6981_v48 = vld [vmem:[%s8318_s1 + $0x18] sm:$0xff] }
  0x35   :  { %844 = vmatpush.bf16.msrb.mxu0 %v6236_v51  ;;  %v6987_v51 = vor.u32 %v6181_v47, %v5203_v46  ;;  %v6295_v46 = vld [vmem:[#allocation7 + $0x100] sm:$0xff] }
  0x36   :  { %873 = vmatpush.bf16.msrb.mxu1 %v6244_v53  ;;  %v6276_v53 = vld [vmem:[#allocation7 + $0x68] sm:$0xff]  ;;  %v6279_v47 = vld [vmem:[#allocation7 + $0x80] sm:$0xff] }
  0x37   :  { %902 = vmatpush.bf16.msrb.mxu2 %v6252_v50  ;;  %v6985_v50 = vor.u32 %v6177_v44, %v5197_v45  ;;  %v6287_v44 = vld [vmem:[#allocation7 + $0xc0] sm:$0xff] }
  0x38   :  { %1355 = vmatpush.bf16.msrb.mxu3 %v6268_v52  ;;  %v6292_v52 = vld [vmem:[#allocation7 + $0xe8] sm:$0xff]  ;;  %v6271_v45 = vld [vmem:[#allocation7 + $0x40] sm:$0xff] }
  0x39   :  { %845 = vmatpush.bf16.msrb.mxu0 %v6235_v55  ;;  %v6284_v55 = vld [vmem:[#allocation7 + $0xa8] sm:$0xff] }
  0x3a   :  { %874 = vmatpush.bf16.msrb.mxu1 %v6243_v63  ;;  %v6164_v63 = vld [vmem:[%s8317_s0 + $0x24] sm:$0xf0] }
  0x3b   :  { %903 = vmatpush.bf16.msrb.mxu2 %v6251_v54  ;;  %v6300_v54 = vld [vmem:[#allocation7 + $0x128] sm:$0xff] }
  0x3c   :  { %1356 = vmatpush.bf16.msrb.mxu3 %v6267_v62  ;;  %331 = vmatmul.bf16.gmra.mxu0 %v6915_v2  ;;  %v5139_v62 = vld [vmem:[%s8317_s0 + $0x10] sm:$0xf] }
  0x3d   :  { %846 = vmatpush.bf16.msrb.mxu0 %v6234_v1  ;;  %768 = vmatmul.bf16.gmra.mxu1 %v6917_v3  ;;  %v5141_v1 = vld [vmem:[%s8317_s0 + $0x28] sm:$0xf0] }
  0x3e   :  { %797 = vmatmul.bf16.gmra.mxu2 %v6919_v4  ;;  %875 = vmatpush.bf16.msrb.mxu1 %v6242_v7  ;;  %v6189_v7 = vld [vmem:[%s8319_s2 + $0x10] sm:$0xf0] }
  0x3f   :  { %904 = vmatpush.bf16.msrb.mxu2 %v6250_v0  ;;  %826 = vmatmul.bf16.gmra.mxu3 %v6921_v5  ;;  %v6161_v0 = vld [vmem:[%s8317_s0 + $0x14] sm:$0xf] }
  0x40   :  { %1357 = vmatpush.bf16.msrb.mxu3 %v6266_v6  ;;  %v5411_v6 = vld [vmem:[%s8319_s2] sm:$0xf] }
  0x41   :  { %847 = vmatpush.bf16.msrb.mxu0 %v6233_v9  ;;  %v7019_v9 = vor.u32 %v6164_v63, %v5139_v62 }
  0x42   :  { %876 = vmatpush.bf16.msrb.mxu1 %v6241_v11  ;;  %v7023_v11 = vor.u32 %v6189_v7, %v5411_v6  ;;  %v6326_v6 = vld [vmem:[#allocation4 + $0x238] sm:$0xff] }
  0x43   :  { %905 = vmatpush.bf16.msrb.mxu2 %v6249_v8  ;;  %v7017_v8 = vor.u32 %v6160_v60, %v5133_v61  ;;  %v6310_v7 = vld [vmem:[#allocation4 + $0x1b8] sm:$0xff] }
  0x44   :  { %1358 = vmatpush.bf16.msrb.mxu3 %v6265_v10  ;;  %v7021_v10 = vor.u32 %v6161_v0, %v5141_v1  ;;  %v6318_v0 = vld [vmem:[#allocation4 + $0x1f8] sm:$0xff] }
  0x45   :  { %848 = vmatpush.bf16.msrb.mxu0 %v6232_v13  ;;  %v6274_v13 = vld [vmem:[#allocation7 + $0x58] sm:$0xff] }
  0x46   :  { %877 = vmatpush.bf16.msrb.mxu1 %v6240_v15  ;;  %v6282_v15 = vld [vmem:[#allocation7 + $0x98] sm:$0xff] }
  0x47   :  { %906 = vmatpush.bf16.msrb.mxu2 %v6248_v12  ;;  %v6290_v12 = vld [vmem:[#allocation7 + $0xd8] sm:$0xff] }
  0x48   :  { %1359 = vmatpush.bf16.msrb.mxu3 %v6264_v14  ;;  %v6298_v14 = vld [vmem:[#allocation7 + $0x118] sm:$0xff] }
  0x49   :  { %849 = vmatpush.bf16.msrb.mxu0 %v6231_v17  ;;  %v6273_v17 = vld [vmem:[#allocation7 + $0x50] sm:$0xff]  ;;  %v6358_v1 = vld [vmem:[%s8321_s4 + $0x78] sm:$0xff] }
  0x4a   :  { %878 = vmatpush.bf16.msrb.mxu1 %v6239_v25  ;;  %v5165_v25 = vld [vmem:[%s8317_s0 + $0x58] sm:$0xf0] }
  0x4b   :  { %907 = vmatpush.bf16.msrb.mxu2 %v6247_v16  ;;  %v6289_v16 = vld [vmem:[#allocation7 + $0xd0] sm:$0xff] }
  0x4c   :  { %1360 = vmatpush.bf16.msrb.mxu3 %v6263_v24  ;;  %336 = vmatmul.bf16.gmra.mxu0 %v6948_v26  ;;  %v6167_v24 = vld [vmem:[%s8317_s0 + $0x44] sm:$0xf] }
  0x4d   :  { %773 = vmatmul.bf16.gmra.mxu1 %v6950_v27  ;;  %1382 = vmatpush.bf16.msra.mxu0 %v6278_v31  ;;  %v6194_v31 = vld [vmem:[%s8319_s2 + $0x38] sm:$0xf0] }
  0x4e   :  { %802 = vmatmul.bf16.gmra.mxu2 %v6952_v28  ;;  %1411 = vmatpush.bf16.msra.mxu1 %v6286_v33  ;;  %v7055_v33 = vor.u32 %v6170_v23, %v5163_v22  ;;  %v6204_v22 = vld [vmem:[%s8319_s2 + $0x88] sm:$0xf0] }
  0x4f   :  { %831 = vmatmul.bf16.gmra.mxu3 %v6954_v29  ;;  %1440 = vmatpush.bf16.msra.mxu2 %v6294_v30  ;;  %v5431_v30 = vld [vmem:[%s8319_s2 + $0x28] sm:$0xf] }
  0x50   :  { %1469 = vmatpush.bf16.msra.mxu3 %v6302_v32  ;;  %v7053_v32 = vor.u32 %v6166_v20, %v5157_v21  ;;  %v5213_v20 = vld [vmem:[%s8317_s0 + $0xb8] sm:$0xf0]  ;;  %v5471_v21 = vld [vmem:[%s8319_s2 + $0x78] sm:$0xf] }
  0x51   :  { %1383 = vmatpush.bf16.msra.mxu0 %v6277_v35  ;;  %v7059_v35 = vor.u32 %v6194_v31, %v5431_v30  ;;  %v7137_v30 = vor.u32 %v6204_v22, %v5471_v21  ;;  %v6309_v31 = vld [vmem:[#allocation4 + $0x1b0] sm:$0xff] }
  0x52   :  { %1412 = vmatpush.bf16.msra.mxu1 %v6285_v37  ;;  %v6272_v37 = vld [vmem:[#allocation7 + $0x48] sm:$0xff] }
  0x53   :  { %1441 = vmatpush.bf16.msra.mxu2 %v6293_v34  ;;  %v7057_v34 = vor.u32 %v6167_v24, %v5165_v25 }
  0x54   :  { %1470 = vmatpush.bf16.msra.mxu3 %v6301_v36  ;;  %v6288_v36 = vld [vmem:[#allocation7 + $0xc8] sm:$0xff] }
  0x55   :  { %1384 = vmatpush.bf16.msra.mxu0 %v6276_v53  ;;  %v5181_v53 = vld [vmem:[%s8317_s0 + $0x80] sm:$0xf0] }
  0x56   :  { %1413 = vmatpush.bf16.msra.mxu1 %v6284_v55  ;;  %v6176_v55 = vld [vmem:[%s8317_s0 + $0x84] sm:$0xf0] }
  0x57   :  { %1442 = vmatpush.bf16.msra.mxu2 %v6292_v52  ;;  %v6172_v52 = vld [vmem:[%s8317_s0 + $0x6c] sm:$0xf] }
  0x58   :  { %1471 = vmatpush.bf16.msra.mxu3 %v6300_v54  ;;  %v5187_v54 = vld [vmem:[%s8317_s0 + $0x70] sm:$0xf]  ;;  %v7089_v60 = vor.u32 %v6172_v52, %v5181_v53  ;;  %v6323_v52 = vld [vmem:[#allocation4 + $0x220] sm:$0xff]  ;;  %v5419_v53 = vld [vmem:[%s8319_s2 + $0x8] sm:$0xf] }
  0x59   :  { %1385 = vmatpush.bf16.msra.mxu0 %v6275_v57  ;;  %v5189_v57 = vld [vmem:[%s8317_s0 + $0x88] sm:$0xf0]  ;;  %v7091_v61 = vor.u32 %v6176_v55, %v5187_v54  ;;  %v6190_v54 = vld [vmem:[%s8319_s2 + $0x18] sm:$0xf0] }
  0x5a   :  { %1414 = vmatpush.bf16.msra.mxu1 %v6283_v59  ;;  %v6199_v59 = vld [vmem:[%s8319_s2 + $0x60] sm:$0xf0]  ;;  %v6188_v55 = vld [vmem:[%s8319_s2 + $0xc] sm:$0xf] }
  0x5b   :  { %1443 = vmatpush.bf16.msra.mxu2 %v6291_v56  ;;  %v6173_v56 = vld [vmem:[%s8317_s0 + $0x74] sm:$0xf] }
  0x5c   :  { %341 = vmatmul.bf16.gmra.mxu0 %v6981_v48  ;;  %1472 = vmatpush.bf16.msra.mxu3 %v6299_v58  ;;  %v5451_v58 = vld [vmem:[%s8319_s2 + $0x50] sm:$0xf]  ;;  %v7093_v62 = vor.u32 %v6173_v56, %v5189_v57  ;;  %v5421_v56 = vld [vmem:[%s8319_s2 + $0x1c] sm:$0xf0] }
  0x5d   :  { %778 = vmatmul.bf16.gmra.mxu1 %v6983_v49  ;;  %1386 = vmatpush.bf16.msra.mxu0 %v6274_v13  ;;  %v7095_v63 = vor.u32 %v6199_v59, %v5451_v58  ;;  %v6357_v13 = vld [vmem:[%s8321_s4 + $0x70] sm:$0xff]  ;;  %v6191_v58 = vld [vmem:[%s8319_s2 + $0x20] sm:$0xf0] }
  0x5e   :  { %807 = vmatmul.bf16.gmra.mxu2 %v6985_v50  ;;  %1415 = vmatpush.bf16.msra.mxu1 %v6282_v15  ;;  %v5205_v15 = vld [vmem:[%s8317_s0 + $0xb0] sm:$0xf0]  ;;  %v5427_v57 = vld [vmem:[%s8319_s2 + $0x10] sm:$0xf] }
  0x5f   :  { %836 = vmatmul.bf16.gmra.mxu3 %v6987_v51  ;;  %1444 = vmatpush.bf16.msra.mxu2 %v6290_v12  ;;  %v6317_v12 = vld [vmem:[#allocation4 + $0x1f0] sm:$0xff] }
  0x60   :  { %1473 = vmatpush.bf16.msra.mxu3 %v6298_v14  ;;  %v6178_v14 = vld [vmem:[%s8317_s0 + $0x9c] sm:$0xf] }
  0x61   :  { %1387 = vmatpush.bf16.msra.mxu0 %v6273_v17  ;;  %v5211_v17 = vld [vmem:[%s8317_s0 + $0xa0] sm:$0xf]  ;;  %v7131_v23 = vor.u32 %v6178_v14, %v5205_v15  ;;  %v6314_v15 = vld [vmem:[#allocation4 + $0x1d8] sm:$0xff] }
  0x62   :  { %1416 = vmatpush.bf16.msra.mxu1 %v6281_v19  ;;  %v6179_v19 = vld [vmem:[%s8317_s0 + $0xa4] sm:$0xf] }
  0x63   :  { %1445 = vmatpush.bf16.msra.mxu2 %v6289_v16  ;;  %v6325_v16 = vld [vmem:[#allocation4 + $0x230] sm:$0xff]  ;;  %v7135_v25 = vor.u32 %v6179_v19, %v5213_v20  ;;  %v6307_v14 = vld [vmem:[#allocation4 + $0x1a0] sm:$0xff] }
  0x64   :  { %1474 = vmatpush.bf16.msra.mxu3 %v6297_v18  ;;  %v6182_v18 = vld [vmem:[%s8317_s0 + $0xb4] sm:$0xf0] }
  0x65   :  { %1388 = vmatpush.bf16.msra.mxu0 %v6272_v37  ;;  %v7133_v24 = vor.u32 %v6182_v18, %v5211_v17  ;;  %v6356_v37 = vld [vmem:[%s8321_s4 + $0x68] sm:$0xff]  ;;  %v6322_v17 = vld [vmem:[#allocation4 + $0x218] sm:$0xff] }
  0x66   :  { %1417 = vmatpush.bf16.msra.mxu1 %v6280_v39  ;;  %v6308_v39 = vld [vmem:[#allocation4 + $0x1a8] sm:$0xff] }
  0x67   :  { %1446 = vmatpush.bf16.msra.mxu2 %v6288_v36  ;;  %v6316_v36 = vld [vmem:[#allocation4 + $0x1e8] sm:$0xff] }
  0x68   :  { %1475 = vmatpush.bf16.msra.mxu3 %v6296_v38  ;;  %v6324_v38 = vld [vmem:[#allocation4 + $0x228] sm:$0xff] }
  0x69   :  { %1389 = vmatpush.bf16.msra.mxu0 %v6271_v45  ;;  %v6355_v45 = vld [vmem:[%s8321_s4 + $0x60] sm:$0xff] }
  0x6a   :  { %1418 = vmatpush.bf16.msra.mxu1 %v6279_v47  ;;  %v5413_v47 = vld [vmem:[%s8319_s2 + $0x14] sm:$0xf0] }
  0x6b   :  { %1447 = vmatpush.bf16.msra.mxu2 %v6287_v44  ;;  %v6315_v44 = vld [vmem:[#allocation4 + $0x1e0] sm:$0xff] }
  0x6c   :  { %850 = vmatmul.bf16.vlgmr.msrb.gmra.mxu0 %v7017_v8  ;;  %1476 = vmatpush.bf16.msra.mxu3 %v6295_v46  ;;  %v6187_v46 = vld [vmem:[%s8319_s2 + $0x4] sm:$0xf] }
  0x6d   :  { %879 = vmatmul.bf16.vlgmr.msrb.gmra.mxu1 %v7019_v9  ;;  %1689 = vmatpush.bf16.msrb.mxu0 %v6358_v1  ;;  %v7173_v59 = vor.u32 %v6187_v46, %v5413_v47  ;;  %v6321_v46 = vld [vmem:[#allocation4 + $0x210] sm:$0xff] }
  0x6e   :  { %908 = vmatmul.bf16.vlgmr.msrb.gmra.mxu2 %v7021_v10  ;;  %2006 = vmatpush.bf16.msrb.mxu1 %v6310_v7  ;;  %v7177_v7 = vor.u32 %v6188_v55, %v5421_v56  ;;  %v5439_v47 = vld [vmem:[%s8319_s2 + $0x30] sm:$0xf]  ;;  %v5447_v55 = vld [vmem:[%s8319_s2 + $0x38] sm:$0xf]  ;;  %v6196_v56 = vld [vmem:[%s8319_s2 + $0x48] sm:$0xf0] }
  0x6f   :  { %1361 = vmatmul.bf16.vlgmr.msrb.gmra.mxu3 %v7023_v11  ;;  %2035 = vmatpush.bf16.msrb.mxu2 %v6318_v0  ;;  %v7175_v0 = vor.u32 %v6190_v54, %v5419_v53  ;;  %v6193_v53 = vld [vmem:[%s8319_s2 + $0x34] sm:$0xf]  ;;  %v5441_v54 = vld [vmem:[%s8319_s2 + $0x44] sm:$0xf0] }
  0x70   :  { %2064 = vmatpush.bf16.msrb.mxu3 %v6326_v6 }
  0x71   :  { %1690 = vmatpush.bf16.msrb.mxu0 %v6357_v13 }
  0x72   :  { %2007 = vmatpush.bf16.msrb.mxu1 %v6309_v31 }
  0x73   :  { %2036 = vmatpush.bf16.msrb.mxu2 %v6317_v12  ;;  %v7179_v12 = vor.u32 %v6191_v58, %v5427_v57 }
  0x74   :  { %2065 = vmatpush.bf16.msrb.mxu3 %v6325_v16  ;;  %v6354_v16 = vld [vmem:[%s8321_s4 + $0x58] sm:$0xff] }
  0x75   :  { %1691 = vmatpush.bf16.msrb.mxu0 %v6356_v37  ;;  %8357 = vst [vmem:[#allocation13_spill] sm:$0xff] %v7179_v12  ;;  %v6306_v37 = vld [vmem:[#allocation4 + $0x198] sm:$0xff] }
  0x76   :  { %2008 = vmatpush.bf16.msrb.mxu1 %v6308_v39  ;;  %v6353_v39 = vld [vmem:[%s8321_s4 + $0x50] sm:$0xff] }
  0x77   :  { %2037 = vmatpush.bf16.msrb.mxu2 %v6316_v36 }
  0x78   :  { %2066 = vmatpush.bf16.msrb.mxu3 %v6324_v38  ;;  %v6313_v38 = vld [vmem:[#allocation4 + $0x1d0] sm:$0xff] }
  0x79   :  { %1692 = vmatpush.bf16.msrb.mxu0 %v6355_v45  ;;  %v5433_v45 = vld [vmem:[%s8319_s2 + $0x3c] sm:$0xf0] }
  0x7a   :  { %2009 = vmatpush.bf16.msrb.mxu1 %v6307_v14 }
  0x7b   :  { %2038 = vmatpush.bf16.msrb.mxu2 %v6315_v44  ;;  %v6192_v44 = vld [vmem:[%s8319_s2 + $0x2c] sm:$0xf] }
  0x7c   :  { %855 = vmatmul.bf16.gmra.mxu0 %v7053_v32  ;;  %2067 = vmatpush.bf16.msrb.mxu3 %v6323_v52  ;;  %v6195_v52 = vld [vmem:[%s8319_s2 + $0x40] sm:$0xf0] }
  0x7d   :  { %884 = vmatmul.bf16.gmra.mxu1 %v7055_v33  ;;  %1693 = vmatpush.bf16.msrb.mxu0 %v6354_v16  ;;  %v7221_v16 = vor.u32 %v6193_v53, %v5441_v54  ;;  %v6311_v53 = vld [vmem:[#allocation4 + $0x1c0] sm:$0xff] }
  0x7e   :  { %913 = vmatmul.bf16.gmra.mxu2 %v7057_v34  ;;  %2010 = vmatpush.bf16.msrb.mxu1 %v6306_v37  ;;  %v6351_v54 = vld [vmem:[%s8321_s4 + $0x40] sm:$0xff] }
  0x7f   :  { %1366 = vmatmul.bf16.gmra.mxu3 %v7059_v35  ;;  %2039 = vmatpush.bf16.msrb.mxu2 %v6314_v15  ;;  %8360 = vst [vmem:[#allocation16_spill] sm:$0xff] %v7221_v16 }
  0x80   :  { %2068 = vmatpush.bf16.msrb.mxu3 %v6322_v17  ;;  %v7223_v17 = vor.u32 %v6196_v56, %v5447_v55  ;;  %v6197_v55 = vld [vmem:[%s8319_s2 + $0x54] sm:$0xf]  ;;  %v5453_v56 = vld [vmem:[%s8319_s2 + $0x64] sm:$0xf0] }
  0x81   :  { %1694 = vmatpush.bf16.msrb.mxu0 %v6353_v39 }
  0x82   :  { %8361 = vst [vmem:[#allocation17_spill] sm:$0xff] %v7223_v17 }
  0x83   :  { %2040 = vmatpush.bf16.msrb.mxu2 %v6313_v38 }
  0x84   :  { %2069 = vmatpush.bf16.msrb.mxu3 %v6321_v46 }
  0x8c   :  { %860 = vmatmul.bf16.gmra.mxu0 %v7089_v60 }
  0x8d   :  { %889 = vmatmul.bf16.gmra.mxu1 %v7091_v61 }
  0x8e   :  { %918 = vmatmul.bf16.gmra.mxu2 %v7093_v62 }
  0x8f   :  { %1371 = vmatmul.bf16.gmra.mxu3 %v7095_v63 }
  0x9c   :  { %865 = vmatmul.bf16.gmra.mxu0 %v7131_v23 }
  0x9d   :  { %894 = vmatmul.bf16.gmra.mxu1 %v7133_v24 }
  0x9e   :  { %923 = vmatmul.bf16.gmra.mxu2 %v7135_v25 }
  0x9f   :  { %1376 = vmatmul.bf16.gmra.mxu3 %v7137_v30 }
  0xa9   :  { %v327_v1 = vpop.f32.mrf.mxu0 }
  0xaa   :  { %v764_v6 = vpop.f32.mrf.mxu1 }
  0xab   :  { %v765_v13 = vadd.f32 %v764_v6, %v327_v1  ;;  %v7217_v1 = vor.u32 %v6192_v44, %v5433_v45  ;;  %v7219_v6 = vor.u32 %v6195_v52, %v5439_v47  ;;  %v6304_v52 = vld [vmem:[#allocation4 + $0x188] sm:$0xff] }
  0xac   :  { %1390 = vmatmul.bf16.vlgmr.msra.gmra.mxu0 %v7173_v59 }
  0xad   :  { %1419 = vmatmul.bf16.vlgmr.msra.gmra.mxu1 %v7175_v0  ;;  %8358 = vst [vmem:[#allocation14_spill] sm:$0xff] %v7217_v1 }
  0xae   :  { %1448 = vmatmul.bf16.vlgmr.msra.gmra.mxu2 %v7177_v7  ;;  %8359 = vst [vmem:[#allocation15_spill] sm:$0xff] %v7219_v6 }
  0xaf   :  { %1477 = vmatmul.bf16.vlgmr.msra.gmra.mxu3 %v7179_v12 }
  0xb1   :  { %v793_v18 = vpop.f32.mrf.mxu2  ;;  %v329_v21 = vpop.f32.mrf.mxu0 }
  0xb2   :  { %v822_v19 = vpop.f32.mrf.mxu3  ;;  %v794_v20 = vadd.f32 %v793_v18, %v765_v13  ;;  %v766_v22 = vpop.f32.mrf.mxu1 }
  0xb3   :  { %v767_v31 = vadd.f32 %v766_v22, %v329_v21  ;;  %v6312_v21 = vld [vmem:[#allocation4 + $0x1c8] sm:$0xff] }
  0xb4   :  { %v7188_v36 = vadd.f32 %v822_v19, %v794_v20  ;;  %v6305_v20 = vld [vmem:[#allocation4 + $0x190] sm:$0xff]  ;;  %v6352_v22 = vld [vmem:[%s8321_s4 + $0x48] sm:$0xff]  ;;  %2041 = vmatpush.bf16.msrb.mxu2 %v6312_v21 }
  0xb5   :  { %2011 = vmatpush.bf16.msrb.mxu1 %v6305_v20  ;;  %1695 = vmatpush.bf16.msrb.mxu0 %v6352_v22  ;;  %v6201_v20 = vld [vmem:[%s8319_s2 + $0x70] sm:$0xf0] }
  0xb8   :  { %2042 = vmatpush.bf16.msrb.mxu2 %v6311_v53 }
  0xb9   :  { %v795_v57 = vpop.f32.mrf.mxu2  ;;  %v332_v14 = vpop.f32.mrf.mxu0  ;;  %2012 = vmatpush.bf16.msrb.mxu1 %v6304_v52  ;;  %1696 = vmatpush.bf16.msrb.mxu0 %v6351_v54  ;;  %v6350_v54 = vld [vmem:[#allocation4 + $0x2f8] sm:$0xff] }
  0xba   :  { %v824_v58 = vpop.f32.mrf.mxu3  ;;  %v796_v13 = vadd.f32 %v795_v57, %v767_v31  ;;  %v769_v15 = vpop.f32.mrf.mxu1  ;;  %v6320_v31 = vld [vmem:[#allocation4 + $0x208] sm:$0xff]  ;;  %v6319_v57 = vld [vmem:[#allocation4 + $0x200] sm:$0xff] }
  0xbb   :  { %v770_v18 = vadd.f32 %v769_v15, %v332_v14  ;;  %2070 = vmatpush.bf16.msrb.mxu3 %v6320_v31  ;;  %v6198_v14 = vld [vmem:[%s8319_s2 + $0x5c] sm:$0xf]  ;;  %v5461_v15 = vld [vmem:[%s8319_s2 + $0x6c] sm:$0xf0]  ;;  %v7263_v31 = vor.u32 %v6197_v55, %v5453_v56 }
  0xbc   :  { %v7225_v19 = vadd.f32 %v824_v58, %v796_v13  ;;  %1395 = vmatmul.bf16.gmra.mxu0 %v7217_v1  ;;  %v5459_v58 = vld [vmem:[%s8319_s2 + $0x58] sm:$0xf]  ;;  %v6200_v13 = vld [vmem:[%s8319_s2 + $0x68] sm:$0xf0]  ;;  %v7267_v52 = vor.u32 %v6198_v14, %v5461_v15  ;;  %2151 = vmatpush.bf16.msra.mxu2 %v6350_v54  ;;  %v6203_v54 = vld [vmem:[%s8319_s2 + $0x84] sm:$0xf] }
  0xbd   :  { %1424 = vmatmul.bf16.gmra.mxu1 %v7219_v6  ;;  %8362 = vst [vmem:[#allocation18_spill] sm:$0xff] %v7263_v31  ;;  %v6366_v55 = vld [vmem:[#allocation7 + $0x178] sm:$0xff]  ;;  %v6341_v6 = vld [vmem:[#allocation4 + $0x2b0] sm:$0xff] }
  0xbe   :  { %1453 = vmatmul.bf16.gmra.mxu2 %v7221_v16  ;;  %8364 = vst [vmem:[#allocation20_spill] sm:$0xff] %v7267_v52  ;;  %v6342_v15 = vld [vmem:[#allocation4 + $0x2b8] sm:$0xff] }
  0xbf   :  { %1482 = vmatmul.bf16.gmra.mxu3 %v7223_v17 }
  0xc0   :  { %2071 = vmatpush.bf16.msrb.mxu3 %v6319_v57 }
  0xc1   :  { %v798_v37 = vpop.f32.mrf.mxu2  ;;  %v334_v44 = vpop.f32.mrf.mxu0 }
  0xc2   :  { %v827_v38 = vpop.f32.mrf.mxu3  ;;  %v799_v39 = vadd.f32 %v798_v37, %v770_v18  ;;  %v771_v45 = vpop.f32.mrf.mxu1  ;;  %v5467_v18 = vld [vmem:[%s8319_s2 + $0x60] sm:$0xf]  ;;  %v7265_v37 = vor.u32 %v6200_v13, %v5459_v58 }
  0xc3   :  { %v772_v46 = vadd.f32 %v771_v45, %v334_v44  ;;  %v7269_v53 = vor.u32 %v6201_v20, %v5467_v18 }
  0xc4   :  { %v7234_v47 = vadd.f32 %v827_v38, %v799_v39  ;;  %8363 = vst [vmem:[#allocation19_spill] sm:$0xff] %v7265_v37  ;;  %v6303_v38 = vld [vmem:[#allocation4 + $0x180] sm:$0xff]  ;;  %2501 = vmatpush.bf16.msra.mxu3 %v6366_v55  ;;  %v5487_v55 = vld [vmem:[%s8319_s2 + $0x88] sm:$0xf] }
  0xc5   :  { %8365 = vst [vmem:[#allocation21_spill] sm:$0xff] %v7269_v53  ;;  %2013 = vmatpush.bf16.msrb.mxu1 %v6303_v38  ;;  %v6349_v38 = vld [vmem:[#allocation4 + $0x2f0] sm:$0xff] }
  0xc6   :  { %2152 = vmatpush.bf16.msra.mxu2 %v6349_v38 }
  0xc9   :  { %v800_v21 = vpop.f32.mrf.mxu2  ;;  %v337_v44 = vpop.f32.mrf.mxu0  ;;  %2122 = vmatpush.bf16.msra.mxu1 %v6342_v15 }
  0xca   :  { %v829_v22 = vpop.f32.mrf.mxu3  ;;  %v801_v39 = vadd.f32 %v800_v21, %v772_v46  ;;  %v774_v45 = vpop.f32.mrf.mxu1  ;;  %v6334_v46 = vld [vmem:[#allocation4 + $0x278] sm:$0xff] }
  0xcb   :  { %v775_v17 = vadd.f32 %v774_v45, %v337_v44  ;;  %2093 = vmatpush.bf16.msra.mxu0 %v6334_v46  ;;  %v6202_v21 = vld [vmem:[%s8319_s2 + $0x7c] sm:$0xf]  ;;  %v6365_v44 = vld [vmem:[#allocation7 + $0x170] sm:$0xff]  ;;  %v5481_v46 = vld [vmem:[%s8319_s2 + $0x94] sm:$0xf0] }
  0xcc   :  { %v7271_v16 = vadd.f32 %v829_v22, %v801_v39  ;;  %1400 = vmatmul.bf16.gmra.mxu0 %v7263_v31  ;;  %v5473_v22 = vld [vmem:[%s8319_s2 + $0x8c] sm:$0xf0]  ;;  %v6205_v45 = vld [vmem:[%s8319_s2 + $0x90] sm:$0xf0]  ;;  %2502 = vmatpush.bf16.msra.mxu3 %v6365_v44 }
  0xcd   :  { %1429 = vmatmul.bf16.gmra.mxu1 %v7265_v37  ;;  %v6333_v39 = vld [vmem:[#allocation4 + $0x270] sm:$0xff]  ;;  %v7307_v37 = vor.u32 %v6203_v54, %v5481_v46  ;;  %v6347_v54 = vld [vmem:[#allocation4 + $0x2e0] sm:$0xff] }
  0xce   :  { %1458 = vmatmul.bf16.gmra.mxu2 %v7267_v52  ;;  %2123 = vmatpush.bf16.msra.mxu1 %v6341_v6  ;;  %v6340_v6 = vld [vmem:[#allocation4 + $0x2a8] sm:$0xff]  ;;  %v6331_v46 = vld [vmem:[#allocation4 + $0x260] sm:$0xff] }
  0xcf   :  { %1487 = vmatmul.bf16.gmra.mxu3 %v7269_v53  ;;  %2094 = vmatpush.bf16.msra.mxu0 %v6333_v39 }
  0xd1   :  { %v803_v56 = vpop.f32.mrf.mxu2  ;;  %v339_v13 = vpop.f32.mrf.mxu0 }
  0xd2   :  { %v832_v57 = vpop.f32.mrf.mxu3  ;;  %v804_v58 = vadd.f32 %v803_v56, %v775_v17  ;;  %v776_v14 = vpop.f32.mrf.mxu1  ;;  %v5479_v17 = vld [vmem:[%s8319_s2 + $0x80] sm:$0xf]  ;;  %v6206_v56 = vld [vmem:[%s8319_s2 + $0x98] sm:$0xf0]  ;;  %2124 = vmatpush.bf16.msra.mxu1 %v6340_v6 }
  0xd3   :  { %v777_v18 = vadd.f32 %v776_v14, %v339_v13  ;;  %v7303_v13 = vor.u32 %v6202_v21, %v5473_v22  ;;  %v7305_v14 = vor.u32 %v6205_v45, %v5479_v17  ;;  %v7309_v31 = vor.u32 %v6206_v56, %v5487_v55  ;;  %v6332_v21 = vld [vmem:[#allocation4 + $0x268] sm:$0xff]  ;;  %v6363_v55 = vld [vmem:[#allocation7 + $0x160] sm:$0xff] }
  0xd4   :  { %v7277_v20 = vadd.f32 %v832_v57, %v804_v58  ;;  %v6364_v22 = vld [vmem:[#allocation7 + $0x168] sm:$0xff]  ;;  %2095 = vmatpush.bf16.msra.mxu0 %v6332_v21  ;;  %v6339_v21 = vld [vmem:[#allocation4 + $0x2a0] sm:$0xff] }
  0xd5   :  { %2503 = vmatpush.bf16.msra.mxu3 %v6364_v22 }
  0xd6   :  { %2125 = vmatpush.bf16.msra.mxu1 %v6339_v21  ;;  %v6337_v21 = vld [vmem:[#allocation4 + $0x290] sm:$0xff] }
  0xd8   :  { %2096 = vmatpush.bf16.msra.mxu0 %v6331_v46  ;;  %v6345_v46 = vld [vmem:[#allocation4 + $0x2d0] sm:$0xff] }
  0xd9   :  { %v805_v57 = vpop.f32.mrf.mxu2  ;;  %v342_v53 = vpop.f32.mrf.mxu0  ;;  %2504 = vmatpush.bf16.msra.mxu3 %v6363_v55  ;;  %v6361_v55 = vld [vmem:[#allocation7 + $0x150] sm:$0xff] }
  0xda   :  { %v834_v58 = vpop.f32.mrf.mxu3  ;;  %v806_v15 = vadd.f32 %v805_v57, %v777_v18  ;;  %v779_v52 = vpop.f32.mrf.mxu1  ;;  %v6348_v18 = vld [vmem:[#allocation4 + $0x2e8] sm:$0xff] }
  0xdb   :  { %v780_v1 = vadd.f32 %v779_v52, %v342_v53  ;;  %2153 = vmatpush.bf16.msra.mxu2 %v6348_v18 }
  0xdc   :  { %v7311_v12 = vadd.f32 %v834_v58, %v806_v15  ;;  %1405 = vmatmul.bf16.gmra.mxu0 %v7303_v13 }
  0xdd   :  { %1434 = vmatmul.bf16.gmra.mxu1 %v7305_v14 }
  0xde   :  { %1463 = vmatmul.bf16.gmra.mxu2 %v7307_v37 }
  0xdf   :  { %1492 = vmatmul.bf16.gmra.mxu3 %v7309_v31  ;;  %2154 = vmatpush.bf16.msra.mxu2 %v6347_v54 }
  0xe1   :  { %v808_v38 = vpop.f32.mrf.mxu2  ;;  %v344_v53 = vpop.f32.mrf.mxu0 }
  0xe2   :  { %v837_v39 = vpop.f32.mrf.mxu3  ;;  %v809_v52 = vadd.f32 %v808_v38, %v780_v1  ;;  %v781_v44 = vpop.f32.mrf.mxu1 }
  0xe3   :  { %v782_v17 = vadd.f32 %v781_v44, %v344_v53  ;;  %v6362_v53 = vld [vmem:[#allocation7 + $0x158] sm:$0xff] }
  0xe4   :  { %v7317_v45 = vadd.f32 %v837_v39, %v809_v52  ;;  %v6346_v39 = vld [vmem:[#allocation4 + $0x2d8] sm:$0xff]  ;;  %2505 = vmatpush.bf16.msra.mxu3 %v6362_v53 }
  0xe5   :  { %v6330_v52 = vld [vmem:[#allocation4 + $0x258] sm:$0xff]  ;;  %2155 = vmatpush.bf16.msra.mxu2 %v6346_v39  ;;  %v6328_v39 = vld [vmem:[#allocation4 + $0x248] sm:$0xff] }
  0xe6   :  { %2097 = vmatpush.bf16.msra.mxu0 %v6330_v52  ;;  %v6360_v52 = vld [vmem:[#allocation7 + $0x148] sm:$0xff] }
  0xe8   :  { %2506 = vmatpush.bf16.msra.mxu3 %v6361_v55 }
  0xe9   :  { %v810_v56 = vpop.f32.mrf.mxu2  ;;  %v851_v15 = vpop.f32.mrf.mxu0  ;;  %2156 = vmatpush.bf16.msra.mxu2 %v6345_v46 }
  0xea   :  { %v839_v57 = vpop.f32.mrf.mxu3  ;;  %v811_v58 = vadd.f32 %v810_v56, %v782_v17  ;;  %v880_v18 = vpop.f32.mrf.mxu1  ;;  %v852_v1 = vadd.f32 %v851_v15, %v7188_v36 }
  0xec   :  { %v7320_v22 = vadd.f32 %v839_v57, %v811_v58  ;;  %v881_v38 = vadd.f32 %v880_v18, %v852_v1  ;;  %1697 = vmatmul.bf16.vlgmr.msrb.gmra.mxu0 %v6882_v40  ;;  %v6338_v40 = vld [vmem:[#allocation4 + $0x298] sm:$0xff]  ;;  %2507 = vmatpush.bf16.msra.mxu3 %v6360_v52 }
  0xed   :  { %2014 = vmatmul.bf16.vlgmr.msrb.gmra.mxu1 %v6884_v41 }
  0xee   :  { %2043 = vmatmul.bf16.vlgmr.msrb.gmra.mxu2 %v6886_v42  ;;  %2126 = vmatpush.bf16.msra.mxu1 %v6338_v40  ;;  %v6343_v40 = vld [vmem:[#allocation4 + $0x2c0] sm:$0xff] }
  0xef   :  { %2072 = vmatmul.bf16.vlgmr.msrb.gmra.mxu3 %v6888_v43  ;;  %v6329_v43 = vld [vmem:[#allocation4 + $0x250] sm:$0xff] }
  0xf0   :  { %2098 = vmatpush.bf16.msra.mxu0 %v6329_v43  ;;  %v6335_v43 = vld [vmem:[#allocation4 + $0x280] sm:$0xff] }
  0xf1   :  { %v909_v44 = vpop.f32.mrf.mxu2  ;;  %v853_v17 = vpop.f32.mrf.mxu0 }
  0xf2   :  { %v7326_v6 = vpop.f32.mrf.mxu3  ;;  %v7328_v36 = vadd.f32 %v909_v44, %v881_v38  ;;  %v882_v54 = vpop.f32.mrf.mxu1  ;;  %v854_v41 = vadd.f32 %v853_v17, %v7225_v19  ;;  %2127 = vmatpush.bf16.msra.mxu1 %v6337_v21  ;;  %v6344_v38 = vld [vmem:[#allocation4 + $0x2c8] sm:$0xff]  ;;  %v6390_v21 = vld [vmem:[#allocation7 + $0x238] sm:$0xff] }
  0xf3   :  { %2157 = vmatpush.bf16.msra.mxu2 %v6344_v38 }
  0xf4   :  { %v883_v42 = vadd.f32 %v882_v54, %v854_v41  ;;  %2099 = vmatpush.bf16.msra.mxu0 %v6328_v39  ;;  %v6359_v41 = vld [vmem:[#allocation7 + $0x140] sm:$0xff] }
  0xf5   :  { %2508 = vmatpush.bf16.msra.mxu3 %v6359_v41 }
  0xf7   :  { %2158 = vmatpush.bf16.msra.mxu2 %v6343_v40 }
  0xf9   :  { %v911_v56 = vpop.f32.mrf.mxu2  ;;  %v856_v15 = vpop.f32.mrf.mxu0 }
  0xfa   :  { %v7331_v57 = vpop.f32.mrf.mxu3  ;;  %v7333_v58 = vadd.f32 %v911_v56, %v883_v42  ;;  %v885_v18 = vpop.f32.mrf.mxu1  ;;  %v857_v1 = vadd.f32 %v856_v15, %v7234_v47 }
  0xfb   :  { %2588 = vmatpush.bf16.msrb.mxu2 %v6390_v21 }
  0xfc   :  { %v886_v19 = vadd.f32 %v885_v18, %v857_v1  ;;  %1702 = vmatmul.bf16.gmra.mxu0 %v6915_v2  ;;  %v6336_v2 = vld [vmem:[#allocation4 + $0x288] sm:$0xff]  ;;  %v6374_v1 = vld [vmem:[#allocation7 + $0x1b8] sm:$0xff] }
  0xfd   :  { %2019 = vmatmul.bf16.gmra.mxu1 %v6917_v3 }
  0xfe   :  { %2048 = vmatmul.bf16.gmra.mxu2 %v6919_v4  ;;  %2128 = vmatpush.bf16.msra.mxu1 %v6336_v2 }
  0xff   :  { %2077 = vmatmul.bf16.gmra.mxu3 %v6921_v5  ;;  %v6327_v5 = vld [vmem:[#allocation4 + $0x240] sm:$0xff] }
 0x100   :  { %2100 = vmatpush.bf16.msra.mxu0 %v6327_v5 }
 0x101   :  { %v914_v53 = vpop.f32.mrf.mxu2  ;;  %v858_v17 = vpop.f32.mrf.mxu0 }
 0x102   :  { %v7340_v44 = vpop.f32.mrf.mxu3  ;;  %v7342_v47 = vadd.f32 %v914_v53, %v886_v19  ;;  %v887_v54 = vpop.f32.mrf.mxu1  ;;  %v859_v3 = vadd.f32 %v858_v17, %v7271_v16  ;;  %2129 = vmatpush.bf16.msra.mxu1 %v6335_v43  ;;  %v6398_v19 = vld [vmem:[#allocation7 + $0x278] sm:$0xff]  ;;  %v6388_v43 = vld [vmem:[#allocation7 + $0x228] sm:$0xff] }
 0x103   :  { %2617 = vmatpush.bf16.msrb.mxu3 %v6398_v19  ;;  %v6382_v17 = vld [vmem:[#allocation7 + $0x1f8] sm:$0xff]  ;;  %v6371_v19 = vld [vmem:[#allocation7 + $0x1a0] sm:$0xff] }
 0x104   :  { %v888_v4 = vadd.f32 %v887_v54, %v859_v3  ;;  %2530 = vmatpush.bf16.msrb.mxu0 %v6374_v1  ;;  %v6373_v54 = vld [vmem:[#allocation7 + $0x1b0] sm:$0xff]  ;;  %v6380_v1 = vld [vmem:[#allocation7 + $0x1e8] sm:$0xff] }
 0x106   :  { %2559 = vmatpush.bf16.msrb.mxu1 %v6382_v17 }
 0x108   :  { %2531 = vmatpush.bf16.msrb.mxu0 %v6373_v54 }
 0x109   :  { %v916_v42 = vpop.f32.mrf.mxu2  ;;  %v861_v56 = vpop.f32.mrf.mxu0 }
 0x10a   :  { %v7345_v46 = vpop.f32.mrf.mxu3  ;;  %v7347_v55 = vadd.f32 %v916_v42, %v888_v4  ;;  %v890_v15 = vpop.f32.mrf.mxu1  ;;  %v862_v18 = vadd.f32 %v861_v56, %v7277_v20  ;;  %v6372_v56 = vld [vmem:[#allocation7 + $0x1a8] sm:$0xff] }
 0x10c   :  { %v891_v16 = vadd.f32 %v890_v15, %v862_v18  ;;  %1707 = vmatmul.bf16.gmra.mxu0 %v6948_v26  ;;  %v6396_v15 = vld [vmem:[#allocation7 + $0x268] sm:$0xff] }
 0x10d   :  { %2024 = vmatmul.bf16.gmra.mxu1 %v6950_v27  ;;  %2532 = vmatpush.bf16.msrb.mxu0 %v6372_v56  ;;  %v6385_v56 = vld [vmem:[#allocation7 + $0x210] sm:$0xff] }
 0x10e   :  { %2053 = vmatmul.bf16.gmra.mxu2 %v6952_v28  ;;  %v6389_v28 = vld [vmem:[#allocation7 + $0x230] sm:$0xff] }
 0x10f   :  { %2082 = vmatmul.bf16.gmra.mxu3 %v6954_v29  ;;  %v6397_v29 = vld [vmem:[#allocation7 + $0x270] sm:$0xff]  ;;  %2589 = vmatpush.bf16.msrb.mxu2 %v6389_v28 }
 0x110   :  { %2618 = vmatpush.bf16.msrb.mxu3 %v6397_v29  ;;  %v6386_v29 = vld [vmem:[#allocation7 + $0x218] sm:$0xff] }
 0x111   :  { %v919_v38 = vpop.f32.mrf.mxu2  ;;  %v863_v52 = vpop.f32.mrf.mxu0  ;;  %2533 = vmatpush.bf16.msrb.mxu0 %v6371_v19 }
 0x112   :  { %v7354_v39 = vpop.f32.mrf.mxu3  ;;  %v7356_v20 = vadd.f32 %v919_v38, %v891_v16  ;;  %v892_v53 = vpop.f32.mrf.mxu1  ;;  %v864_v26 = vadd.f32 %v863_v52, %v7311_v12  ;;  %v6381_v12 = vld [vmem:[#allocation7 + $0x1f0] sm:$0xff]  ;;  %v6395_v38 = vld [vmem:[#allocation7 + $0x260] sm:$0xff] }
 0x113   :  { %2560 = vmatpush.bf16.msrb.mxu1 %v6381_v12  ;;  %2590 = vmatpush.bf16.msrb.mxu2 %v6388_v43 }
 0x114   :  { %v893_v27 = vadd.f32 %v892_v53, %v864_v26  ;;  %2619 = vmatpush.bf16.msrb.mxu3 %v6396_v15  ;;  %v6369_v15 = vld [vmem:[#allocation7 + $0x190] sm:$0xff] }
 0x117   :  { %2561 = vmatpush.bf16.msrb.mxu1 %v6380_v1 }
 0x118   :  { %2620 = vmatpush.bf16.msrb.mxu3 %v6395_v38 }
 0x119   :  { %v921_v2 = vpop.f32.mrf.mxu2  ;;  %v866_v40 = vpop.f32.mrf.mxu0 }
 0x11a   :  { %v7359_v3 = vpop.f32.mrf.mxu3  ;;  %v7361_v4 = vadd.f32 %v921_v2, %v893_v27  ;;  %v895_v5 = vpop.f32.mrf.mxu1  ;;  %v867_v41 = vadd.f32 %v866_v40, %v7317_v45  ;;  %v6370_v2 = vld [vmem:[#allocation7 + $0x198] sm:$0xff] }
 0x11b   :  { %v6394_v40 = vld [vmem:[#allocation7 + $0x258] sm:$0xff]  ;;  %2534 = vmatpush.bf16.msrb.mxu0 %v6370_v2  ;;  %v6376_v2 = vld [vmem:[#allocation7 + $0x1c8] sm:$0xff] }
 0x11c   :  { %v896_v42 = vadd.f32 %v895_v5, %v867_v41  ;;  %1712 = vmatmul.bf16.gmra.mxu0 %v6981_v48  ;;  %2621 = vmatpush.bf16.msrb.mxu3 %v6394_v40 }
 0x11d   :  { %2029 = vmatmul.bf16.gmra.mxu1 %v6983_v49 }
 0x11e   :  { %2058 = vmatmul.bf16.gmra.mxu2 %v6985_v50 }
 0x11f   :  { %2087 = vmatmul.bf16.gmra.mxu3 %v6987_v51  ;;  %v6387_v51 = vld [vmem:[#allocation7 + $0x220] sm:$0xff]  ;;  %2535 = vmatpush.bf16.msrb.mxu0 %v6369_v15 }
 0x120   :  { %2591 = vmatpush.bf16.msrb.mxu2 %v6387_v51 }
 0x121   :  { %v924_v18 = vpop.f32.mrf.mxu2  ;;  %v868_v48 = vpop.f32.mrf.mxu0 }
 0x122   :  { %v7368_v16 = vpop.f32.mrf.mxu3  ;;  %v7370_v45 = vadd.f32 %v924_v18, %v896_v42  ;;  %v897_v21 = vpop.f32.mrf.mxu1  ;;  %v869_v49 = vadd.f32 %v868_v48, %v7320_v22  ;;  %v6379_v22 = vld [vmem:[#allocation7 + $0x1e0] sm:$0xff]  ;;  %v6393_v18 = vld [vmem:[#allocation7 + $0x250] sm:$0xff] }
 0x123   :  { %2562 = vmatpush.bf16.msrb.mxu1 %v6379_v22  ;;  %2622 = vmatpush.bf16.msrb.mxu3 %v6393_v18 }
 0x124   :  { %v898_v50 = vadd.f32 %v897_v21, %v869_v49  ;;  %2592 = vmatpush.bf16.msrb.mxu2 %v6386_v29 }
 0x128   :  { %2593 = vmatpush.bf16.msrb.mxu2 %v6385_v56 }
 0x129   :  { %v926_v52 = vpop.f32.mrf.mxu2  ;;  %v1391_v27 = vpop.f32.mrf.mxu0 }
 0x12a   :  { %v7373_v53 = vpop.f32.mrf.mxu3  ;;  %v7375_v26 = vadd.f32 %v926_v52, %v898_v50  ;;  %v1420_v17 = vpop.f32.mrf.mxu1  ;;  %v1392_v28 = vadd.f32 %v1391_v27, %v7326_v6  ;;  %v6377_v52 = vld [vmem:[#allocation7 + $0x1d0] sm:$0xff]  ;;  %v6384_v27 = vld [vmem:[#allocation7 + $0x208] sm:$0xff] }
 0x12c   :  { %v1421_v54 = vadd.f32 %v1420_v17, %v1392_v28  ;;  %2101 = vmatmul.bf16.vlgmr.msra.gmra.mxu0 %v7017_v8  ;;  %v6392_v17 = vld [vmem:[#allocation7 + $0x248] sm:$0xff]  ;;  %2594 = vmatpush.bf16.msrb.mxu2 %v6384_v27 }
 0x12d   :  { %2130 = vmatmul.bf16.vlgmr.msra.gmra.mxu1 %v7019_v9  ;;  %2623 = vmatpush.bf16.msrb.mxu3 %v6392_v17 }
 0x12e   :  { %2159 = vmatmul.bf16.vlgmr.msra.gmra.mxu2 %v7021_v10 }
 0x12f   :  { %2509 = vmatmul.bf16.vlgmr.msra.gmra.mxu3 %v7023_v11  ;;  %v6378_v11 = vld [vmem:[#allocation7 + $0x1d8] sm:$0xff] }
 0x130   :  { %2563 = vmatpush.bf16.msrb.mxu1 %v6378_v11 }
 0x131   :  { %v1449_v5 = vpop.f32.mrf.mxu2  ;;  %v1393_v42 = vpop.f32.mrf.mxu0 }
 0x132   :  { %v1478_v41 = vpop.f32.mrf.mxu3  ;;  %v1450_v6 = vadd.f32 %v1449_v5, %v1421_v54  ;;  %v1422_v12 = vpop.f32.mrf.mxu1  ;;  %v1394_v8 = vadd.f32 %v1393_v42, %v7331_v57  ;;  %v6383_v5 = vld [vmem:[#allocation7 + $0x200] sm:$0xff] }
 0x133   :  { %2595 = vmatpush.bf16.msrb.mxu2 %v6383_v5 }
 0x134   :  { %v1479_v9 = vadd.f32 %v1478_v41, %v1450_v6  ;;  %v1423_v43 = vadd.f32 %v1422_v12, %v1394_v8  ;;  %2564 = vmatpush.bf16.msrb.mxu1 %v6377_v52  ;;  %v6367_v41 = vld [vmem:[#allocation7 + $0x180] sm:$0xff] }
 0x135   :  { %v6391_v6 = vld [vmem:[#allocation7 + $0x240] sm:$0xff] }
 0x136   :  { %v7384_v10 = vadd.f32 %v1479_v9, %v7328_v36  ;;  %v7392_v36 = vld [vmem:[%s8325_s8] ss:$0 sm:$0xff]  ;;  %2624 = vmatpush.bf16.msrb.mxu3 %v6391_v6 }
 0x137   :  { %8366 = vst [vmem:[#allocation22_spill] sm:$0xff] %v7392_v36  ;;  %v6375_v9 = vld [vmem:[#allocation7 + $0x1c0] sm:$0xff] }
 0x138   :  { %2565 = vmatpush.bf16.msrb.mxu1 %v6376_v2 }
 0x139   :  { %v1451_v48 = vpop.f32.mrf.mxu2  ;;  %v1396_v50 = vpop.f32.mrf.mxu0 }
 0x13a   :  { %v1480_v21 = vpop.f32.mrf.mxu3  ;;  %v1452_v49 = vadd.f32 %v1451_v48, %v1423_v43  ;;  %v1425_v1 = vpop.f32.mrf.mxu1  ;;  %v1397_v57 = vadd.f32 %v1396_v50, %v7340_v44  ;;  %v6368_v44 = vld [vmem:[#allocation7 + $0x188] sm:$0xff] }
 0x13b   :  { %2536 = vmatpush.bf16.msrb.mxu0 %v6368_v44 }
 0x13c   :  { %v1481_v51 = vadd.f32 %v1480_v21, %v1452_v49  ;;  %v1426_v19 = vadd.f32 %v1425_v1, %v1397_v57  ;;  %2106 = vmatmul.bf16.gmra.mxu0 %v7053_v32  ;;  %2566 = vmatpush.bf16.msrb.mxu1 %v6375_v9 }
 0x13d   :  { %2135 = vmatmul.bf16.gmra.mxu1 %v7055_v33 }
 0x13e   :  { %v1499_v38 = vadd.f32 %v1481_v51, %v7333_v58  ;;  %2164 = vmatmul.bf16.gmra.mxu2 %v7057_v34 }
 0x13f   :  { %2514 = vmatmul.bf16.gmra.mxu3 %v7059_v35  ;;  %2537 = vmatpush.bf16.msrb.mxu0 %v6367_v41 }
 0x140   :  { %v7398_v32 = vadd.f32 %v7392_v36, %v1499_v38 }
 0x141   :  { %v1454_v33 = vpop.f32.mrf.mxu2  ;;  %v1398_v22 = vpop.f32.mrf.mxu0 }
 0x142   :  { %8367 = vst [vmem:[#allocation23_spill] sm:$0xff] %v7398_v32  ;;  %v1483_v28 = vpop.f32.mrf.mxu3  ;;  %v1455_v54 = vadd.f32 %v1454_v33, %v1426_v19  ;;  %v1427_v58 = vpop.f32.mrf.mxu1  ;;  %v1399_v34 = vadd.f32 %v1398_v22, %v7345_v46 }
 0x144   :  { %v1484_v29 = vadd.f32 %v1483_v28, %v1455_v54  ;;  %v1428_v35 = vadd.f32 %v1427_v58, %v1399_v34 }
 0x146   :  { %v1500_v40 = vadd.f32 %v1484_v29, %v7342_v47 }
 0x148   :  { %v7403_v42 = vadd.f32 %v7392_v36, %v1500_v40 }
 0x149   :  { %v1456_v12 = vpop.f32.mrf.mxu2  ;;  %v1401_v46 = vpop.f32.mrf.mxu0 }
 0x14a   :  { %8368 = vst [vmem:[#allocation24_spill] sm:$0xff] %v7403_v42  ;;  %v1485_v8 = vpop.f32.mrf.mxu3  ;;  %v1457_v43 = vadd.f32 %v1456_v12, %v1428_v35  ;;  %v1430_v11 = vpop.f32.mrf.mxu1  ;;  %v1402_v56 = vadd.f32 %v1401_v46, %v7354_v39 }
 0x14c   :  { %v1486_v47 = vadd.f32 %v1485_v8, %v1457_v43  ;;  %v1431_v15 = vadd.f32 %v1430_v11, %v1402_v56  ;;  %2111 = vmatmul.bf16.gmra.mxu0 %v7089_v60  ;;  %v7418_v60 = vld [vmem:[%s8324_s7 + $0x38] sm:$0xff]  ;;  %v8378_v11 = vld [vmem:[#allocation14_spill] sm:$0xff] }
 0x14d   :  { %2140 = vmatmul.bf16.gmra.mxu1 %v7091_v61  ;;  %8370 = vst [vmem:[#allocation26_spill] sm:$0xff] %v7418_v60  ;;  %2914 = vmatpush.msra.mxu3 %v7418_v60  ;;  %v8379_v56 = vld [vmem:[#allocation15_spill] sm:$0xff] }
 0x14e   :  { %v1501_v18 = vadd.f32 %v1486_v47, %v7347_v55  ;;  %2169 = vmatmul.bf16.gmra.mxu2 %v7093_v62  ;;  %2777 = vmatpush.msra.mxu1 %v7418_v60  ;;  %v8380_v47 = vld [vmem:[#allocation16_spill] sm:$0xff] }
 0x14f   :  { %2519 = vmatmul.bf16.gmra.mxu3 %v7095_v63 }
 0x150   :  { %v7412_v48 = vadd.f32 %v7392_v36, %v1501_v18 }
 0x151   :  { %v1459_v21 = vpop.f32.mrf.mxu2  ;;  %v1403_v39 = vpop.f32.mrf.mxu0 }
 0x152   :  { %8369 = vst [vmem:[#allocation25_spill] sm:$0xff] %v7412_v48  ;;  %v1488_v49 = vpop.f32.mrf.mxu3  ;;  %v1460_v50 = vadd.f32 %v1459_v21, %v1431_v15  ;;  %v1432_v1 = vpop.f32.mrf.mxu1  ;;  %v1404_v57 = vadd.f32 %v1403_v39, %v7359_v3  ;;  %v8381_v15 = vld [vmem:[#allocation17_spill] sm:$0xff] }
 0x153   :  { %v7497_v39 = vld [vmem:[%s8324_s7 + $0x20] sm:$0xff] }
 0x154   :  { %v1489_v51 = vadd.f32 %v1488_v49, %v1460_v50  ;;  %v1433_v61 = vadd.f32 %v1432_v1, %v1404_v57  ;;  %8382 = vst [vmem:[#allocation14_spill] sm:$0xff] %v7497_v39  ;;  %v7502_v1 = vld [vmem:[%s8324_s7 + $0x18] sm:$0xff]  ;;  %v7513_v57 = vld [vmem:[%s8324_s7 + $0x10] sm:$0xff] }
 0x155   :  { %8383 = vst [vmem:[#allocation15_spill] sm:$0xff] %v7502_v1  ;;  %2706 = vmatpush.msra.mxu2 %v7502_v1  ;;  %2980 = vmatpush.msra.mxu0 %v7502_v1 }
 0x156   :  { %v1502_v62 = vadd.f32 %v1489_v51, %v7356_v20  ;;  %8384 = vst [vmem:[#allocation16_spill] sm:$0xff] %v7513_v57 }
 0x157   :  { %2707 = vmatpush.msra.mxu2 %v7513_v57  ;;  %2981 = vmatpush.msra.mxu0 %v7513_v57 }
 0x158   :  { %v7424_v63 = vadd.f32 %v7392_v36, %v1502_v62 }
 0x159   :  { %v1461_v55 = vpop.f32.mrf.mxu2  ;;  %v1406_v3 = vpop.f32.mrf.mxu0 }
 0x15a   :  { %8371 = vst [vmem:[#allocation27_spill] sm:$0xff] %v7424_v63  ;;  %v1490_v19 = vpop.f32.mrf.mxu3  ;;  %v1462_v38 = vadd.f32 %v1461_v55, %v1433_v61  ;;  %v1435_v52 = vpop.f32.mrf.mxu1  ;;  %v1407_v27 = vadd.f32 %v1406_v3, %v7368_v16  ;;  %v8387_v3 = vld [vmem:[#allocation18_spill] sm:$0xff] }
 0x15c   :  { %v1491_v44 = vadd.f32 %v1490_v19, %v1462_v38  ;;  %v1436_v17 = vadd.f32 %v1435_v52, %v1407_v27  ;;  %2116 = vmatmul.bf16.gmra.mxu0 %v7131_v23  ;;  %v7439_v23 = vld [vmem:[%s8324_s7 + $0x30] sm:$0xff]  ;;  %v7529_v19 = vld [vmem:[%s8324_s7 + $0x8] sm:$0xff]  ;;  %v7538_v38 = vld [vmem:[%s8324_s7] sm:$0xff] }
 0x15d   :  { %2145 = vmatmul.bf16.gmra.mxu1 %v7133_v24  ;;  %8373 = vst [vmem:[#allocation29_spill] sm:$0xff] %v7439_v23  ;;  %2915 = vmatpush.msra.mxu3 %v7439_v23  ;;  %v8388_v52 = vld [vmem:[#allocation19_spill] sm:$0xff]  ;;  %v8389_v27 = vld [vmem:[#allocation20_spill] sm:$0xff] }
 0x15e   :  { %v1503_v33 = vadd.f32 %v1491_v44, %v7361_v4  ;;  %2174 = vmatmul.bf16.gmra.mxu2 %v7135_v25  ;;  %2778 = vmatpush.msra.mxu1 %v7439_v23  ;;  %8385 = vst [vmem:[#allocation17_spill] sm:$0xff] %v7529_v19  ;;  %v8390_v44 = vld [vmem:[#allocation21_spill] sm:$0xff] }
 0x15f   :  { %2524 = vmatmul.bf16.gmra.mxu3 %v7137_v30  ;;  %2708 = vmatpush.msra.mxu2 %v7529_v19  ;;  %8386 = vst [vmem:[#allocation32_spill] sm:$0xff] %v7538_v38 }
 0x160   :  { %v7433_v20 = vadd.f32 %v7392_v36, %v1503_v33  ;;  %2982 = vmatpush.msra.mxu0 %v7529_v19 }
 0x161   :  { %v1464_v28 = vpop.f32.mrf.mxu2  ;;  %v1408_v58 = vpop.f32.mrf.mxu0  ;;  %2709 = vmatpush.msra.mxu2 %v7538_v38 }
 0x162   :  { %8372 = vst [vmem:[#allocation28_spill] sm:$0xff] %v7433_v20  ;;  %v1493_v54 = vpop.f32.mrf.mxu3  ;;  %v1465_v22 = vadd.f32 %v1464_v28, %v1436_v17  ;;  %v1437_v16 = vpop.f32.mrf.mxu1  ;;  %v1409_v34 = vadd.f32 %v1408_v58, %v7373_v53  ;;  %2983 = vmatpush.msra.mxu0 %v7538_v38 }
 0x164   :  { %v1494_v29 = vadd.f32 %v1493_v54, %v1465_v22  ;;  %v1438_v24 = vadd.f32 %v1437_v16, %v1409_v34 }
 0x166   :  { %v1504_v25 = vadd.f32 %v1494_v29, %v7370_v45  ;;  %v8375_v45 = vld [vmem:[#allocation13_spill] sm:$0xff] }
 0x168   :  { %v7445_v30 = vadd.f32 %v7392_v36, %v1504_v25 }
 0x169   :  { %v1466_v4 = vpop.f32.mrf.mxu2  ;;  %v7447_v53 = vpop.f32.mrf.mxu0 }
 0x16a   :  { %8374 = vst [vmem:[#allocation30_spill] sm:$0xff] %v7445_v30  ;;  %v1495_v35 = vpop.f32.mrf.mxu3  ;;  %v1467_v2 = vadd.f32 %v1466_v4, %v1438_v24  ;;  %v7449_v40 = vpop.f32.mrf.mxu1 }
 0x16c   :  { %v1496_v5 = vadd.f32 %v1495_v35, %v1467_v2  ;;  %2538 = vmatmul.bf16.vlgmr.msrb.gmra.mxu0 %v7173_v59  ;;  %v7470_v59 = vld [vmem:[%s8324_s7 + $0x28] sm:$0xff] }
 0x16d   :  { %2567 = vmatmul.bf16.vlgmr.msrb.gmra.mxu1 %v7175_v0  ;;  %8377 = vst [vmem:[#allocation31_spill] sm:$0xff] %v7470_v59  ;;  %2916 = vmatpush.msra.mxu3 %v7470_v59 }
 0x16e   :  { %v1505_v41 = vadd.f32 %v1496_v5, %v7375_v26  ;;  %2596 = vmatmul.bf16.vlgmr.msrb.gmra.mxu2 %v7177_v7  ;;  %2779 = vmatpush.msra.mxu1 %v7470_v59 }
 0x16f   :  { %2625 = vmatmul.bf16.vlgmr.msrb.gmra.mxu3 %v8375_v45  ;;  %2848 = vmatpush.msrb.mxu2 %v7502_v1 }
 0x170   :  { %v7457_v6 = vadd.f32 %v7392_v36, %v1505_v41  ;;  %2780 = vmatpush.msra.mxu1 %v7497_v39  ;;  %2917 = vmatpush.msra.mxu3 %v7497_v39 }
 0x171   :  { %v7459_v12 = vpop.f32.mrf.mxu2  ;;  %v7463_v9 = vpop.f32.mrf.mxu0  ;;  %3244 = vmatpush.msrb.mxu0 %v7502_v1  ;;  %2849 = vmatpush.msrb.mxu2 %v7513_v57 }
 0x172   :  { %8376 = vst [vmem:[#allocation13_spill] sm:$0xff] %v7457_v6  ;;  %v7461_v8 = vpop.f32.mrf.mxu3  ;;  %v7465_v43 = vpop.f32.mrf.mxu1  ;;  %3046 = vmatpush.msrb.mxu1 %v7418_v60  ;;  %3178 = vmatpush.msrb.mxu3 %v7418_v60 }
 0x173   :  { %3245 = vmatpush.msrb.mxu0 %v7513_v57  ;;  %2850 = vmatpush.msrb.mxu2 %v7529_v19 }
 0x174   :  { %3047 = vmatpush.msrb.mxu1 %v7439_v23  ;;  %3179 = vmatpush.msrb.mxu3 %v7439_v23 }
 0x175   :  { %3246 = vmatpush.msrb.mxu0 %v7529_v19  ;;  %2851 = vmatpush.msrb.mxu2 %v7538_v38 }
 0x176   :  { %3048 = vmatpush.msrb.mxu1 %v7470_v59  ;;  %3180 = vmatpush.msrb.mxu3 %v7470_v59 }
 0x177   :  { %3247 = vmatpush.msrb.mxu0 %v7538_v38 }
 0x178   :  { %3049 = vmatpush.msrb.mxu1 %v7497_v39  ;;  %3181 = vmatpush.msrb.mxu3 %v7497_v39 }
 0x179   :  { %v7474_v0 = vpop.f32.mrf.mxu2  ;;  %v7478_v26 = vpop.f32.mrf.mxu0 }
 0x17a   :  { %v7476_v7 = vpop.f32.mrf.mxu3  ;;  %v7480_v46 = vpop.f32.mrf.mxu1 }
 0x17c   :  { %2543 = vmatmul.bf16.gmra.mxu0 %v8378_v11 }
 0x17d   :  { %2572 = vmatmul.bf16.gmra.mxu1 %v8379_v56 }
 0x17e   :  { %2601 = vmatmul.bf16.gmra.mxu2 %v8380_v47 }
 0x17f   :  { %2630 = vmatmul.bf16.gmra.mxu3 %v8381_v15 }
 0x181   :  { %v7486_v18 = vpop.f32.mrf.mxu2  ;;  %v7490_v49 = vpop.f32.mrf.mxu0 }
 0x182   :  { %v7488_v21 = vpop.f32.mrf.mxu3  ;;  %v7492_v50 = vpop.f32.mrf.mxu1 }
 0x189   :  { %v7516_v51 = vpop.f32.mrf.mxu2  ;;  %v7522_v62 = vpop.f32.mrf.mxu0 }
 0x18a   :  { %v7518_v61 = vpop.f32.mrf.mxu3  ;;  %v7524_v55 = vpop.f32.mrf.mxu1 }
 0x18c   :  { %2548 = vmatmul.bf16.gmra.mxu0 %v8387_v3 }
 0x18d   :  { %2577 = vmatmul.bf16.gmra.mxu1 %v8388_v52 }
 0x18e   :  { %2606 = vmatmul.bf16.gmra.mxu2 %v8389_v27 }
 0x18f   :  { %2635 = vmatmul.bf16.gmra.mxu3 %v8390_v44 }
 0x191   :  { %v2054_v17 = vpop.f32.mrf.mxu2  ;;  %v1710_v28 = vpop.f32.mrf.mxu0 }
 0x192   :  { %v2083_v33 = vpop.f32.mrf.mxu3  ;;  %v2027_v54 = vpop.f32.mrf.mxu1 }
 0x193   :  { %v2028_v32 = vadd.f32 %v2027_v54, %v1710_v28 }
 0x199   :  { %v2056_v22 = vpop.f32.mrf.mxu2  ;;  %v1713_v16 = vpop.f32.mrf.mxu0 }
 0x19a   :  { %v2085_v58 = vpop.f32.mrf.mxu3  ;;  %v2030_v34 = vpop.f32.mrf.mxu1 }
 0x19c   :  { %2553 = vmatmul.bf16.gmra.mxu0 %v7303_v13  ;;  %v6050_v13 = vld [vmem:[%s8326_s9 + $0x8] sm:$0xff] }
 0x19d   :  { %2582 = vmatmul.bf16.gmra.mxu1 %v7305_v14 }
 0x19e   :  { %2611 = vmatmul.bf16.gmra.mxu2 %v7307_v37  ;;  %v2674_v37 = vld [vmem:[%s8326_s9] sm:$0xff] }
 0x19f   :  { %2640 = vmatmul.bf16.gmra.mxu3 %v7309_v31 }
 0x1a1   :  { %v2059_v29 = vpop.f32.mrf.mxu2  ;;  %v1715_v25 = vpop.f32.mrf.mxu0 }
 0x1a2   :  { %v2088_v24 = vpop.f32.mrf.mxu3  ;;  %v2032_v4 = vpop.f32.mrf.mxu1 }
 0x1a9   :  { %v2061_v35 = vpop.f32.mrf.mxu2  ;;  %v7561_v5 = vpop.f32.mrf.mxu0 }
 0x1aa   :  { %v2090_v2 = vpop.f32.mrf.mxu3  ;;  %v7563_v41 = vpop.f32.mrf.mxu1 }
 0x1ad   :  { %6058 = vmatmul.msk.f32.vlgmr.msra.gmra.mxu1 %vm2690_vm0, %v6050_v13 }
 0x1ae   :  { %6056 = vmatmul.msk.f32.vlgmr.msra.gmra.mxu2 %vm2690_vm0, %v2674_v37  ;;  %3310 = vmatpush.msra.mxu1 %v7418_v60  ;;  %v2026_v37 = vadd.f32 %v7524_v55, %v7522_v62  ;;  %v2031_v55 = vadd.f32 %v2030_v34, %v1713_v16 }
 0x1af   :  { %3112 = vmatpush.msra.mxu2 %v7502_v1 }
 0x1b0   :  { %3311 = vmatpush.msra.mxu1 %v7439_v23  ;;  %v2055_v6 = vadd.f32 %v2054_v17, %v2026_v37  ;;  %v2060_v17 = vadd.f32 %v2059_v29, %v2031_v55 }
 0x1b1   :  { %v7576_v31 = vpop.f32.mrf.mxu2  ;;  %3113 = vmatpush.msra.mxu2 %v7513_v57  ;;  %v7579_v45 = vpop.f32.mrf.mxu0 }
 0x1b2   :  { %v2510_v14 = vpop.f32.mrf.mxu3  ;;  %v7581_v11 = vpop.f32.mrf.mxu1  ;;  %3312 = vmatpush.msra.mxu1 %v7470_v59  ;;  %v2084_v30 = vadd.f32 %v2083_v33, %v2055_v6  ;;  %v2089_v37 = vadd.f32 %v2088_v24, %v2060_v17 }
 0x1b3   :  { %3114 = vmatpush.msra.mxu2 %v7529_v19  ;;  %v2057_v19 = vadd.f32 %v2056_v22, %v2028_v32 }
 0x1b4   :  { %3313 = vmatpush.msra.mxu1 %v7497_v39 }
 0x1b5   :  { %3115 = vmatpush.msra.mxu2 %v7538_v38  ;;  %v2086_v1 = vadd.f32 %v2085_v58, %v2057_v19 }
 0x1b9   :  { %v7587_v56 = vpop.f32.mrf.mxu2  ;;  %v7591_v15 = vpop.f32.mrf.mxu0 }
 0x1ba   :  { %v7589_v47 = vpop.f32.mrf.mxu3  ;;  %v7593_v3 = vpop.f32.mrf.mxu1 }
 0x1c1   :  { %v7595_v52 = vpop.f32.mrf.mxu2  ;;  %v7599_v44 = vpop.f32.mrf.mxu0 }
 0x1c2   :  { %v7597_v27 = vpop.f32.mrf.mxu3  ;;  %v7601_v13 = vpop.f32.mrf.mxu1 }
 0x1c9   :  { %v7605_v20 = vpop.f32.mrf.mxu2  ;;  %v2112_v48 = vpop.f32.mrf.mxu0 }
 0x1ca   :  { %v7607_v63 = vpop.f32.mrf.mxu3  ;;  %v2141_v42 = vpop.f32.mrf.mxu1  ;;  %v2113_v38 = vadd.f32 %v2112_v48, %v2084_v30  ;;  %v2033_v48 = vadd.f32 %v2032_v4, %v1715_v25 }
 0x1cc   :  { %v7609_v57 = vadd.f32 %v2141_v42, %v2113_v38  ;;  %v2062_v19 = vadd.f32 %v2061_v35, %v2033_v48 }
 0x1ce   :  { %v2091_v54 = vadd.f32 %v2090_v2, %v2062_v19 }
 0x1d1   :  { %v7611_v39 = vpop.f32.mrf.mxu2  ;;  %v2114_v23 = vpop.f32.mrf.mxu0 }
 0x1d2   :  { %v7613_v59 = vpop.f32.mrf.mxu3  ;;  %v2143_v62 = vpop.f32.mrf.mxu1  ;;  %v2115_v6 = vadd.f32 %v2114_v23, %v2086_v1 }
 0x1d4   :  { %v2144_v33 = vadd.f32 %v2143_v62, %v2115_v6 }
 0x1d9   :  { %v2172_v60 = vpop.f32.mrf.mxu2  ;;  %v2117_v32 = vpop.f32.mrf.mxu0 }
 0x1da   :  { %v7615_v36 = vpop.f32.mrf.mxu3  ;;  %v7617_v28 = vadd.f32 %v2172_v60, %v2144_v33  ;;  %v2146_v42 = vpop.f32.mrf.mxu1  ;;  %v2118_v30 = vadd.f32 %v2117_v32, %v2089_v37  ;;  %v2016_v60 = vadd.f32 %v7449_v40, %v7447_v53  ;;  %v2018_v33 = vadd.f32 %v7465_v43, %v7463_v9  ;;  %v7642_v9 = vld [vmem:[%s8325_s8 + $0x1] ss:$0 sm:$0xff] }
 0x1dc   :  { %v2147_v38 = vadd.f32 %v2146_v42, %v2118_v30  ;;  %v2045_v24 = vadd.f32 %v7459_v12, %v2016_v60  ;;  %v2047_v53 = vadd.f32 %v7474_v0, %v2018_v33  ;;  %v2021_v0 = vadd.f32 %v7480_v46, %v7478_v26 }
 0x1de   :  { %v2074_v6 = vadd.f32 %v7461_v8, %v2045_v24 }
 0x1e0   :  { %v2103_v37 = vadd.f32 %v7561_v5, %v2074_v6 }
 0x1e1   :  { %v2175_v22 = vpop.f32.mrf.mxu2  ;;  %v2119_v23 = vpop.f32.mrf.mxu0 }
 0x1e2   :  { %v7619_v58 = vpop.f32.mrf.mxu3  ;;  %v7621_v16 = vadd.f32 %v2175_v22, %v2147_v38  ;;  %v2148_v1 = vpop.f32.mrf.mxu1  ;;  %v2120_v34 = vadd.f32 %v2119_v23, %v2091_v54  ;;  %v2132_v32 = vadd.f32 %v7563_v41, %v2103_v37  ;;  %v2050_v54 = vadd.f32 %v7486_v18, %v2021_v0 }
 0x1e3   :  { %v2023_v18 = vadd.f32 %v7492_v50, %v7490_v49 }
 0x1e4   :  { %v2149_v29 = vadd.f32 %v2148_v1, %v2120_v34  ;;  %v2161_v8 = vadd.f32 %v7576_v31, %v2132_v32  ;;  %v2079_v60 = vadd.f32 %v7488_v21, %v2050_v54 }
 0x1e6   :  { %v2108_v24 = vadd.f32 %v7591_v15, %v2079_v60 }
 0x1e9   :  { %v2177_v62 = vpop.f32.mrf.mxu2  ;;  %v2539_v35 = vpop.f32.mrf.mxu0 }
 0x1ea   :  { %v7626_v25 = vpop.f32.mrf.mxu3  ;;  %v7628_v4 = vadd.f32 %v2177_v62, %v2149_v29  ;;  %v2568_v2 = vpop.f32.mrf.mxu1  ;;  %v2540_v55 = vadd.f32 %v2539_v35, %v2510_v14  ;;  %v2076_v14 = vadd.f32 %v7476_v7, %v2047_v53  ;;  %v2052_v35 = vadd.f32 %v7516_v51, %v2023_v18 }
 0x1ec   :  { %v2569_v17 = vadd.f32 %v2568_v2, %v2540_v55  ;;  %v2105_v5 = vadd.f32 %v7579_v45, %v2076_v14  ;;  %v2081_v33 = vadd.f32 %v7518_v61, %v2052_v35 }
 0x1ee   :  { %v2134_v22 = vadd.f32 %v7581_v11, %v2105_v5  ;;  %v2110_v51 = vadd.f32 %v7599_v44, %v2081_v33  ;;  %v2171_v5 = vadd.f32 %v7611_v39, %v7609_v57 }
 0x1f0   :  { %v2163_v26 = vadd.f32 %v7587_v56, %v2134_v22 }
 0x1f1   :  { %v2597_v40 = vpop.f32.mrf.mxu2  ;;  %v2541_v48 = vpop.f32.mrf.mxu0 }
 0x1f2   :  { %v2626_v12 = vpop.f32.mrf.mxu3  ;;  %v2598_v42 = vadd.f32 %v2597_v40, %v2569_v17  ;;  %v2570_v30 = vpop.f32.mrf.mxu1  ;;  %v2542_v19 = vadd.f32 %v2541_v48, %v7589_v47 }
 0x1f4   :  { %v2627_v38 = vadd.f32 %v2626_v12, %v2598_v42  ;;  %v2571_v43 = vadd.f32 %v2570_v30, %v2542_v19 }
 0x1f6   :  { %v2646_v41 = vadd.f32 %v2627_v38, %v2161_v8 }
 0x1f8   :  { %v7649_v47 = vadd.f32 %v7642_v9, %v2646_v41 }
 0x1f9   :  { %v2599_v7 = vpop.f32.mrf.mxu2  ;;  %v2544_v1 = vpop.f32.mrf.mxu0 }
 0x1fa   :  { %v2628_v31 = vpop.f32.mrf.mxu3  ;;  %v2600_v23 = vadd.f32 %v2599_v7, %v2571_v43  ;;  %v2573_v34 = vpop.f32.mrf.mxu1  ;;  %v2545_v29 = vadd.f32 %v2544_v1, %v7597_v27  ;;  %v2137_v27 = vadd.f32 %v7593_v3, %v2108_v24  ;;  %v2139_v3 = vadd.f32 %v7601_v13, %v2110_v51 }
 0x1fc   :  { %v2629_v46 = vadd.f32 %v2628_v31, %v2600_v23  ;;  %v2574_v45 = vadd.f32 %v2573_v34, %v2545_v29  ;;  %v2166_v49 = vadd.f32 %v7595_v52, %v2137_v27  ;;  %v2168_v61 = vadd.f32 %v7605_v20, %v2139_v3 }
 0x1fe   :  { %v2647_v62 = vadd.f32 %v2629_v46, %v2163_v26 }
 0x200   :  { %v7660_v11 = vadd.f32 %v7642_v9, %v2647_v62 }
 0x201   :  { %v2602_v2 = vpop.f32.mrf.mxu2  ;;  %v2546_v6 = vpop.f32.mrf.mxu0 }
 0x202   :  { %v2631_v55 = vpop.f32.mrf.mxu3  ;;  %v2603_v21 = vadd.f32 %v2602_v2, %v2574_v45  ;;  %v2575_v56 = vpop.f32.mrf.mxu1  ;;  %v2547_v17 = vadd.f32 %v2546_v6, %v7607_v63 }
 0x204   :  { %v2632_v50 = vadd.f32 %v2631_v55, %v2603_v21  ;;  %v2576_v15 = vadd.f32 %v2575_v56, %v2547_v17  ;;  %v8391_v17 = vld [vmem:[#allocation22_spill] sm:$0xff] }
 0x205   :  { %v1509_v33 = vadd.f32 %v8391_v17, %v7384_v10  ;;  %v2675_v10 = vld [vmem:[%s8327_s10] sm:$0xff] }
 0x206   :  { %v2648_v37 = vadd.f32 %v2632_v50, %v2166_v49 }
 0x208   :  { %v7668_v53 = vadd.f32 %v7642_v9, %v2648_v37 }
 0x209   :  { %v2604_v40 = vpop.f32.mrf.mxu2  ;;  %v2549_v42 = vpop.f32.mrf.mxu0 }
 0x20a   :  { %v2633_v12 = vpop.f32.mrf.mxu3  ;;  %v2605_v32 = vadd.f32 %v2604_v40, %v2576_v15  ;;  %v2578_v48 = vpop.f32.mrf.mxu1  ;;  %v2550_v63 = vadd.f32 %v2549_v42, %v7613_v59 }
 0x20c   :  { %v2634_v52 = vadd.f32 %v2633_v12, %v2605_v32  ;;  %v2579_v30 = vadd.f32 %v2578_v48, %v2550_v63 }
 0x20e   :  { %v2649_v19 = vadd.f32 %v2634_v52, %v2168_v61 }
 0x210   :  { %v7674_v44 = vadd.f32 %v7642_v9, %v2649_v19 }
 0x211   :  { %v2607_v14 = vpop.f32.mrf.mxu2  ;;  %v2551_v43 = vpop.f32.mrf.mxu0 }
 0x212   :  { %v2636_v8 = vpop.f32.mrf.mxu3  ;;  %v2608_v38 = vadd.f32 %v2607_v14, %v2579_v30  ;;  %v2580_v0 = vpop.f32.mrf.mxu1  ;;  %v2552_v13 = vadd.f32 %v2551_v43, %v7615_v36 }
 0x214   :  { %v2637_v41 = vadd.f32 %v2636_v8, %v2608_v38  ;;  %v2581_v59 = vadd.f32 %v2580_v0, %v2552_v13 }
 0x216   :  { %v2650_v54 = vadd.f32 %v2637_v41, %v2171_v5 }
 0x218   :  { %v7680_v20 = vadd.f32 %v7642_v9, %v2650_v54 }
 0x219   :  { %v2609_v7 = vpop.f32.mrf.mxu2  ;;  %v2554_v23 = vpop.f32.mrf.mxu0 }
 0x21a   :  { %v2638_v31 = vpop.f32.mrf.mxu3  ;;  %v2610_v22 = vadd.f32 %v2609_v7, %v2581_v59  ;;  %v2555_v1 = vadd.f32 %v2554_v23, %v7619_v58  ;;  %v2583_v29 = vpop.f32.mrf.mxu1 }
 0x21c   :  { %v2639_v34 = vadd.f32 %v2638_v31, %v2610_v22  ;;  %v2584_v60 = vadd.f32 %v2583_v29, %v2555_v1 }
 0x21e   :  { %v2651_v36 = vadd.f32 %v2639_v34, %v7617_v28 }
 0x220   :  { %v7685_v26 = vadd.f32 %v7642_v9, %v2651_v36 }
 0x221   :  { %v2612_v39 = vpop.f32.mrf.mxu2  ;;  %v2556_v45 = vpop.f32.mrf.mxu0 }
 0x222   :  { %v2641_v57 = vpop.f32.mrf.mxu3  ;;  %v2613_v46 = vadd.f32 %v2612_v39, %v2584_v60  ;;  %v2557_v24 = vadd.f32 %v2556_v45, %v7626_v25  ;;  %v2585_v35 = vpop.f32.mrf.mxu1 }
 0x224   :  { %v2642_v18 = vadd.f32 %v2641_v57, %v2613_v46  ;;  %v2586_v2 = vadd.f32 %v2585_v35, %v2557_v24 }
 0x226   :  { %v2652_v62 = vadd.f32 %v2642_v18, %v7621_v16 }
 0x228   :  { %v7690_v58 = vadd.f32 %v7642_v9, %v2652_v62 }
 0x229   :  { %v2614_v55 = vpop.f32.mrf.mxu2 }
 0x22a   :  { %v2615_v27 = vadd.f32 %v2614_v55, %v2586_v2  ;;  %v2643_v28 = vpop.f32.mrf.mxu3  ;;  %v2782_v56 = vpop.f32.mrf.mxu1 }
 0x22c   :  { %v2644_v21 = vadd.f32 %v2643_v28, %v2615_v27  ;;  %v8392_v28 = vld [vmem:[#allocation26_spill] sm:$0xff] }
 0x22e   :  { %v2653_v6 = vadd.f32 %v2644_v21, %v7628_v4  ;;  %v6051_v4 = vld [vmem:[%s8327_s10 + $0x8] sm:$0xff] }
 0x22f   :  { %v8393_v21 = vld [vmem:[#allocation29_spill] sm:$0xff] }
 0x230   :  { %v2664_v49 = vadd.f32 %v7642_v9, %v2653_v6  ;;  %v8394_v6 = vld [vmem:[#allocation31_spill] sm:$0xff] }
 0x231   :  { %v2711_v25 = vpop.f32.mrf.mxu2 }
 0x232   :  { %v2714_v50 = vadd.f32 %v2711_v25, %v1509_v33  ;;  %v2785_v16 = vadd.f32 %v2782_v56, %v2664_v49  ;;  %v8395_v56 = vld [vmem:[#allocation14_spill] sm:$0xff] }
 0x234   :  { %6410 = vtanh.f32 %v2785_v16  ;;  %v6059_v9 = vmul.f32 -1.442695, %v2785_v16  ;;  %v6057_v38 = vmul.f32 -1.442695, %v2714_v50  ;;  %v8396_v16 = vld [vmem:[#allocation15_spill] sm:$0xff] }
 0x235   :  { %6412 = vtanh.f32 %v2714_v50 }
 0x236   :  { %6414 = vpow2.f32 %v6059_v9 }
 0x23a   :  { %v6411_v15 = vpop.eup %6410 }
 0x23b   :  { %v6413_v51 = vpop.eup %6412  ;;  %2812 = vrot.lane.b32.xlu0 %v6411_v15, %s6752_s16  ;;  %v8397_v15 = vld [vmem:[#allocation16_spill] sm:$0xff] }
 0x23c   :  { %2741 = vrot.lane.b32.xlu2 %v6413_v51, %s6752_s16  ;;  %v6415_v37 = vpop.eup %6414  ;;  %v8398_v51 = vld [vmem:[#allocation17_spill] sm:$0xff] }
 0x23d   :  { %v2789_v40 = vadd.f32 1.0, %v6415_v37 }
 0x23f   :  { %6416 = vrcp.f32 %v2789_v40  ;;  %v2801_v63 = vand.u32 2147483648, %v2789_v40  ;;  %vm2795_vm2 = vweird.f32 %v2789_v40  ;;  %v2799_v61 = vand.u32 2147483647, %v2789_v40 }
 0x240   :  { %6418 = vpow2.f32 %v6057_v38  ;;  %v8400_v38 = vld [vmem:[#allocation23_spill] sm:$0xff] }
 0x241   :  { %v2802_v30 = vor.u32 1.1754944e-38, %v2801_v63  ;;  %vm2800_vm4 = vcmp.eq.f32.partialorder %v2799_v61, 8.507059e+37 }
 0x243   :  { %2807 = vrot.lane.b32.xlu0 %v6051_v4, %s6755_s25  ;;  %v8399_v4 = vld [vmem:[#allocation32_spill] sm:$0xff] }
 0x245   :  { %v6417_v12 = vpop.eup %6416 }
 0x246   :  { %v2791_v3 = vmul.f32 %v6417_v12, %v2789_v40  ;;  %vm2796_vm1 = vweird.f32 %v6417_v12  ;;  %v6419_v43 = vpop.eup %6418 }
 0x247   :  { %vm2797_vm3 = vmor %vm2795_vm2, %vm2796_vm1  ;;  %v2718_v0 = vadd.f32 1.0, %v6419_v43 }
 0x248   :  { %v2792_v32 = vsub.f32 1.0, %v2791_v3 }
 0x249   :  { %6420 = vrcp.f32 %v2718_v0  ;;  %v2730_v34 = vand.u32 2147483648, %v2718_v0  ;;  %vm2724_vm6 = vweird.f32 %v2718_v0  ;;  %v2728_v29 = vand.u32 2147483647, %v2718_v0 }
 0x24a   :  { %v2793_v42 = vmul.f32 %v6417_v12, %v2792_v32 }
 0x24b   :  { %2736 = vrot.lane.b32.xlu0 %v2675_v10, %s6755_s25  ;;  %v2731_v39 = vor.u32 1.1754944e-38, %v2730_v34  ;;  %vm2729_vm8 = vcmp.eq.f32.partialorder %v2728_v29, 8.507059e+37 }
 0x24c   :  { %v2794_v48 = vadd.f32 %v6417_v12, %v2793_v42 }
 0x24e   :  { %v2798_v52 = vsel %vm2797_vm3, %v6417_v12, %v2794_v48 }
 0x24f   :  { %v2803_v14 = vsel %vm2800_vm4, %v2802_v30, %v2798_v52  ;;  %v6421_v13 = vpop.eup %6420 }
 0x250   :  { %v2720_v5 = vmul.f32 %v6421_v13, %v2718_v0  ;;  %vm2725_vm5 = vweird.f32 %v6421_v13 }
 0x251   :  { %vm2726_vm7 = vmor %vm2724_vm6, %vm2725_vm5 }
 0x252   :  { %v2721_v54 = vsub.f32 1.0, %v2720_v5 }
 0x254   :  { %v2722_v22 = vmul.f32 %v6421_v13, %v2721_v54 }
 0x256   :  { %v2723_v23 = vadd.f32 %v6421_v13, %v2722_v22 }
 0x258   :  { %v2727_v60 = vsel %vm2726_vm7, %v6421_v13, %v2723_v23 }
 0x259   :  { %v2732_v57 = vsel %vm2729_vm8, %v2731_v39, %v2727_v60 }
 0x296   :  { %v2742_v36 = vpop.permute.xlu2 %2741 }
 0x297   :  { %v2744_v46 = vmul.f32 %v2742_v36, %v2732_v57 }
 0x2ad   :  { %v2813_v19 = vpop.permute.xlu0 %2812 }
 0x2ae   :  { %v2815_v8 = vmul.f32 %v2813_v19, %v2803_v14 }
 0x2b0   :  { %2817 = vrot.lane.b32.xlu1 %v2815_v8, %s6755_s25 }
 0x2b5   :  { %v2808_v41 = vpop.permute.xlu0 %2807 }
 0x2b6   :  { %v2810_v59 = vmul.f32 %v2808_v41, %v2803_v14 }
 0x2bd   :  { %v2737_v24 = vpop.permute.xlu0 %2736 }
 0x2be   :  { %v2739_v62 = vmul.f32 %v2737_v24, %v2732_v57 }
 0x322   :  { %v2818_v7 = vpop.permute.xlu1 %2817 }
 0x323   :  { %v7707_v31 = vadd.f32 %v2818_v7, %v2810_v59 }
 0x325   :  { %6422 = vtanh.f32 %v7707_v31 }
 0x32b   :  { %v6423_v1 = vpop.eup %6422 }
 0x32c   :  { %2823 = vrot.lane.b32.xlu1 %v6423_v1, %s6752_s16 }
 0x334   :  { %2746 = vrot.lane.b32.xlu1 %v2744_v46, %s6755_s25 }
 0x39e   :  { %v2824_v45 = vpop.permute.xlu1 %2823 }
 0x39f   :  { %v2826_v18 = vmul.f32 %v2824_v45, %v2803_v14 }
 0x3a1   :  { %2828 = vrot.lane.b32.xlu2 %v2826_v18, %s6755_s25 }
 0x3a6   :  { %v2747_v35 = vpop.permute.xlu1 %2746 }
 0x3a7   :  { %v7713_v2 = vadd.f32 %v2747_v35, %v2739_v62 }
 0x3a9   :  { %6424 = vtanh.f32 %v7713_v2 }
 0x3af   :  { %v6425_v55 = vpop.eup %6424 }
 0x3b0   :  { %2752 = vrot.lane.b32.xlu2 %v6425_v55, %s6752_s16 }
 0x3fb   :  { %v2829_v27 = vpop.permute.xlu2 %2828 }
 0x3fc   :  { %2832 = vst.msk [vmem:[#allocation3 + $0x78] sm:$0xff] %vm2690_vm0, %v2829_v27  ;;  %6062 = vmatmul.msk.f32.vlgmr.msra.gmra.mxu3 %vm2690_vm0, %v2829_v27 }
 0x3fd   :  { %3442 = vmatpush.msra.mxu3 %v8392_v28 }
 0x3ff   :  { %3443 = vmatpush.msra.mxu3 %v8393_v21 }
 0x401   :  { %3444 = vmatpush.msra.mxu3 %v8394_v6 }
 0x403   :  { %3445 = vmatpush.msra.mxu3 %v8395_v56 }
 0x40a   :  { %v2753_v17 = vpop.permute.xlu2 %2752 }
 0x40b   :  { %v2755_v33 = vmul.f32 %v2753_v17, %v2732_v57 }
 0x40d   :  { %2757 = vrot.lane.b32.xlu0 %v2755_v33, %s6755_s25 }
 0x47f   :  { %v2919_v49 = vpop.f32.mrf.mxu3  ;;  %v2758_v25 = vpop.permute.xlu0 %2757 }
 0x480   :  { %v2922_v50 = vadd.f32 %v2919_v49, %v7690_v58  ;;  %2760 = vst.msk [vmem:[#allocation3] sm:$0xff] %vm2690_vm0, %v2758_v25  ;;  %6060 = vmatmul.msk.f32.vlgmr.msrb.gmra.mxu2 %vm2690_vm0, %v2758_v25 }
 0x481   :  { %3376 = vmatpush.msrb.mxu2 %v8396_v16 }
 0x482   :  { %6426 = vtanh.f32 %v2922_v50  ;;  %v6063_v9 = vmul.f32 -1.442695, %v2922_v50 }
 0x483   :  { %3377 = vmatpush.msrb.mxu2 %v8397_v15 }
 0x484   :  { %6428 = vpow2.f32 %v6063_v9 }
 0x485   :  { %3378 = vmatpush.msrb.mxu2 %v8398_v51 }
 0x487   :  { %3379 = vmatpush.msrb.mxu2 %v8399_v4 }
 0x488   :  { %v6427_v10 = vpop.eup %6426 }
 0x489   :  { %2945 = vrot.lane.b32.xlu1 %v6427_v10, %s6752_s16 }
 0x48a   :  { %v6429_v37 = vpop.eup %6428 }
 0x48b   :  { %v2926_v58 = vadd.f32 1.0, %v6429_v37 }
 0x48d   :  { %6430 = vrcp.f32 %v2926_v58  ;;  %v2938_v48 = vand.u32 2147483648, %v2926_v58  ;;  %vm2932_vm10 = vweird.f32 %v2926_v58  ;;  %v2936_v63 = vand.u32 2147483647, %v2926_v58 }
 0x48f   :  { %v2939_v52 = vor.u32 1.1754944e-38, %v2938_v48  ;;  %vm2937_vm12 = vcmp.eq.f32.partialorder %v2936_v63, 8.507059e+37 }
 0x493   :  { %v6431_v40 = vpop.eup %6430 }
 0x494   :  { %v2928_v12 = vmul.f32 %v6431_v40, %v2926_v58  ;;  %vm2933_vm9 = vweird.f32 %v6431_v40 }
 0x495   :  { %vm2934_vm11 = vmor %vm2932_vm10, %vm2933_vm9 }
 0x496   :  { %v2929_v3 = vsub.f32 1.0, %v2928_v12 }
 0x498   :  { %v2930_v32 = vmul.f32 %v6431_v40, %v2929_v3 }
 0x49a   :  { %v2931_v42 = vadd.f32 %v6431_v40, %v2930_v32 }
 0x49c   :  { %v2935_v61 = vsel %vm2934_vm11, %v6431_v40, %v2931_v42 }
 0x49d   :  { %v2940_v30 = vsel %vm2937_vm12, %v2939_v52, %v2935_v61 }
 0x49e   :  { %v2943_v5 = vmul.f32 %v2940_v30, %v7707_v31 }
 0x4fb   :  { %v2946_v19 = vpop.permute.xlu1 %2945 }
 0x4fc   :  { %v2948_v14 = vmul.f32 %v2946_v19, %v2940_v30 }
 0x4fe   :  { %2950 = vrot.lane.b32.xlu2 %v2948_v14, %s6755_s25  ;;  %v8401_v14 = vld [vmem:[#allocation24_spill] sm:$0xff] }
 0x503   :  { %v2853_v8 = vpop.f32.mrf.mxu2 }
 0x504   :  { %v2856_v43 = vadd.f32 %v2853_v8, %v8400_v38 }
 0x506   :  { %6432 = vtanh.f32 %v2856_v43  ;;  %v6061_v13 = vmul.f32 -1.442695, %v2856_v43 }
 0x508   :  { %6434 = vpow2.f32 %v6061_v13 }
 0x50c   :  { %v6433_v0 = vpop.eup %6432 }
 0x50d   :  { %2879 = vrot.lane.b32.xlu1 %v6433_v0, %s6752_s16 }
 0x50e   :  { %v6435_v54 = vpop.eup %6434 }
 0x50f   :  { %v2860_v7 = vadd.f32 1.0, %v6435_v54 }
 0x511   :  { %v2872_v36 = vand.u32 2147483648, %v2860_v7  ;;  %vm2866_vm14 = vweird.f32 %v2860_v7  ;;  %v2870_v31 = vand.u32 2147483647, %v2860_v7 }
 0x513   :  { %v2873_v57 = vor.u32 1.1754944e-38, %v2872_v36  ;;  %vm2871_vm1 = vcmp.eq.f32.partialorder %v2870_v31, 8.507059e+37 }
 0x558   :  { %v2951_v41 = vpop.permute.xlu2 %2950 }
 0x559   :  { %v7736_v59 = vadd.f32 %v2951_v41, %v2943_v5 }
 0x55b   :  { %6436 = vtanh.f32 %v7736_v59 }
 0x55c   :  { %6438 = vrcp.f32 %v2860_v7 }
 0x561   :  { %v6437_v22 = vpop.eup %6436 }
 0x562   :  { %2956 = vrot.lane.b32.xlu0 %v6437_v22, %s6752_s16  ;;  %v6439_v23 = vpop.eup %6438 }
 0x563   :  { %v2862_v1 = vmul.f32 %v6439_v23, %v2860_v7  ;;  %vm2867_vm13 = vweird.f32 %v6439_v23 }
 0x564   :  { %vm2868_vm15 = vmor %vm2866_vm14, %vm2867_vm13 }
 0x565   :  { %v2863_v34 = vsub.f32 1.0, %v2862_v1 }
 0x567   :  { %v2864_v29 = vmul.f32 %v6439_v23, %v2863_v34 }
 0x569   :  { %v2865_v60 = vadd.f32 %v6439_v23, %v2864_v29 }
 0x56b   :  { %v2869_v39 = vsel %vm2868_vm15, %v6439_v23, %v2865_v60 }
 0x56c   :  { %v2874_v45 = vsel %vm2871_vm1, %v2873_v57, %v2869_v39 }
 0x56d   :  { %v2877_v35 = vmul.f32 %v2874_v45, %v7713_v2 }
 0x57f   :  { %v2880_v46 = vpop.permute.xlu1 %2879 }
 0x580   :  { %v2882_v18 = vmul.f32 %v2880_v46, %v2874_v45 }
 0x582   :  { %2884 = vrot.lane.b32.xlu0 %v2882_v18, %s6755_s25 }
 0x5d4   :  { %v2957_v24 = vpop.permute.xlu0 %2956 }
 0x5d5   :  { %v2959_v62 = vmul.f32 %v2957_v24, %v2940_v30 }
 0x5d7   :  { %2961 = vrot.lane.b32.xlu2 %v2959_v62, %s6755_s25 }
 0x5f4   :  { %v2885_v55 = vpop.permute.xlu0 %2884 }
 0x5f5   :  { %v7743_v27 = vadd.f32 %v2885_v55, %v2877_v35 }
 0x5f7   :  { %6440 = vtanh.f32 %v7743_v27 }
 0x5fd   :  { %v6441_v17 = vpop.eup %6440 }
 0x5fe   :  { %2890 = vrot.lane.b32.xlu1 %v6441_v17, %s6752_s16 }
 0x631   :  { %v2962_v33 = vpop.permute.xlu2 %2961 }
 0x632   :  { %2964 = vst.msk [vmem:[#allocation3 + $0x70] sm:$0xff] %vm2690_vm0, %v2962_v33  ;;  %6066 = vmatmul.msk.f32.vlgmr.msrb.gmra.mxu1 %vm2690_vm0, %v2962_v33  ;;  %v6666_v33 = vld [vmem:[%s8324_s7 + $0x38] sm:$0xff] }
 0x633   :  { %3574 = vmatpush.msrb.mxu1 %v8392_v28 }
 0x635   :  { %3575 = vmatpush.msrb.mxu1 %v8393_v21 }
 0x637   :  { %3576 = vmatpush.msrb.mxu1 %v8394_v6 }
 0x639   :  { %3577 = vmatpush.msrb.mxu1 %v8395_v56 }
 0x670   :  { %v2891_v2 = vpop.permute.xlu1 %2890 }
 0x671   :  { %v2893_v49 = vmul.f32 %v2891_v2, %v2874_v45 }
 0x673   :  { %2895 = vrot.lane.b32.xlu2 %v2893_v49, %s6755_s25 }
 0x6af   :  { %v3051_v25 = vpop.f32.mrf.mxu1 }
 0x6b0   :  { %v3054_v50 = vadd.f32 %v3051_v25, %v7685_v26 }
 0x6b2   :  { %6442 = vtanh.f32 %v3054_v50  ;;  %v6067_v28 = vmul.f32 -1.442695, %v3054_v50 }
 0x6b4   :  { %6444 = vpow2.f32 %v6067_v28 }
 0x6b8   :  { %v6443_v10 = vpop.eup %6442 }
 0x6b9   :  { %3077 = vrot.lane.b32.xlu0 %v6443_v10, %s6752_s16 }
 0x6ba   :  { %v6445_v26 = vpop.eup %6444 }
 0x6bb   :  { %v3058_v21 = vadd.f32 1.0, %v6445_v26 }
 0x6bd   :  { %6446 = vrcp.f32 %v3058_v21  ;;  %v3070_v32 = vand.u32 2147483648, %v3058_v21  ;;  %vm3064_vm3 = vweird.f32 %v3058_v21  ;;  %v3068_v42 = vand.u32 2147483647, %v3058_v21 }
 0x6bf   :  { %v3071_v63 = vor.u32 1.1754944e-38, %v3070_v32  ;;  %vm3069_vm5 = vcmp.eq.f32.partialorder %v3068_v42, 8.507059e+37  ;;  %v8402_v42 = vld [vmem:[#allocation25_spill] sm:$0xff] }
 0x6c3   :  { %v6447_v37 = vpop.eup %6446 }
 0x6c4   :  { %v3060_v58 = vmul.f32 %v6447_v37, %v3058_v21  ;;  %vm3065_vm2 = vweird.f32 %v6447_v37 }
 0x6c5   :  { %vm3066_vm4 = vmor %vm3064_vm3, %vm3065_vm2 }
 0x6c6   :  { %v3061_v40 = vsub.f32 1.0, %v3060_v58 }
 0x6c8   :  { %v3062_v12 = vmul.f32 %v6447_v37, %v3061_v40 }
 0x6ca   :  { %v3063_v3 = vadd.f32 %v6447_v37, %v3062_v12 }
 0x6cc   :  { %v3067_v48 = vsel %vm3066_vm4, %v6447_v37, %v3063_v3 }
 0x6cd   :  { %v2896_v9 = vpop.permute.xlu2 %2895  ;;  %v3072_v61 = vsel %vm3069_vm5, %v3071_v63, %v3067_v48 }
 0x6ce   :  { %2898 = vst.msk [vmem:[#allocation3 + $0x8] sm:$0xff] %vm2690_vm0, %v2896_v9  ;;  %6064 = vmatmul.msk.f32.vlgmr.msra.gmra.mxu0 %vm2690_vm0, %v2896_v9  ;;  %v3075_v0 = vmul.f32 %v3072_v61, %v7736_v59 }
 0x6cf   :  { %3508 = vmatpush.msra.mxu0 %v8396_v16 }
 0x6d1   :  { %3509 = vmatpush.msra.mxu0 %v8397_v15 }
 0x6d3   :  { %3510 = vmatpush.msra.mxu0 %v8398_v51 }
 0x6d5   :  { %3511 = vmatpush.msra.mxu0 %v8399_v4 }
 0x72b   :  { %v3078_v52 = vpop.permute.xlu0 %3077 }
 0x72c   :  { %v3080_v30 = vmul.f32 %v3078_v52, %v3072_v61 }
 0x72e   :  { %3082 = vrot.lane.b32.xlu1 %v3080_v30, %s6755_s25 }
 0x74b   :  { %v2985_v19 = vpop.f32.mrf.mxu0 }
 0x74c   :  { %v2988_v8 = vadd.f32 %v2985_v19, %v8401_v14 }
 0x74e   :  { %6448 = vtanh.f32 %v2988_v8  ;;  %v6065_v43 = vmul.f32 -1.442695, %v2988_v8 }
 0x750   :  { %6450 = vpow2.f32 %v6065_v43 }
 0x754   :  { %v6449_v38 = vpop.eup %6448 }
 0x755   :  { %3011 = vrot.lane.b32.xlu0 %v6449_v38, %s6752_s16 }
 0x756   :  { %v6451_v41 = vpop.eup %6450 }
 0x757   :  { %v2992_v54 = vadd.f32 1.0, %v6451_v41 }
 0x759   :  { %v3004_v60 = vand.u32 2147483648, %v2992_v54  ;;  %vm2998_vm7 = vweird.f32 %v2992_v54  ;;  %v3002_v59 = vand.u32 2147483647, %v2992_v54 }
 0x75b   :  { %v3005_v31 = vor.u32 1.1754944e-38, %v3004_v60  ;;  %vm3003_vm9 = vcmp.eq.f32.partialorder %v3002_v59, 8.507059e+37 }
 0x7a0   :  { %v3083_v13 = vpop.permute.xlu1 %3082 }
 0x7a1   :  { %v7766_v5 = vadd.f32 %v3083_v13, %v3075_v0 }
 0x7a3   :  { %6452 = vtanh.f32 %v7766_v5 }
 0x7a4   :  { %6454 = vrcp.f32 %v2992_v54 }
 0x7a9   :  { %v6453_v7 = vpop.eup %6452 }
 0x7aa   :  { %3088 = vrot.lane.b32.xlu2 %v6453_v7, %s6752_s16  ;;  %v6455_v22 = vpop.eup %6454 }
 0x7ab   :  { %v2994_v23 = vmul.f32 %v6455_v22, %v2992_v54  ;;  %vm2999_vm6 = vweird.f32 %v6455_v22 }
 0x7ac   :  { %vm3000_vm8 = vmor %vm2998_vm7, %vm2999_vm6 }
 0x7ad   :  { %v2995_v1 = vsub.f32 1.0, %v2994_v23 }
 0x7af   :  { %v2996_v34 = vmul.f32 %v6455_v22, %v2995_v1 }
 0x7b1   :  { %v2997_v29 = vadd.f32 %v6455_v22, %v2996_v34 }
 0x7b3   :  { %v3001_v36 = vsel %vm3000_vm8, %v6455_v22, %v2997_v29 }
 0x7b4   :  { %v3006_v39 = vsel %vm3003_vm9, %v3005_v31, %v3001_v36 }
 0x7b5   :  { %v3009_v24 = vmul.f32 %v3006_v39, %v7743_v27  ;;  %v6667_v27 = vld [vmem:[%s8324_s7 + $0x30] sm:$0xff] }
 0x7c7   :  { %v3012_v57 = vpop.permute.xlu0 %3011 }
 0x7c8   :  { %v3014_v46 = vmul.f32 %v3012_v57, %v3006_v39 }
 0x7ca   :  { %3016 = vrot.lane.b32.xlu2 %v3014_v46, %s6755_s25 }
 0x804   :  { %v3089_v45 = vpop.permute.xlu2 %3088 }
 0x805   :  { %v3091_v18 = vmul.f32 %v3089_v45, %v3072_v61 }
 0x807   :  { %3093 = vrot.lane.b32.xlu1 %v3091_v18, %s6755_s25 }
 0x824   :  { %v3017_v62 = vpop.permute.xlu2 %3016 }
 0x825   :  { %v7773_v35 = vadd.f32 %v3017_v62, %v3009_v24 }
 0x827   :  { %6456 = vtanh.f32 %v7773_v35 }
 0x82d   :  { %v6457_v55 = vpop.eup %6456 }
 0x82e   :  { %3022 = vrot.lane.b32.xlu0 %v6457_v55, %s6752_s16 }
 0x879   :  { %v3094_v17 = vpop.permute.xlu1 %3093 }
 0x87a   :  { %3096 = vst.msk [vmem:[#allocation3 + $0x68] sm:$0xff] %vm2690_vm0, %v3094_v17  ;;  %6070 = vmatmul.msk.f32.vlgmr.msrb.gmra.mxu3 %vm2690_vm0, %v3094_v17 }
 0x87b   :  { %3706 = vmatpush.msrb.mxu3 %v6666_v33 }
 0x87d   :  { %3707 = vmatpush.msrb.mxu3 %v6667_v27 }
 0x87f   :  { %3708 = vmatpush.msrb.mxu3 %v8394_v6 }
 0x881   :  { %3709 = vmatpush.msrb.mxu3 %v8395_v56 }
 0x8a0   :  { %v3023_v2 = vpop.permute.xlu0 %3022 }
 0x8a1   :  { %v3025_v49 = vmul.f32 %v3023_v2, %v3006_v39 }
 0x8a3   :  { %3027 = vrot.lane.b32.xlu1 %v3025_v49, %s6755_s25 }
 0x8fd   :  { %v3183_v25 = vpop.f32.mrf.mxu3 }
 0x8fe   :  { %v3186_v50 = vadd.f32 %v3183_v25, %v7680_v20 }
 0x900   :  { %6458 = vtanh.f32 %v3186_v50  ;;  %v6071_v6 = vmul.f32 -1.442695, %v3186_v50 }
 0x902   :  { %6460 = vpow2.f32 %v6071_v6 }
 0x906   :  { %v6459_v10 = vpop.eup %6458 }
 0x907   :  { %3209 = vrot.lane.b32.xlu2 %v6459_v10, %s6752_s16 }
 0x908   :  { %v6461_v20 = vpop.eup %6460 }
 0x909   :  { %v3190_v56 = vadd.f32 1.0, %v6461_v20 }
 0x90b   :  { %6462 = vrcp.f32 %v3190_v56  ;;  %v3202_v40 = vand.u32 2147483648, %v3190_v56  ;;  %vm3196_vm11 = vweird.f32 %v3190_v56 }
 0x90d   :  { %v3203_v12 = vor.u32 1.1754944e-38, %v3202_v40 }
 0x911   :  { %v6463_v28 = vpop.eup %6462 }
 0x912   :  { %v3192_v26 = vmul.f32 %v6463_v28, %v3190_v56  ;;  %vm3197_vm10 = vweird.f32 %v6463_v28 }
 0x913   :  { %vm3198_vm12 = vmor %vm3196_vm11, %vm3197_vm10 }
 0x914   :  { %v3193_v21 = vsub.f32 1.0, %v3192_v26 }
 0x915   :  { %v3028_v9 = vpop.permute.xlu1 %3027 }
 0x916   :  { %3030 = vst.msk [vmem:[#allocation3 + $0x10] sm:$0xff] %vm2690_vm0, %v3028_v9  ;;  %6068 = vmatmul.msk.f32.vlgmr.msra.gmra.mxu2 %vm2690_vm0, %v3028_v9  ;;  %v3194_v37 = vmul.f32 %v6463_v28, %v3193_v21 }
 0x917   :  { %3640 = vmatpush.msra.mxu2 %v8396_v16  ;;  %v3200_v16 = vand.u32 2147483647, %v3190_v56 }
 0x918   :  { %v3195_v58 = vadd.f32 %v6463_v28, %v3194_v37  ;;  %v8403_v37 = vld [vmem:[#allocation27_spill] sm:$0xff] }
 0x919   :  { %3641 = vmatpush.msra.mxu2 %v8397_v15  ;;  %vm3201_vm13 = vcmp.eq.f32.partialorder %v3200_v16, 8.507059e+37 }
 0x91a   :  { %v3199_v15 = vsel %vm3198_vm12, %v6463_v28, %v3195_v58 }
 0x91b   :  { %3642 = vmatpush.msra.mxu2 %v8398_v51  ;;  %v3204_v51 = vsel %vm3201_vm13, %v3203_v12, %v3199_v15 }
 0x91c   :  { %v3207_v52 = vmul.f32 %v3204_v51, %v7766_v5 }
 0x91d   :  { %3643 = vmatpush.msra.mxu2 %v8399_v4 }
 0x961   :  { %v3210_v4 = vpop.permute.xlu2 %3209 }
 0x962   :  { %v3212_v3 = vmul.f32 %v3210_v4, %v3204_v51 }
 0x964   :  { %3214 = vrot.lane.b32.xlu0 %v3212_v3, %s6755_s25 }
 0x999   :  { %v3117_v32 = vpop.f32.mrf.mxu2 }
 0x99a   :  { %v3120_v48 = vadd.f32 %v3117_v32, %v8402_v42 }
 0x99c   :  { %6464 = vtanh.f32 %v3120_v48  ;;  %v6069_v61 = vmul.f32 -1.442695, %v3120_v48 }
 0x99e   :  { %6466 = vpow2.f32 %v6069_v61 }
 0x9a2   :  { %v6465_v63 = vpop.eup %6464 }
 0x9a3   :  { %3143 = vrot.lane.b32.xlu2 %v6465_v63, %s6752_s16 }
 0x9a4   :  { %v6467_v14 = vpop.eup %6466 }
 0x9a5   :  { %v3124_v8 = vadd.f32 1.0, %v6467_v14 }
 0x9a7   :  { %v3136_v7 = vand.u32 2147483648, %v3124_v8  ;;  %vm3130_vm15 = vweird.f32 %v3124_v8  ;;  %v3134_v5 = vand.u32 2147483647, %v3124_v8 }
 0x9a9   :  { %v3137_v23 = vor.u32 1.1754944e-38, %v3136_v7  ;;  %vm3135_vm2 = vcmp.eq.f32.partialorder %v3134_v5, 8.507059e+37 }
 0x9d6   :  { %v3215_v30 = vpop.permute.xlu0 %3214 }
 0x9d7   :  { %v7800_v19 = vadd.f32 %v3215_v30, %v3207_v52 }
 0x9d9   :  { %6468 = vtanh.f32 %v7800_v19 }
 0x9da   :  { %6470 = vrcp.f32 %v3124_v8 }
 0x9df   :  { %v6469_v38 = vpop.eup %6468 }
 0x9e0   :  { %3220 = vrot.lane.b32.xlu1 %v6469_v38, %s6752_s16  ;;  %v6471_v43 = vpop.eup %6470 }
 0x9e1   :  { %v3126_v0 = vmul.f32 %v6471_v43, %v3124_v8  ;;  %vm3131_vm14 = vweird.f32 %v6471_v43 }
 0x9e2   :  { %vm3132_vm1 = vmor %vm3130_vm15, %vm3131_vm14 }
 0x9e3   :  { %v3127_v13 = vsub.f32 1.0, %v3126_v0 }
 0x9e5   :  { %v3128_v41 = vmul.f32 %v6471_v43, %v3127_v13 }
 0x9e7   :  { %v3129_v54 = vadd.f32 %v6471_v43, %v3128_v41 }
 0x9e9   :  { %v3133_v22 = vsel %vm3132_vm1, %v6471_v43, %v3129_v54 }
 0x9ea   :  { %v3138_v1 = vsel %vm3135_vm2, %v3137_v23, %v3133_v22 }
 0x9eb   :  { %v3141_v36 = vmul.f32 %v3138_v1, %v7773_v35 }
 0x9fd   :  { %v3144_v34 = vpop.permute.xlu2 %3143 }
 0x9fe   :  { %v3146_v29 = vmul.f32 %v3144_v34, %v3138_v1 }
 0xa00   :  { %3148 = vrot.lane.b32.xlu1 %v3146_v29, %s6755_s25 }
 0xa52   :  { %v3221_v60 = vpop.permute.xlu1 %3220 }
 0xa53   :  { %v3223_v59 = vmul.f32 %v3221_v60, %v3204_v51 }
 0xa55   :  { %3225 = vrot.lane.b32.xlu0 %v3223_v59, %s6755_s25 }
 0xa72   :  { %v3149_v31 = vpop.permute.xlu1 %3148 }
 0xa73   :  { %v7807_v39 = vadd.f32 %v3149_v31, %v3141_v36 }
 0xa75   :  { %6472 = vtanh.f32 %v7807_v39 }
 0xa7b   :  { %v6473_v57 = vpop.eup %6472 }
 0xa7c   :  { %3154 = vrot.lane.b32.xlu2 %v6473_v57, %s6752_s16 }
 0xac7   :  { %v3226_v46 = vpop.permute.xlu0 %3225 }
 0xac8   :  { %3228 = vst.msk [vmem:[#allocation3 + $0x60] sm:$0xff] %vm2690_vm0, %v3226_v46  ;;  %6074 = vmatmul.msk.f32.vlgmr.msra.gmra.mxu1 %vm2690_vm0, %v3226_v46 }
 0xad6   :  { %v3155_v45 = vpop.permute.xlu2 %3154 }
 0xad7   :  { %v3157_v18 = vmul.f32 %v3155_v45, %v3138_v1 }
 0xad9   :  { %3159 = vrot.lane.b32.xlu0 %v3157_v18, %s6755_s25 }
 0xb45   :  { %v3315_v24 = vpop.f32.mrf.mxu1 }
 0xb46   :  { %v3318_v62 = vadd.f32 %v3315_v24, %v7674_v44 }
 0xb48   :  { %6474 = vtanh.f32 %v3318_v62  ;;  %v6075_v17 = vmul.f32 -1.442695, %v3318_v62 }
 0xb4a   :  { %6476 = vpow2.f32 %v6075_v17 }
 0xb4b   :  { %v3160_v35 = vpop.permute.xlu0 %3159 }
 0xb4c   :  { %3162 = vst.msk [vmem:[#allocation3 + $0x18] sm:$0xff] %vm2690_vm0, %v3160_v35  ;;  %6072 = vmatmul.msk.f32.vlgmr.msrb.gmra.mxu0 %vm2690_vm0, %v3160_v35 }
 0xb4e   :  { %v6475_v55 = vpop.eup %6474 }
 0xb4f   :  { %3341 = vrot.lane.b32.xlu1 %v6475_v55, %s6752_s16 }
 0xb50   :  { %v6477_v33 = vpop.eup %6476 }
 0xb51   :  { %v3322_v27 = vadd.f32 1.0, %v6477_v33 }
 0xb53   :  { %6478 = vrcp.f32 %v3322_v27  ;;  %v3334_v44 = vand.u32 2147483648, %v3322_v27  ;;  %vm3328_vm4 = vweird.f32 %v3322_v27  ;;  %v3332_v9 = vand.u32 2147483647, %v3322_v27 }
 0xb55   :  { %v3335_v20 = vor.u32 1.1754944e-38, %v3334_v44  ;;  %vm3333_vm6 = vcmp.eq.f32.partialorder %v3332_v9, 8.507059e+37 }
 0xb59   :  { %v6479_v2 = vpop.eup %6478 }
 0xb5a   :  { %v3324_v49 = vmul.f32 %v6479_v2, %v3322_v27  ;;  %vm3329_vm3 = vweird.f32 %v6479_v2 }
 0xb5b   :  { %vm3330_vm5 = vmor %vm3328_vm4, %vm3329_vm3 }
 0xb5c   :  { %v3325_v25 = vsub.f32 1.0, %v3324_v49 }
 0xb5e   :  { %v3326_v50 = vmul.f32 %v6479_v2, %v3325_v25  ;;  %v8404_v25 = vld [vmem:[#allocation28_spill] sm:$0xff] }
 0xb60   :  { %v3327_v10 = vadd.f32 %v6479_v2, %v3326_v50 }
 0xb62   :  { %v3331_v6 = vsel %vm3330_vm5, %v6479_v2, %v3327_v10 }
 0xb63   :  { %v3336_v56 = vsel %vm3333_vm6, %v3335_v20, %v3331_v6 }
 0xb64   :  { %v3339_v15 = vmul.f32 %v3336_v56, %v7800_v19 }
 0xbc1   :  { %v3342_v28 = vpop.permute.xlu1 %3341 }
 0xbc2   :  { %v3344_v26 = vmul.f32 %v3342_v28, %v3336_v56 }
 0xbc4   :  { %3346 = vrot.lane.b32.xlu2 %v3344_v26, %s6755_s25 }
 0xbc9   :  { %v3249_v21 = vpop.f32.mrf.mxu0 }
 0xbca   :  { %v3252_v58 = vadd.f32 %v3249_v21, %v8403_v37 }
 0xbcc   :  { %6480 = vtanh.f32 %v3252_v58  ;;  %v6073_v16 = vmul.f32 -1.442695, %v3252_v58 }
 0xbce   :  { %6482 = vpow2.f32 %v6073_v16 }
 0xbd2   :  { %v6481_v40 = vpop.eup %6480 }
 0xbd3   :  { %3275 = vrot.lane.b32.xlu1 %v6481_v40, %s6752_s16 }
 0xbd4   :  { %v6483_v4 = vpop.eup %6482 }
 0xbd5   :  { %v3256_v3 = vadd.f32 1.0, %v6483_v4 }
 0xbd7   :  { %v3268_v30 = vand.u32 2147483648, %v3256_v3  ;;  %vm3262_vm8 = vweird.f32 %v3256_v3  ;;  %v3266_v19 = vand.u32 2147483647, %v3256_v3 }
 0xbd9   :  { %v3269_v8 = vor.u32 1.1754944e-38, %v3268_v30  ;;  %vm3267_vm10 = vcmp.eq.f32.partialorder %v3266_v19, 8.507059e+37 }
 0xc1e   :  { %v3347_v12 = vpop.permute.xlu2 %3346 }
 0xc1f   :  { %v7822_v51 = vadd.f32 %v3347_v12, %v3339_v15 }
 0xc21   :  { %6484 = vtanh.f32 %v7822_v51 }
 0xc22   :  { %6486 = vrcp.f32 %v3256_v3 }
 0xc27   :  { %v6485_v32 = vpop.eup %6484 }
 0xc28   :  { %3352 = vrot.lane.b32.xlu0 %v6485_v32, %s6752_s16  ;;  %v6487_v42 = vpop.eup %6486 }
 0xc29   :  { %v3258_v48 = vmul.f32 %v6487_v42, %v3256_v3  ;;  %vm3263_vm7 = vweird.f32 %v6487_v42 }
 0xc2a   :  { %vm3264_vm9 = vmor %vm3262_vm8, %vm3263_vm7 }
 0xc2b   :  { %v3259_v63 = vsub.f32 1.0, %v3258_v48 }
 0xc2d   :  { %v3260_v61 = vmul.f32 %v6487_v42, %v3259_v63 }
 0xc2f   :  { %v3261_v52 = vadd.f32 %v6487_v42, %v3260_v61 }
 0xc31   :  { %v3265_v14 = vsel %vm3264_vm9, %v6487_v42, %v3261_v52 }
 0xc32   :  { %v3270_v38 = vsel %vm3267_vm10, %v3269_v8, %v3265_v14 }
 0xc33   :  { %v3273_v54 = vmul.f32 %v3270_v38, %v7807_v39 }
 0xc45   :  { %v3276_v43 = vpop.permute.xlu1 %3275 }
 0xc46   :  { %v3278_v0 = vmul.f32 %v3276_v43, %v3270_v38 }
 0xc48   :  { %3280 = vrot.lane.b32.xlu0 %v3278_v0, %s6755_s25 }
 0xc9a   :  { %v3353_v13 = vpop.permute.xlu0 %3352 }
 0xc9b   :  { %v3355_v41 = vmul.f32 %v3353_v13, %v3336_v56 }
 0xc9d   :  { %3357 = vrot.lane.b32.xlu2 %v3355_v41, %s6755_s25 }
 0xcba   :  { %v3281_v7 = vpop.permute.xlu0 %3280 }
 0xcbb   :  { %v7829_v5 = vadd.f32 %v3281_v7, %v3273_v54 }
 0xcbd   :  { %6488 = vtanh.f32 %v7829_v5 }
 0xcc3   :  { %v6489_v22 = vpop.eup %6488 }
 0xcc4   :  { %3286 = vrot.lane.b32.xlu1 %v6489_v22, %s6752_s16 }
 0xcf7   :  { %v3358_v23 = vpop.permute.xlu2 %3357 }
 0xcf8   :  { %3360 = vst.msk [vmem:[#allocation3 + $0x58] sm:$0xff] %vm2690_vm0, %v3358_v23  ;;  %6078 = vmatmul.msk.f32.vlgmr.msra.gmra.mxu3 %vm2690_vm0, %v3358_v23 }
 0xd36   :  { %v3287_v1 = vpop.permute.xlu1 %3286 }
 0xd37   :  { %v3289_v34 = vmul.f32 %v3287_v1, %v3270_v38 }
 0xd39   :  { %3291 = vrot.lane.b32.xlu2 %v3289_v34, %s6755_s25 }
 0xd7b   :  { %v3447_v29 = vpop.f32.mrf.mxu3 }
 0xd7c   :  { %v3450_v60 = vadd.f32 %v3447_v29, %v7668_v53 }
 0xd7e   :  { %6490 = vtanh.f32 %v3450_v60  ;;  %v6079_v31 = vmul.f32 -1.442695, %v3450_v60 }
 0xd80   :  { %6492 = vpow2.f32 %v6079_v31 }
 0xd84   :  { %v6491_v59 = vpop.eup %6490 }
 0xd85   :  { %3473 = vrot.lane.b32.xlu0 %v6491_v59, %s6752_s16 }
 0xd86   :  { %v6493_v39 = vpop.eup %6492 }
 0xd87   :  { %v3454_v57 = vadd.f32 1.0, %v6493_v39 }
 0xd89   :  { %6494 = vrcp.f32 %v3454_v57  ;;  %v3466_v53 = vand.u32 2147483648, %v3454_v57  ;;  %vm3460_vm12 = vweird.f32 %v3454_v57  ;;  %v3464_v35 = vand.u32 2147483647, %v3454_v57 }
 0xd8b   :  { %v3467_v17 = vor.u32 1.1754944e-38, %v3466_v53  ;;  %vm3465_vm14 = vcmp.eq.f32.partialorder %v3464_v35, 8.507059e+37 }
 0xd8f   :  { %v6495_v46 = vpop.eup %6494 }
 0xd90   :  { %v3456_v45 = vmul.f32 %v6495_v46, %v3454_v57  ;;  %vm3461_vm11 = vweird.f32 %v6495_v46 }
 0xd91   :  { %vm3462_vm13 = vmor %vm3460_vm12, %vm3461_vm11 }
 0xd92   :  { %v3457_v18 = vsub.f32 1.0, %v3456_v45  ;;  %v8405_v45 = vld [vmem:[#allocation30_spill] sm:$0xff] }
 0xd93   :  { %v3292_v36 = vpop.permute.xlu2 %3291 }
 0xd94   :  { %3294 = vst.msk [vmem:[#allocation3 + $0x20] sm:$0xff] %vm2690_vm0, %v3292_v36  ;;  %6076 = vmatmul.msk.f32.vlgmr.msrb.gmra.mxu2 %vm2690_vm0, %v3292_v36  ;;  %v3458_v24 = vmul.f32 %v6495_v46, %v3457_v18 }
 0xd96   :  { %v3459_v62 = vadd.f32 %v6495_v46, %v3458_v24 }
 0xd98   :  { %v3463_v55 = vsel %vm3462_vm13, %v6495_v46, %v3459_v62 }
 0xd99   :  { %v3468_v33 = vsel %vm3465_vm14, %v3467_v17, %v3463_v55 }
 0xd9a   :  { %v3471_v9 = vmul.f32 %v3468_v33, %v7822_v51 }
 0xdf7   :  { %v3474_v27 = vpop.permute.xlu0 %3473 }
 0xdf8   :  { %v3476_v2 = vmul.f32 %v3474_v27, %v3468_v33 }
 0xdfa   :  { %3478 = vrot.lane.b32.xlu1 %v3476_v2, %s6755_s25 }
 0xe17   :  { %v3381_v49 = vpop.f32.mrf.mxu2 }
 0xe18   :  { %v3384_v50 = vadd.f32 %v3381_v49, %v8404_v25 }
 0xe1a   :  { %6496 = vtanh.f32 %v3384_v50  ;;  %v6077_v44 = vmul.f32 -1.442695, %v3384_v50 }
 0xe1c   :  { %6498 = vpow2.f32 %v6077_v44 }
 0xe20   :  { %v6497_v10 = vpop.eup %6496 }
 0xe21   :  { %3407 = vrot.lane.b32.xlu0 %v6497_v10, %s6752_s16 }
 0xe22   :  { %v6499_v56 = vpop.eup %6498 }
 0xe23   :  { %v3388_v28 = vadd.f32 1.0, %v6499_v56 }
 0xe25   :  { %v3400_v15 = vand.u32 2147483648, %v3388_v28  ;;  %vm3394_vm1 = vweird.f32 %v3388_v28  ;;  %v3398_v12 = vand.u32 2147483647, %v3388_v28 }
 0xe27   :  { %v3401_v4 = vor.u32 1.1754944e-38, %v3400_v15  ;;  %vm3399_vm3 = vcmp.eq.f32.partialorder %v3398_v12, 8.507059e+37 }
 0xe6c   :  { %v3479_v6 = vpop.permute.xlu1 %3478 }
 0xe6d   :  { %v7844_v20 = vadd.f32 %v3479_v6, %v3471_v9 }
 0xe6f   :  { %6500 = vtanh.f32 %v7844_v20 }
 0xe70   :  { %6502 = vrcp.f32 %v3388_v28 }
 0xe75   :  { %v6501_v26 = vpop.eup %6500 }
 0xe76   :  { %3484 = vrot.lane.b32.xlu2 %v6501_v26, %s6752_s16  ;;  %v6503_v21 = vpop.eup %6502 }
 0xe77   :  { %v3390_v37 = vmul.f32 %v6503_v21, %v3388_v28  ;;  %vm3395_vm15 = vweird.f32 %v6503_v21 }
 0xe78   :  { %vm3396_vm2 = vmor %vm3394_vm1, %vm3395_vm15 }
 0xe79   :  { %v3391_v58 = vsub.f32 1.0, %v3390_v37 }
 0xe7b   :  { %v3392_v40 = vmul.f32 %v6503_v21, %v3391_v58 }
 0xe7d   :  { %v3393_v16 = vadd.f32 %v6503_v21, %v3392_v40 }
 0xe7f   :  { %v3397_v51 = vsel %vm3396_vm2, %v6503_v21, %v3393_v16 }
 0xe80   :  { %v3402_v3 = vsel %vm3399_vm3, %v3401_v4, %v3397_v51 }
 0xe81   :  { %v3405_v61 = vmul.f32 %v3402_v3, %v7829_v5 }
 0xe93   :  { %v3408_v32 = vpop.permute.xlu0 %3407 }
 0xe94   :  { %v3410_v42 = vmul.f32 %v3408_v32, %v3402_v3 }
 0xe96   :  { %3412 = vrot.lane.b32.xlu2 %v3410_v42, %s6755_s25 }
 0xed0   :  { %v3485_v48 = vpop.permute.xlu2 %3484 }
 0xed1   :  { %v3487_v63 = vmul.f32 %v3485_v48, %v3468_v33 }
 0xed3   :  { %3489 = vrot.lane.b32.xlu1 %v3487_v63, %s6755_s25 }
 0xef0   :  { %v3413_v52 = vpop.permute.xlu2 %3412 }
 0xef1   :  { %v7851_v30 = vadd.f32 %v3413_v52, %v3405_v61 }
 0xef3   :  { %6504 = vtanh.f32 %v7851_v30 }
 0xef9   :  { %v6505_v19 = vpop.eup %6504 }
 0xefa   :  { %3418 = vrot.lane.b32.xlu0 %v6505_v19, %s6752_s16 }
 0xf45   :  { %v3490_v14 = vpop.permute.xlu1 %3489 }
 0xf46   :  { %3492 = vst.msk [vmem:[#allocation3 + $0x50] sm:$0xff] %vm2690_vm0, %v3490_v14  ;;  %6082 = vmatmul.msk.f32.vlgmr.msrb.gmra.mxu1 %vm2690_vm0, %v3490_v14 }
 0xf6c   :  { %v3419_v8 = vpop.permute.xlu0 %3418 }
 0xf6d   :  { %v3421_v38 = vmul.f32 %v3419_v8, %v3402_v3 }
 0xf6f   :  { %3423 = vrot.lane.b32.xlu1 %v3421_v38, %s6755_s25 }
 0xfc3   :  { %v3579_v43 = vpop.f32.mrf.mxu1 }
 0xfc4   :  { %v3582_v0 = vadd.f32 %v3579_v43, %v7660_v11 }
 0xfc6   :  { %6506 = vtanh.f32 %v3582_v0  ;;  %v6083_v54 = vmul.f32 -1.442695, %v3582_v0 }
 0xfc8   :  { %6508 = vpow2.f32 %v6083_v54 }
 0xfcc   :  { %v6507_v13 = vpop.eup %6506 }
 0xfcd   :  { %3605 = vrot.lane.b32.xlu2 %v6507_v13, %s6752_s16 }
 0xfce   :  { %v6509_v7 = vpop.eup %6508 }
 0xfcf   :  { %v3586_v5 = vadd.f32 1.0, %v6509_v7 }
 0xfd1   :  { %6510 = vrcp.f32 %v3586_v5  ;;  %v3598_v11 = vand.u32 2147483648, %v3586_v5  ;;  %vm3592_vm5 = vweird.f32 %v3586_v5  ;;  %v3596_v60 = vand.u32 2147483647, %v3586_v5 }
 0xfd3   :  { %v3599_v36 = vor.u32 1.1754944e-38, %v3598_v11  ;;  %vm3597_vm7 = vcmp.eq.f32.partialorder %v3596_v60, 8.507059e+37 }
 0xfd7   :  { %v6511_v22 = vpop.eup %6510 }
 0xfd8   :  { %v3588_v23 = vmul.f32 %v6511_v22, %v3586_v5  ;;  %vm3593_vm4 = vweird.f32 %v6511_v22 }
 0xfd9   :  { %vm3594_vm6 = vmor %vm3592_vm5, %vm3593_vm4  ;;  %vm3826_vm5 = vcmask 523264  }
 0xfda   :  { %v3589_v1 = vsub.f32 1.0, %v3588_v23 }
 0xfdc   :  { %v3590_v34 = vmul.f32 %v6511_v22, %v3589_v1 }
 0xfde   :  { %v3591_v29 = vadd.f32 %v6511_v22, %v3590_v34 }
 0xfe0   :  { %v3595_v59 = vsel %vm3594_vm6, %v6511_v22, %v3591_v29  ;;  %v8406_v22 = vld [vmem:[#allocation13_spill] sm:$0xff] }
 0xfe1   :  { %v3424_v41 = vpop.permute.xlu1 %3423  ;;  %v3600_v31 = vsel %vm3597_vm7, %v3599_v36, %v3595_v59 }
 0xfe2   :  { %3426 = vst.msk [vmem:[#allocation3 + $0x28] sm:$0xff] %vm2690_vm0, %v3424_v41  ;;  %6080 = vmatmul.msk.f32.vlgmr.msra.gmra.mxu0 %vm2690_vm0, %v3424_v41  ;;  %v3603_v53 = vmul.f32 %v3600_v31, %v7844_v20 }
0x1027   :  { %v3606_v39 = vpop.permute.xlu2 %3605 }
0x1028   :  { %v3608_v57 = vmul.f32 %v3606_v39, %v3600_v31 }
0x102a   :  { %3610 = vrot.lane.b32.xlu0 %v3608_v57, %s6755_s25 }
0x105f   :  { %v3513_v46 = vpop.f32.mrf.mxu0 }
0x1060   :  { %v3516_v18 = vadd.f32 %v3513_v46, %v8405_v45 }
0x1062   :  { %6512 = vtanh.f32 %v3516_v18  ;;  %v6081_v62 = vmul.f32 -1.442695, %v3516_v18 }
0x1064   :  { %6514 = vpow2.f32 %v6081_v62 }
0x1068   :  { %v6513_v24 = vpop.eup %6512 }
0x1069   :  { %3539 = vrot.lane.b32.xlu2 %v6513_v24, %s6752_s16 }
0x106a   :  { %v6515_v17 = vpop.eup %6514 }
0x106b   :  { %v3520_v33 = vadd.f32 1.0, %v6515_v17 }
0x106d   :  { %v3532_v44 = vand.u32 2147483648, %v3520_v33  ;;  %vm3526_vm9 = vweird.f32 %v3520_v33  ;;  %v3530_v9 = vand.u32 2147483647, %v3520_v33 }
0x106f   :  { %v3533_v20 = vor.u32 1.1754944e-38, %v3532_v44  ;;  %vm3531_vm11 = vcmp.eq.f32.partialorder %v3530_v9, 8.507059e+37 }
0x109c   :  { %v3611_v35 = vpop.permute.xlu0 %3610 }
0x109d   :  { %v7866_v55 = vadd.f32 %v3611_v35, %v3603_v53 }
0x109f   :  { %6516 = vtanh.f32 %v7866_v55 }
0x10a0   :  { %6518 = vrcp.f32 %v3520_v33 }
0x10a5   :  { %v6517_v27 = vpop.eup %6516 }
0x10a6   :  { %3616 = vrot.lane.b32.xlu1 %v6517_v27, %s6752_s16  ;;  %v6519_v2 = vpop.eup %6518 }
0x10a7   :  { %v3522_v49 = vmul.f32 %v6519_v2, %v3520_v33  ;;  %vm3527_vm8 = vweird.f32 %v6519_v2 }
0x10a8   :  { %vm3528_vm10 = vmor %vm3526_vm9, %vm3527_vm8 }
0x10a9   :  { %v3523_v25 = vsub.f32 1.0, %v3522_v49  ;;  %v3771_v49 = vld [vmem:[#allocation3 + $0x70] sm:$0xff] }
0x10ab   :  { %v3524_v50 = vmul.f32 %v6519_v2, %v3523_v25 }
0x10ad   :  { %v3525_v10 = vadd.f32 %v6519_v2, %v3524_v50 }
0x10af   :  { %v3529_v6 = vsel %vm3528_vm10, %v6519_v2, %v3525_v10  ;;  %v3769_v2 = vld [vmem:[#allocation3 + $0x60] sm:$0xff] }
0x10b0   :  { %v3534_v56 = vsel %vm3531_vm11, %v3533_v20, %v3529_v6  ;;  %v3768_v20 = vld [vmem:[#allocation3 + $0x58] sm:$0xff] }
0x10b1   :  { %v3537_v58 = vmul.f32 %v3534_v56, %v7851_v30 }
0x10c3   :  { %v3540_v28 = vpop.permute.xlu2 %3539 }
0x10c4   :  { %v3542_v26 = vmul.f32 %v3540_v28, %v3534_v56 }
0x10c6   :  { %3544 = vrot.lane.b32.xlu1 %v3542_v26, %s6755_s25  ;;  %v3767_v26 = vld [vmem:[#allocation3 + $0x50] sm:$0xff] }
0x1118   :  { %v3617_v21 = vpop.permute.xlu1 %3616 }
0x1119   :  { %v3619_v37 = vmul.f32 %v3617_v21, %v3600_v31  ;;  %v3822_v21 = vld [vmem:[%s8323_s6 + $0x38] sm:$0xff] }
0x111a   :  { %3859 = vmatpush.msrb.mxu0 %v3822_v21 }
0x111b   :  { %3621 = vrot.lane.b32.xlu0 %v3619_v37, %s6755_s25  ;;  %v6105_v37 = vld [vmem:[%s8323_s6 + $0x78] sm:$0xff] }
0x111c   :  { %3922 = vmatpush.msra.mxu1 %v6105_v37 }
0x1138   :  { %v3545_v40 = vpop.permute.xlu1 %3544 }
0x1139   :  { %v7873_v16 = vadd.f32 %v3545_v40, %v3537_v58  ;;  %v3821_v58 = vld [vmem:[%s8323_s6 + $0x30] sm:$0xff] }
0x113a   :  { %v6104_v40 = vld [vmem:[%s8323_s6 + $0x70] sm:$0xff]  ;;  %3860 = vmatpush.msrb.mxu0 %v3821_v58 }
0x113b   :  { %6520 = vtanh.f32 %v7873_v16  ;;  %3923 = vmatpush.msra.mxu1 %v6104_v40 }
0x1141   :  { %v6521_v15 = vpop.eup %6520 }
0x1142   :  { %3550 = vrot.lane.b32.xlu2 %v6521_v15, %s6752_s16  ;;  %v7922_v15 = vld [vmem:[%s8324_s7 + $0x58] sm:$0xff] }
0x1143   :  { %3997 = vmatpush.msrb.mxu2 %v7922_v15 }
0x118d   :  { %v3622_v12 = vpop.permute.xlu0 %3621 }
0x118e   :  { %3624 = vst.msk [vmem:[#allocation3 + $0x48] sm:$0xff] %vm2690_vm0, %v3622_v12  ;;  %6086 = vmatmul.msk.f32.vlgmr.msrb.gmra.mxu3 %vm2690_vm0, %v3622_v12  ;;  %v6103_v12 = vld [vmem:[%s8323_s6 + $0x68] sm:$0xff] }
0x118f   :  { %3924 = vmatpush.msra.mxu1 %v6103_v12  ;;  %v6121_v12 = vld [vmem:[%s8327_s10 + $0x18] sm:$0xff] }
0x1195   :  { %v3766_v27 = vld [vmem:[#allocation3 + $0x48] sm:$0xff] }
0x119c   :  { %v3551_v51 = vpop.permute.xlu2 %3550 }
0x119d   :  { %v3553_v4 = vmul.f32 %v3551_v51, %v3534_v56  ;;  %v7931_v51 = vld [vmem:[%s8324_s7 + $0x50] sm:$0xff] }
0x119e   :  { %3998 = vmatpush.msrb.mxu2 %v7931_v51 }
0x119f   :  { %3555 = vrot.lane.b32.xlu0 %v3553_v4, %s6755_s25  ;;  %v3819_v4 = vld [vmem:[%s8323_s6 + $0x20] sm:$0xff] }
0x1211   :  { %v3711_v3 = vpop.f32.mrf.mxu3  ;;  %v3556_v32 = vpop.permute.xlu0 %3555 }
0x1212   :  { %v3714_v42 = vadd.f32 %v3711_v3, %v7649_v47  ;;  %3558 = vst.msk [vmem:[#allocation3 + $0x30] sm:$0xff] %vm2690_vm0, %v3556_v32  ;;  %6084 = vmatmul.msk.f32.vlgmr.msra.gmra.mxu2 %vm2690_vm0, %v3556_v32  ;;  %v7939_v3 = vld [vmem:[%s8324_s7 + $0x48] sm:$0xff]  ;;  %v6102_v32 = vld [vmem:[%s8323_s6 + $0x60] sm:$0xff] }
0x1213   :  { %3999 = vmatpush.msrb.mxu2 %v7939_v3  ;;  %3925 = vmatpush.msra.mxu1 %v6102_v32 }
0x1214   :  { %6522 = vtanh.f32 %v3714_v42  ;;  %v6087_v63 = vmul.f32 -1.442695, %v3714_v42  ;;  %v3818_v42 = vld [vmem:[%s8323_s6 + $0x18] sm:$0xff] }
0x1216   :  { %6524 = vpow2.f32 %v6087_v63  ;;  %v7955_v63 = vld [vmem:[%s8324_s7 + $0x40] sm:$0xff] }
0x1217   :  { %4000 = vmatpush.msrb.mxu2 %v7955_v63 }
0x1219   :  { %4131 = vmatpush.msra.mxu2 %v7922_v15 }
0x121a   :  { %v6523_v48 = vpop.eup %6522 }
0x121b   :  { %3737 = vrot.lane.b32.xlu1 %v6523_v48, %s6752_s16  ;;  %v6101_v48 = vld [vmem:[%s8323_s6 + $0x58] sm:$0xff]  ;;  %4132 = vmatpush.msra.mxu2 %v7931_v51 }
0x121c   :  { %v6525_v61 = vpop.eup %6524  ;;  %3926 = vmatpush.msra.mxu1 %v6101_v48 }
0x121d   :  { %v3718_v52 = vadd.f32 1.0, %v6525_v61  ;;  %v3770_v61 = vld [vmem:[#allocation3 + $0x68] sm:$0xff]  ;;  %4133 = vmatpush.msra.mxu2 %v7939_v3 }
0x121f   :  { %6526 = vrcp.f32 %v3718_v52  ;;  %v3730_v47 = vand.u32 2147483648, %v3718_v52  ;;  %vm3724_vm13 = vweird.f32 %v3718_v52  ;;  %v3728_v43 = vand.u32 2147483647, %v3718_v52  ;;  %4134 = vmatpush.msra.mxu2 %v7955_v63 }
0x1221   :  { %v3731_v13 = vor.u32 1.1754944e-38, %v3730_v47  ;;  %vm3729_vm15 = vcmp.eq.f32.partialorder %v3728_v43, 8.507059e+37 }
0x1225   :  { %v6527_v30 = vpop.eup %6526 }
0x1226   :  { %v3720_v19 = vmul.f32 %v6527_v30, %v3718_v52  ;;  %vm3725_vm12 = vweird.f32 %v6527_v30  ;;  %v3817_v52 = vld [vmem:[%s8323_s6 + $0x10] sm:$0xff] }
0x1227   :  { %vm3726_vm14 = vmor %vm3724_vm13, %vm3725_vm12 }
0x1228   :  { %v3721_v14 = vsub.f32 1.0, %v3720_v19  ;;  %v6100_v19 = vld [vmem:[%s8323_s6 + $0x50] sm:$0xff] }
0x1229   :  { %3927 = vmatpush.msra.mxu1 %v6100_v19 }
0x122a   :  { %v3722_v8 = vmul.f32 %v6527_v30, %v3721_v14  ;;  %v3816_v14 = vld [vmem:[%s8323_s6 + $0x8] sm:$0xff] }
0x122c   :  { %v3723_v38 = vadd.f32 %v6527_v30, %v3722_v8  ;;  %v6099_v8 = vld [vmem:[%s8323_s6 + $0x48] sm:$0xff] }
0x122d   :  { %3928 = vmatpush.msra.mxu1 %v6099_v8 }
0x122e   :  { %v3727_v0 = vsel %vm3726_vm14, %v6527_v30, %v3723_v38  ;;  %v6114_v30 = vld [vmem:[%s8326_s9 + $0x10] sm:$0xff]  ;;  %v3772_v38 = vld [vmem:[#allocation3 + $0x78] sm:$0xff] }
0x122f   :  { %v3732_v41 = vsel %vm3729_vm15, %v3731_v13, %v3727_v0  ;;  %6126 = vmatmul.msk.f32.vlgmr.msrb.gmra.mxu2 %vm2690_vm0, %v6114_v30  ;;  %v3815_v0 = vld [vmem:[%s8323_s6] sm:$0xff] }
0x1230   :  { %v3735_v29 = vmul.f32 %v3732_v41, %v7866_v55  ;;  %4259 = vmatpush.msrb.mxu2 %v7922_v15  ;;  %v6098_v13 = vld [vmem:[%s8323_s6 + $0x40] sm:$0xff] }
0x1231   :  { %3929 = vmatpush.msra.mxu1 %v6098_v13 }
0x1232   :  { %4260 = vmatpush.msrb.mxu2 %v7931_v51 }
0x1234   :  { %4261 = vmatpush.msrb.mxu2 %v7939_v3 }
0x1236   :  { %4262 = vmatpush.msrb.mxu2 %v7955_v63 }
0x128d   :  { %v3738_v54 = vpop.permute.xlu1 %3737 }
0x128e   :  { %v3740_v7 = vmul.f32 %v3738_v54, %v3732_v41 }
0x1290   :  { %3742 = vrot.lane.b32.xlu2 %v3740_v7, %s6755_s25 }
0x1295   :  { %v3645_v5 = vpop.f32.mrf.mxu2 }
0x1296   :  { %v3648_v23 = vadd.f32 %v3645_v5, %v8406_v22 }
0x1298   :  { %6528 = vtanh.f32 %v3648_v23  ;;  %v6085_v34 = vmul.f32 -1.442695, %v3648_v23  ;;  %v3758_v23 = vld [vmem:[#allocation3 + $0x8] sm:$0xff] }
0x129a   :  { %6530 = vpow2.f32 %v6085_v34 }
0x129e   :  { %v6529_v1 = vpop.eup %6528 }
0x129f   :  { %3671 = vrot.lane.b32.xlu1 %v6529_v1, %s6752_s16 }
0x12a0   :  { %v6531_v59 = vpop.eup %6530 }
0x12a1   :  { %v3652_v36 = vadd.f32 1.0, %v6531_v59 }
0x12a3   :  { %v3664_v24 = vand.u32 2147483648, %v3652_v36  ;;  %vm3658_vm2 = vweird.f32 %v3652_v36  ;;  %v3662_v62 = vand.u32 2147483647, %v3652_v36 }
0x12a5   :  { %v3665_v35 = vor.u32 1.1754944e-38, %v3664_v24  ;;  %vm3663_vm4 = vcmp.eq.f32.partialorder %v3662_v62, 8.507059e+37  ;;  %v3761_v62 = vld [vmem:[#allocation3 + $0x20] sm:$0xff] }
0x12ea   :  { %v3743_v11 = vpop.permute.xlu2 %3742 }
0x12eb   :  { %v3745_v60 = vadd.f32 %v3743_v11, %v3735_v29  ;;  %v6115_v29 = vld [vmem:[%s8327_s10 + $0x10] sm:$0xff]  ;;  %v8005_v11 = vld [vmem:[%s8324_s7 + $0x78] sm:$0xff]  ;;  %s6756_s10 = smov [#allocation9]  }
0x12ec   :  { %4063 = vmatpush.msra.mxu3 %v8005_v11  ;;  %s5060_s27 = sshll.u32 %s6756_s10, 4  ;;  %s5061_s27 = int_to_ptr.vmem [resolvable:$true] %s5060_s27 }
0x12ed   :  { %6532 = vtanh.f32 %v3745_v60  ;;  %v8010_v60 = vld [vmem:[%s8324_s7 + $0x70] sm:$0xff] }
0x12ee   :  { %6534 = vrcp.f32 %v3652_v36  ;;  %4064 = vmatpush.msra.mxu3 %v8010_v60 }
0x12f3   :  { %v6533_v31 = vpop.eup %6532 }
0x12f4   :  { %3748 = vrot.lane.b32.xlu0 %v6533_v31, %s6752_s16  ;;  %v6535_v39 = vpop.eup %6534 }
0x12f5   :  { %v3654_v57 = vmul.f32 %v6535_v39, %v3652_v36  ;;  %vm3659_vm1 = vweird.f32 %v6535_v39  ;;  %v3759_v36 = vld [vmem:[#allocation3 + $0x10] sm:$0xff] }
0x12f6   :  { %vm3660_vm3 = vmor %vm3658_vm2, %vm3659_vm1 }
0x12f7   :  { %v3655_v46 = vsub.f32 1.0, %v3654_v57  ;;  %v8026_v57 = vld [vmem:[%s8324_s7 + $0x60] sm:$0xff] }
0x12f9   :  { %v3656_v45 = vmul.f32 %v6535_v39, %v3655_v46  ;;  %v6120_v46 = vld [vmem:[%s8326_s9 + $0x18] sm:$0xff] }
0x12fb   :  { %v3657_v18 = vadd.f32 %v6535_v39, %v3656_v45  ;;  %v3760_v45 = vld [vmem:[#allocation3 + $0x18] sm:$0xff] }
0x12fd   :  { %v3661_v53 = vsel %vm3660_vm3, %v6535_v39, %v3657_v18  ;;  %v8021_v39 = vld [vmem:[%s8324_s7 + $0x68] sm:$0xff] }
0x12fe   :  { %v7889_v55 = vsel %vm3663_vm4, %v3665_v35, %v3661_v53  ;;  %4065 = vmatpush.msra.mxu3 %v8021_v39 }
0x12ff   :  { %v3669_v10 = vmul.f32 %v7889_v55, %v7873_v16  ;;  %v3820_v16 = vld [vmem:[%s8323_s6 + $0x28] sm:$0xff] }
0x1300   :  { %3861 = vmatpush.msrb.mxu0 %v3820_v16  ;;  %4066 = vmatpush.msra.mxu3 %v8026_v57 }
0x1301   :  { %6128 = vmatmul.msk.f32.vlgmr.msra.gmra.mxu3 %vm2690_vm0, %v6120_v46 }
0x1302   :  { %3862 = vmatpush.msrb.mxu0 %v3819_v4  ;;  %4195 = vmatpush.msrb.mxu3 %v8005_v11 }
0x1304   :  { %3863 = vmatpush.msrb.mxu0 %v3818_v42  ;;  %4196 = vmatpush.msrb.mxu3 %v8010_v60 }
0x1306   :  { %3864 = vmatpush.msrb.mxu0 %v3817_v52  ;;  %4197 = vmatpush.msrb.mxu3 %v8021_v39 }
0x1308   :  { %3865 = vmatpush.msrb.mxu0 %v3816_v14  ;;  %4198 = vmatpush.msrb.mxu3 %v8026_v57 }
0x130a   :  { %3866 = vmatpush.msrb.mxu0 %v3815_v0  ;;  %4323 = vmatpush.msra.mxu3 %v8005_v11 }
0x130c   :  { %4324 = vmatpush.msra.mxu3 %v8010_v60 }
0x130e   :  { %4325 = vmatpush.msra.mxu3 %v8021_v39 }
0x1310   :  { %4326 = vmatpush.msra.mxu3 %v8026_v57 }
0x1311   :  { %v3672_v17 = vpop.permute.xlu1 %3671 }
0x1312   :  { %v3674_v33 = vmul.f32 %v3672_v17, %v7889_v55 }
0x1314   :  { %3676 = vrot.lane.b32.xlu0 %v3674_v33, %s6755_s25 }
0x131c   :  { %3783 = vrot.lane.b32.xlu0 %v3766_v27, %s6755_s25  ;;  %v3763_v27 = vld [vmem:[#allocation3 + $0x30] sm:$0xff] }
0x1324   :  { %3789 = vrot.lane.b32.xlu0 %v3769_v2, %s6755_s25 }
0x132c   :  { %3793 = vrot.lane.b32.xlu0 %v3771_v49, %s6755_s25 }
0x1366   :  { %v3749_v25 = vpop.permute.xlu0 %3748 }
0x1367   :  { %v3751_v50 = vmul.f32 %v3749_v25, %v3732_v41  ;;  %v3757_v41 = vld [vmem:[#allocation3] sm:$0xff] }
0x1369   :  { %3753 = vrot.lane.b32.xlu2 %v3751_v50, %s6755_s25 }
0x1386   :  { %v3677_v44 = vpop.permute.xlu0 %3676 }
0x1387   :  { %v3679_v9 = vadd.f32 %v3677_v44, %v3669_v10  ;;  %v8060_v10 = vld [vmem:[%s8325_s8 + $0x2] ss:$0 sm:$0xff]  ;;  %v6408_v44 = vld [vmem:[%s8325_s8 + $0x3] ss:$0 sm:$0xff] }
0x1389   :  { %6536 = vtanh.f32 %v3679_v9  ;;  %v4002_v9 = vpop.f32.mrf.mxu2 }
0x138e   :  { %v3784_v22 = vpop.permute.xlu0 %3783 }
0x138f   :  { %v6537_v6 = vpop.eup %6536  ;;  %v3806_v1 = vsel %vm2690_vm0, %v3758_v23, %v3784_v22 }
0x1390   :  { %3682 = vrot.lane.b32.xlu2 %v6537_v6, %s6752_s16 }
0x1396   :  { %v3790_v24 = vpop.permute.xlu0 %3789 }
0x1397   :  { %v3809_v53 = vsel %vm2690_vm0, %v3761_v62, %v3790_v24 }
0x1398   :  { %3787 = vrot.lane.b32.xlu2 %v3768_v20, %s6755_s25 }
0x139e   :  { %v3794_v33 = vpop.permute.xlu0 %3793 }
0x139f   :  { %v3811_v2 = vsel %vm2690_vm0, %v3763_v27, %v3794_v33 }
0x13c3   :  { %v3754_v56 = vpop.permute.xlu2 %3753 }
0x13c4   :  { %3756 = vst.msk [vmem:[#allocation3 + $0x40] sm:$0xff] %vm2690_vm0, %v3754_v56 }
0x13cb   :  { %v3765_v28 = vld [vmem:[#allocation3 + $0x40] sm:$0xff] }
0x13cc   :  { %3781 = vrot.lane.b32.xlu1 %v3765_v28, %s6755_s25 }
0x13d4   :  { %3785 = vrot.lane.b32.xlu1 %v3767_v26, %s6755_s25 }
0x13dc   :  { %3791 = vrot.lane.b32.xlu1 %v3770_v61, %s6755_s25 }
0x13e4   :  { %3795 = vrot.lane.b32.xlu1 %v3772_v38, %s6755_s25  ;;  %v4068_v38 = vpop.f32.mrf.mxu3 }
0x13ea   :  { %v3683_v47 = vpop.permute.xlu2 %3682 }
0x13eb   :  { %v3685_v43 = vmul.f32 %v3683_v47, %v7889_v55  ;;  %v3762_v55 = vld [vmem:[#allocation3 + $0x28] sm:$0xff] }
0x13ec   :  { %4027 = vrot.lane.b32.xlu1 %v6115_v29, %s6755_s25 }
0x13ed   :  { %3687 = vrot.lane.b32.xlu2 %v3685_v43, %s6755_s25 }
0x13f2   :  { %v3788_v7 = vpop.permute.xlu2 %3787 }
0x13f3   :  { %v3808_v18 = vsel %vm2690_vm0, %v3760_v45, %v3788_v7 }
0x143e   :  { %v3782_v54 = vpop.permute.xlu1 %3781 }
0x143f   :  { %v3805_v5 = vsel %vm2690_vm0, %v3757_v41, %v3782_v54 }
0x1440   :  { %6089 = vmatmul.msk.f32.vlgmr.msrb.gmra.mxu0 %vm3826_vm5, %v3805_v5  ;;  %6106 = vmatmul.msk.f32.vlgmr.msra.gmra.mxu1 %vm3826_vm5, %v3805_v5 }
0x1446   :  { %v3786_v59 = vpop.permute.xlu1 %3785 }
0x1447   :  { %v3688_v34 = vpop.permute.xlu2 %3687  ;;  %v3807_v31 = vsel %vm2690_vm0, %v3759_v36, %v3786_v59 }
0x1448   :  { %3690 = vst.msk [vmem:[#allocation3 + $0x38] sm:$0xff] %vm2690_vm0, %v3688_v34  ;;  %6090 = vmatmul.msk.f32.gmra.mxu0 %vm3826_vm5, %v3806_v1  ;;  %6107 = vmatmul.msk.f32.gmra.mxu1 %vm3826_vm5, %v3806_v1 }
0x144e   :  { %v3792_v35 = vpop.permute.xlu1 %3791 }
0x144f   :  { %v3810_v17 = vsel %vm2690_vm0, %v3762_v55, %v3792_v35  ;;  %v3764_v25 = vld [vmem:[#allocation3 + $0x38] sm:$0xff] }
0x1450   :  { %6091 = vmatmul.msk.f32.gmra.mxu0 %vm3826_vm5, %v3807_v31  ;;  %6108 = vmatmul.msk.f32.gmra.mxu1 %vm3826_vm5, %v3807_v31 }
0x1456   :  { %v3796_v49 = vpop.permute.xlu1 %3795 }
0x1457   :  { %v3812_v50 = vsel %vm2690_vm0, %v3764_v25, %v3796_v49 }
0x1458   :  { %6092 = vmatmul.msk.f32.gmra.mxu0 %vm3826_vm5, %v3808_v18  ;;  %6109 = vmatmul.msk.f32.gmra.mxu1 %vm3826_vm5, %v3808_v18 }
0x1460   :  { %6093 = vmatmul.msk.f32.gmra.mxu0 %vm3826_vm5, %v3809_v53  ;;  %6110 = vmatmul.msk.f32.gmra.mxu1 %vm3826_vm5, %v3809_v53 }
0x1468   :  { %6094 = vmatmul.msk.f32.gmra.mxu0 %vm3826_vm5, %v3810_v17  ;;  %6111 = vmatmul.msk.f32.gmra.mxu1 %vm3826_vm5, %v3810_v17 }
0x1470   :  { %6095 = vmatmul.msk.f32.gmra.mxu0 %vm3826_vm5, %v3811_v2  ;;  %6112 = vmatmul.msk.f32.gmra.mxu1 %vm3826_vm5, %v3811_v2 }
0x1478   :  { %6096 = vmatmul.msk.f32.gmra.mxu0 %vm3826_vm5, %v3812_v50  ;;  %6113 = vmatmul.msk.f32.gmra.mxu1 %vm3826_vm5, %v3812_v50 }
0x14bd   :  { %v3868_v6 = vpop.f32.mrf.mxu0  ;;  %v3931_v20 = vpop.f32.mrf.mxu1 }
0x14be   :  { %v3869_v56 = vadd.f32 %v8060_v10, %v3868_v6  ;;  %v8066_v28 = vadd.f32 %v6408_v44, %v3931_v20 }
0x14c0   :  { %v4005_v26 = vadd.f32 %v4002_v9, %v3869_v56  ;;  %v4028_v9 = vpop.permute.xlu1 %4027 }
0x14c2   :  { %6538 = vtanh.f32 %v4005_v26  ;;  %v6127_v14 = vmul.f32 -1.442695, %v4005_v26 }
0x14c4   :  { %6540 = vpow2.f32 %v6127_v14 }
0x14c5   :  { %v3934_v21 = vpop.f32.mrf.mxu1 }
0x14c6   :  { %v8068_v37 = vadd.f32 %v6408_v44, %v3934_v21 }
0x14c8   :  { %v6539_v58 = vpop.eup %6538 }
0x14c9   :  { %4032 = vrot.lane.b32.xlu2 %v6539_v58, %s6752_s16 }
0x14ca   :  { %v6541_v0 = vpop.eup %6540 }
0x14cb   :  { %v4009_v41 = vadd.f32 1.0, %v6541_v0 }
0x14cd   :  { %v3937_v40 = vpop.f32.mrf.mxu1  ;;  %v4021_v1 = vand.u32 2147483648, %v4009_v41  ;;  %vm4015_vm7 = vweird.f32 %v4009_v41  ;;  %v4019_v34 = vand.u32 2147483647, %v4009_v41 }
0x14ce   :  { %v8071_v16 = vadd.f32 %v6408_v44, %v3937_v40 }
0x14cf   :  { %v4022_v59 = vor.u32 1.1754944e-38, %v4021_v1  ;;  %vm4020_vm9 = vcmp.eq.f32.partialorder %v4019_v34, 8.507059e+37 }
0x14d1   :  { %4093 = vrot.lane.b32.xlu2 %v6121_v12, %s6755_s25 }
0x14d5   :  { %v3940_v4 = vpop.f32.mrf.mxu1 }
0x14d6   :  { %v8077_v32 = vadd.f32 %v6408_v44, %v3940_v4 }
0x14dd   :  { %v3943_v42 = vpop.f32.mrf.mxu1 }
0x14de   :  { %v8079_v48 = vadd.f32 %v6408_v44, %v3943_v42 }
0x14e5   :  { %v3946_v61 = vpop.f32.mrf.mxu1 }
0x14e6   :  { %v8081_v52 = vadd.f32 %v6408_v44, %v3946_v61 }
0x14ed   :  { %v3949_v30 = vpop.f32.mrf.mxu1 }
0x14ee   :  { %v8083_v19 = vadd.f32 %v6408_v44, %v3949_v30 }
0x14f5   :  { %v3952_v8 = vpop.f32.mrf.mxu1 }
0x14f6   :  { %v3953_v47 = vadd.f32 %v6408_v44, %v3952_v8 }
0x14f8   :  { %v4071_v43 = vadd.f32 %v4068_v38, %v3953_v47  ;;  %v3871_v47 = vpop.f32.mrf.mxu0 }
0x14fa   :  { %6542 = vtanh.f32 %v4071_v43  ;;  %v6129_v45 = vmul.f32 -1.442695, %v4071_v43  ;;  %v3872_v43 = vadd.f32 %v8060_v10, %v3871_v47 }
0x14fb   :  { %6544 = vrcp.f32 %v4009_v41 }
0x14fc   :  { %6546 = vpow2.f32 %v6129_v45 }
0x1500   :  { %v6543_v13 = vpop.eup %6542 }
0x1501   :  { %4098 = vrot.lane.b32.xlu0 %v6543_v13, %s6752_s16  ;;  %v6545_v54 = vpop.eup %6544 }
0x1502   :  { %v4011_v7 = vmul.f32 %v6545_v54, %v4009_v41  ;;  %vm4016_vm6 = vweird.f32 %v6545_v54  ;;  %v6547_v18 = vpop.eup %6546 }
0x1503   :  { %vm4017_vm8 = vmor %vm4015_vm7, %vm4016_vm6  ;;  %v4075_v24 = vadd.f32 1.0, %v6547_v18 }
0x1504   :  { %v4012_v5 = vsub.f32 1.0, %v4011_v7 }
0x1505   :  { %6548 = vrcp.f32 %v4075_v24  ;;  %v4087_v33 = vand.u32 2147483648, %v4075_v24  ;;  %vm4081_vm11 = vweird.f32 %v4075_v24  ;;  %v4085_v27 = vand.u32 2147483647, %v4075_v24 }
0x1506   :  { %v4013_v22 = vmul.f32 %v6545_v54, %v4012_v5 }
0x1507   :  { %v4088_v49 = vor.u32 1.1754944e-38, %v4087_v33  ;;  %vm4086_vm13 = vcmp.eq.f32.partialorder %v4085_v27, 8.507059e+37 }
0x1508   :  { %v4014_v23 = vadd.f32 %v6545_v54, %v4013_v22 }
0x150a   :  { %v4018_v29 = vsel %vm4017_vm8, %v6545_v54, %v4014_v23 }
0x150b   :  { %v4023_v36 = vsel %vm4020_vm9, %v4022_v59, %v4018_v29  ;;  %v6549_v62 = vpop.eup %6548 }
0x150c   :  { %v4077_v53 = vmul.f32 %v6549_v62, %v4075_v24  ;;  %vm4082_vm10 = vweird.f32 %v6549_v62  ;;  %v4030_v6 = vmul.f32 %v4028_v9, %v4023_v36 }
0x150d   :  { %vm4083_vm12 = vmor %vm4081_vm11, %vm4082_vm10 }
0x150e   :  { %v4078_v35 = vsub.f32 1.0, %v4077_v53 }
0x1510   :  { %v4079_v55 = vmul.f32 %v6549_v62, %v4078_v35 }
0x1512   :  { %v4080_v17 = vadd.f32 %v6549_v62, %v4079_v55 }
0x1514   :  { %v4084_v2 = vsel %vm4083_vm12, %v6549_v62, %v4080_v17 }
0x1515   :  { %v4089_v25 = vsel %vm4086_vm13, %v4088_v49, %v4084_v2 }
0x1523   :  { %v4033_v31 = vpop.permute.xlu2 %4032 }
0x1524   :  { %v4035_v46 = vmul.f32 %v4033_v31, %v4023_v36 }
0x1526   :  { %4037 = vrot.lane.b32.xlu0 %v4035_v46, %s6755_s25 }
0x152b   :  { %v4094_v21 = vpop.permute.xlu2 %4093 }
0x152c   :  { %v4096_v58 = vmul.f32 %v4094_v21, %v4089_v25 }
0x1573   :  { %v4099_v50 = vpop.permute.xlu0 %4098 }
0x1574   :  { %v4101_v44 = vmul.f32 %v4099_v50, %v4089_v25 }
0x1576   :  { %4103 = vrot.lane.b32.xlu1 %v4101_v44, %s6755_s25 }
0x1598   :  { %v4038_v20 = vpop.permute.xlu0 %4037 }
0x1599   :  { %v8088_v56 = vadd.f32 %v4038_v20, %v4030_v6 }
0x159b   :  { %6550 = vtanh.f32 %v8088_v56 }
0x15a1   :  { %v6551_v26 = vpop.eup %6550 }
0x15a2   :  { %4043 = vrot.lane.b32.xlu2 %v6551_v26, %s6752_s16 }
0x15e8   :  { %v4104_v40 = vpop.permute.xlu1 %4103 }
0x15e9   :  { %v8092_v12 = vadd.f32 %v4104_v40, %v4096_v58 }
0x15eb   :  { %6552 = vtanh.f32 %v8092_v12 }
0x15f1   :  { %v6553_v4 = vpop.eup %6552 }
0x15f2   :  { %4109 = vrot.lane.b32.xlu0 %v6553_v4, %s6752_s16 }
0x15fc   :  { %v4044_v42 = vpop.permute.xlu2 %4043 }
0x15fd   :  { %v4046_v61 = vmul.f32 %v4044_v42, %v4023_v36 }
0x15ff   :  { %4115 = vrot.lane.b32.xlu1 %v4046_v61, %s6755_s25 }
0x1664   :  { %v4110_v30 = vpop.permute.xlu0 %4109 }
0x1665   :  { %v4112_v14 = vmul.f32 %v4110_v30, %v4089_v25 }
0x1667   :  { %4179 = vrot.lane.b32.xlu2 %v4112_v14, %s6755_s25 }
0x1671   :  { %v4116_v8 = vpop.permute.xlu1 %4115 }
0x1672   :  { %6130 = vmatmul.msk.f32.vlgmr.msra.gmra.mxu2 %vm2690_vm0, %v4116_v8 }
0x1673   :  { %4387 = vmatpush.msra.mxu2 %v7922_v15 }
0x1675   :  { %4388 = vmatpush.msra.mxu2 %v7931_v51 }
0x1677   :  { %4389 = vmatpush.msra.mxu2 %v7939_v3 }
0x1679   :  { %4390 = vmatpush.msra.mxu2 %v7955_v63 }
0x16c1   :  { %v4180_v38 = vpop.permute.xlu2 %4179 }
0x16c2   :  { %6132 = vmatmul.msk.f32.vlgmr.msrb.gmra.mxu3 %vm2690_vm0, %v4180_v38 }
0x16c3   :  { %4451 = vmatpush.msrb.mxu3 %v8005_v11 }
0x16c5   :  { %4452 = vmatpush.msrb.mxu3 %v8010_v60 }
0x16c7   :  { %4453 = vmatpush.msrb.mxu3 %v8021_v39 }
0x16c9   :  { %4454 = vmatpush.msrb.mxu3 %v8026_v57 }
0x16f5   :  { %v4136_v0 = vpop.f32.mrf.mxu2 }
0x16f6   :  { %v4139_v13 = vadd.f32 %v4136_v0, %v3872_v43 }
0x16f8   :  { %6554 = vtanh.f32 %v4139_v13  ;;  %v6131_v54 = vmul.f32 -1.442695, %v4139_v13  ;;  %v3874_v13 = vpop.f32.mrf.mxu0 }
0x16fa   :  { %6556 = vpow2.f32 %v6131_v54 }
0x16fe   :  { %v6555_v41 = vpop.eup %6554 }
0x16ff   :  { %4162 = vrot.lane.b32.xlu0 %v6555_v41, %s6752_s16  ;;  %v3875_v41 = vadd.f32 %v8060_v10, %v3874_v13 }
0x1700   :  { %v6557_v22 = vpop.eup %6556 }
0x1701   :  { %v4143_v1 = vadd.f32 1.0, %v6557_v22 }
0x1703   :  { %v4155_v46 = vand.u32 2147483648, %v4143_v1  ;;  %vm4149_vm15 = vweird.f32 %v4143_v1  ;;  %v4153_v45 = vand.u32 2147483647, %v4143_v1 }
0x1705   :  { %vm4154_vm2 = vcmp.eq.f32.partialorder %v4153_v45, 8.507059e+37 }
0x1745   :  { %v4200_v7 = vpop.f32.mrf.mxu3 }
0x1746   :  { %v4203_v5 = vadd.f32 %v4200_v7, %v8083_v19  ;;  %v4156_v19 = vor.u32 1.1754944e-38, %v4155_v46 }
0x1748   :  { %6558 = vtanh.f32 %v4203_v5  ;;  %v6133_v35 = vmul.f32 -1.442695, %v4203_v5 }
0x1749   :  { %6560 = vrcp.f32 %v4143_v1 }
0x174a   :  { %6562 = vpow2.f32 %v6133_v35 }
0x174e   :  { %v6559_v23 = vpop.eup %6558 }
0x174f   :  { %4226 = vrot.lane.b32.xlu1 %v6559_v23, %s6752_s16  ;;  %v6561_v34 = vpop.eup %6560 }
0x1750   :  { %v4145_v29 = vmul.f32 %v6561_v34, %v4143_v1  ;;  %vm4150_vm14 = vweird.f32 %v6561_v34  ;;  %v6563_v55 = vpop.eup %6562 }
0x1751   :  { %vm4151_vm1 = vmor %vm4149_vm15, %vm4150_vm14  ;;  %v4207_v17 = vadd.f32 1.0, %v6563_v55 }
0x1752   :  { %v4146_v59 = vsub.f32 1.0, %v4145_v29 }
0x1753   :  { %6564 = vrcp.f32 %v4207_v17  ;;  %v4219_v50 = vand.u32 2147483648, %v4207_v17  ;;  %vm4213_vm4 = vweird.f32 %v4207_v17  ;;  %v4217_v44 = vand.u32 2147483647, %v4207_v17 }
0x1754   :  { %v4147_v36 = vmul.f32 %v6561_v34, %v4146_v59 }
0x1755   :  { %v4220_v6 = vor.u32 1.1754944e-38, %v4219_v50  ;;  %vm4218_vm7 = vcmp.eq.f32.partialorder %v4217_v44, 8.507059e+37 }
0x1756   :  { %v4148_v31 = vadd.f32 %v6561_v34, %v4147_v36 }
0x1758   :  { %v4152_v18 = vsel %vm4151_vm1, %v6561_v34, %v4148_v31 }
0x1759   :  { %v4157_v62 = vsel %vm4154_vm2, %v4156_v19, %v4152_v18  ;;  %v6565_v33 = vpop.eup %6564 }
0x175a   :  { %v4209_v27 = vmul.f32 %v6565_v33, %v4207_v17  ;;  %vm4214_vm3 = vweird.f32 %v6565_v33  ;;  %v4160_v58 = vmul.f32 %v4157_v62, %v8088_v56 }
0x175b   :  { %vm4215_vm6 = vmor %vm4213_vm4, %vm4214_vm3 }
0x175c   :  { %v4210_v2 = vsub.f32 1.0, %v4209_v27 }
0x175e   :  { %v4211_v49 = vmul.f32 %v6565_v33, %v4210_v2 }
0x1760   :  { %v4212_v25 = vadd.f32 %v6565_v33, %v4211_v49 }
0x1762   :  { %v4216_v9 = vsel %vm4215_vm6, %v6565_v33, %v4212_v25 }
0x1763   :  { %v4221_v20 = vsel %vm4218_vm7, %v4220_v6, %v4216_v9 }
0x1764   :  { %v4224_v61 = vmul.f32 %v4221_v20, %v8092_v12 }
0x1771   :  { %v4163_v24 = vpop.permute.xlu0 %4162 }
0x1772   :  { %v4165_v53 = vmul.f32 %v4163_v24, %v4157_v62 }
0x1774   :  { %4167 = vrot.lane.b32.xlu2 %v4165_v53, %s6755_s25 }
0x17c1   :  { %v4227_v26 = vpop.permute.xlu1 %4226 }
0x17c2   :  { %v4229_v21 = vmul.f32 %v4227_v26, %v4221_v20 }
0x17c4   :  { %4231 = vrot.lane.b32.xlu0 %v4229_v21, %s6755_s25 }
0x17ce   :  { %v4168_v40 = vpop.permute.xlu2 %4167 }
0x17cf   :  { %v8115_v4 = vadd.f32 %v4168_v40, %v4160_v58 }
0x17d1   :  { %6566 = vtanh.f32 %v8115_v4 }
0x17d7   :  { %v6567_v42 = vpop.eup %6566 }
0x17d8   :  { %4173 = vrot.lane.b32.xlu1 %v6567_v42, %s6752_s16 }
0x1836   :  { %v4232_v30 = vpop.permute.xlu0 %4231 }
0x1837   :  { %v8120_v14 = vadd.f32 %v4232_v30, %v4224_v61 }
0x1839   :  { %6568 = vtanh.f32 %v8120_v14 }
0x183f   :  { %v6569_v8 = vpop.eup %6568 }
0x1840   :  { %4237 = vrot.lane.b32.xlu2 %v6569_v8, %s6752_s16 }
0x184a   :  { %v4174_v38 = vpop.permute.xlu1 %4173 }
0x184b   :  { %v4176_v56 = vmul.f32 %v4174_v38, %v4157_v62 }
0x184d   :  { %4243 = vrot.lane.b32.xlu0 %v4176_v56, %s6755_s25 }
0x189a   :  { %v4238_v47 = vpop.permute.xlu2 %4237 }
0x189b   :  { %v4240_v43 = vmul.f32 %v4238_v47, %v4221_v20 }
0x189d   :  { %4307 = vrot.lane.b32.xlu1 %v4240_v43, %s6755_s25 }
0x18bf   :  { %v4244_v0 = vpop.permute.xlu0 %4243 }
0x18c0   :  { %6134 = vmatmul.msk.f32.vlgmr.msrb.gmra.mxu2 %vm2690_vm0, %v4244_v0 }
0x18c1   :  { %4515 = vmatpush.msrb.mxu2 %v7922_v15 }
0x18c3   :  { %4516 = vmatpush.msrb.mxu2 %v7931_v51 }
0x18c5   :  { %4517 = vmatpush.msrb.mxu2 %v7939_v3 }
0x18c7   :  { %4518 = vmatpush.msrb.mxu2 %v7955_v63 }
0x190f   :  { %v4308_v12 = vpop.permute.xlu1 %4307 }
0x1910   :  { %6136 = vmatmul.msk.f32.vlgmr.msra.gmra.mxu3 %vm2690_vm0, %v4308_v12 }
0x1911   :  { %4579 = vmatpush.msra.mxu3 %v8005_v11 }
0x1913   :  { %4580 = vmatpush.msra.mxu3 %v8010_v60 }
0x1915   :  { %4581 = vmatpush.msra.mxu3 %v8021_v39 }
0x1917   :  { %4582 = vmatpush.msra.mxu3 %v8026_v57 }
0x1943   :  { %v4264_v54 = vpop.f32.mrf.mxu2 }
0x1944   :  { %v4267_v7 = vadd.f32 %v4264_v54, %v3875_v41  ;;  %v3877_v54 = vpop.f32.mrf.mxu0 }
0x1946   :  { %6570 = vtanh.f32 %v4267_v7  ;;  %v6135_v22 = vmul.f32 -1.442695, %v4267_v7  ;;  %v3878_v7 = vadd.f32 %v8060_v10, %v3877_v54 }
0x1948   :  { %6572 = vpow2.f32 %v6135_v22 }
0x194c   :  { %v6571_v5 = vpop.eup %6570 }
0x194d   :  { %4290 = vrot.lane.b32.xlu2 %v6571_v5, %s6752_s16 }
0x194e   :  { %v6573_v23 = vpop.eup %6572 }
0x194f   :  { %v4271_v1 = vadd.f32 1.0, %v6573_v23 }
0x1951   :  { %6574 = vrcp.f32 %v4271_v1  ;;  %v4283_v19 = vand.u32 2147483648, %v4271_v1  ;;  %vm4277_vm9 = vweird.f32 %v4271_v1  ;;  %v4281_v24 = vand.u32 2147483647, %v4271_v1 }
0x1953   :  { %v4284_v53 = vor.u32 1.1754944e-38, %v4283_v19  ;;  %vm4282_vm11 = vcmp.eq.f32.partialorder %v4281_v24, 8.507059e+37 }
0x1957   :  { %v6575_v34 = vpop.eup %6574 }
0x1958   :  { %v4273_v36 = vmul.f32 %v6575_v34, %v4271_v1  ;;  %vm4278_vm8 = vweird.f32 %v6575_v34 }
0x1959   :  { %vm4279_vm10 = vmor %vm4277_vm9, %vm4278_vm8 }
0x195a   :  { %v4274_v31 = vsub.f32 1.0, %v4273_v36 }
0x195c   :  { %v4275_v45 = vmul.f32 %v6575_v34, %v4274_v31 }
0x195e   :  { %v4276_v18 = vadd.f32 %v6575_v34, %v4275_v45 }
0x1960   :  { %v4280_v62 = vsel %vm4279_vm10, %v6575_v34, %v4276_v18 }
0x1961   :  { %v4285_v55 = vsel %vm4282_vm11, %v4284_v53, %v4280_v62 }
0x1962   :  { %v4288_v42 = vmul.f32 %v4285_v55, %v8115_v4 }
0x1993   :  { %v4328_v29 = vpop.f32.mrf.mxu3 }
0x1994   :  { %v4331_v59 = vadd.f32 %v4328_v29, %v8081_v52 }
0x1996   :  { %6576 = vtanh.f32 %v4331_v59  ;;  %v6137_v52 = vmul.f32 -1.442695, %v4331_v59 }
0x1998   :  { %6578 = vpow2.f32 %v6137_v52 }
0x199c   :  { %v6577_v46 = vpop.eup %6576 }
0x199d   :  { %4354 = vrot.lane.b32.xlu0 %v6577_v46, %s6752_s16 }
0x199e   :  { %v6579_v33 = vpop.eup %6578 }
0x199f   :  { %v4335_v27 = vadd.f32 1.0, %v6579_v33 }
0x19a1   :  { %6580 = vrcp.f32 %v4335_v27  ;;  %v4347_v9 = vand.u32 2147483648, %v4335_v27  ;;  %vm4341_vm13 = vweird.f32 %v4335_v27  ;;  %v4345_v6 = vand.u32 2147483647, %v4335_v27 }
0x19a3   :  { %v4348_v26 = vor.u32 1.1754944e-38, %v4347_v9  ;;  %vm4346_vm15 = vcmp.eq.f32.partialorder %v4345_v6, 8.507059e+37 }
0x19a7   :  { %v4291_v35 = vpop.permute.xlu2 %4290  ;;  %v6581_v2 = vpop.eup %6580 }
0x19a8   :  { %v4293_v17 = vmul.f32 %v4291_v35, %v4285_v55  ;;  %v4337_v49 = vmul.f32 %v6581_v2, %v4335_v27  ;;  %vm4342_vm12 = vweird.f32 %v6581_v2 }
0x19a9   :  { %vm4343_vm14 = vmor %vm4341_vm13, %vm4342_vm12 }
0x19aa   :  { %4295 = vrot.lane.b32.xlu1 %v4293_v17, %s6755_s25  ;;  %v4338_v25 = vsub.f32 1.0, %v4337_v49 }
0x19ac   :  { %v4339_v50 = vmul.f32 %v6581_v2, %v4338_v25 }
0x19ae   :  { %v4340_v44 = vadd.f32 %v6581_v2, %v4339_v50 }
0x19b0   :  { %v4344_v20 = vsel %vm4343_vm14, %v6581_v2, %v4340_v44 }
0x19b1   :  { %v4349_v58 = vsel %vm4346_vm15, %v4348_v26, %v4344_v20 }
0x19b2   :  { %v4352_v38 = vmul.f32 %v4349_v58, %v8120_v14 }
0x1a0f   :  { %v4355_v21 = vpop.permute.xlu0 %4354 }
0x1a10   :  { %v4357_v40 = vmul.f32 %v4355_v21, %v4349_v58 }
0x1a12   :  { %4359 = vrot.lane.b32.xlu2 %v4357_v40, %s6755_s25 }
0x1a1c   :  { %v4296_v61 = vpop.permute.xlu1 %4295 }
0x1a1d   :  { %v8143_v30 = vadd.f32 %v4296_v61, %v4288_v42 }
0x1a1f   :  { %6582 = vtanh.f32 %v8143_v30 }
0x1a25   :  { %v6583_v8 = vpop.eup %6582 }
0x1a26   :  { %4301 = vrot.lane.b32.xlu0 %v6583_v8, %s6752_s16 }
0x1a6c   :  { %v4360_v56 = vpop.permute.xlu2 %4359 }
0x1a6d   :  { %v8148_v47 = vadd.f32 %v4360_v56, %v4352_v38 }
0x1a6f   :  { %6584 = vtanh.f32 %v8148_v47 }
0x1a75   :  { %v6585_v43 = vpop.eup %6584 }
0x1a76   :  { %4365 = vrot.lane.b32.xlu1 %v6585_v43, %s6752_s16 }
0x1a98   :  { %v4302_v0 = vpop.permute.xlu0 %4301 }
0x1a99   :  { %v4304_v4 = vmul.f32 %v4302_v0, %v4285_v55 }
0x1a9b   :  { %4371 = vrot.lane.b32.xlu2 %v4304_v4, %s6755_s25 }
0x1ae8   :  { %v4366_v12 = vpop.permute.xlu1 %4365 }
0x1ae9   :  { %v4368_v13 = vmul.f32 %v4366_v12, %v4349_v58 }
0x1aeb   :  { %4435 = vrot.lane.b32.xlu0 %v4368_v13, %s6755_s25 }
0x1af5   :  { %v4372_v41 = vpop.permute.xlu2 %4371 }
0x1af6   :  { %6138 = vmatmul.msk.f32.vlgmr.msra.gmra.mxu2 %vm2690_vm0, %v4372_v41 }
0x1af7   :  { %4643 = vmatpush.msra.mxu2 %v7922_v15 }
0x1af9   :  { %4644 = vmatpush.msra.mxu2 %v7931_v51 }
0x1afb   :  { %4645 = vmatpush.msra.mxu2 %v7939_v3 }
0x1afd   :  { %4646 = vmatpush.msra.mxu2 %v7955_v63 }
0x1b5d   :  { %v4436_v14 = vpop.permute.xlu0 %4435 }
0x1b5e   :  { %6140 = vmatmul.msk.f32.vlgmr.msrb.gmra.mxu3 %vm2690_vm0, %v4436_v14 }
0x1b5f   :  { %4707 = vmatpush.msrb.mxu3 %v8005_v11 }
0x1b61   :  { %4708 = vmatpush.msrb.mxu3 %v8010_v60 }
0x1b63   :  { %4709 = vmatpush.msrb.mxu3 %v8021_v39 }
0x1b65   :  { %4710 = vmatpush.msrb.mxu3 %v8026_v57 }
0x1b79   :  { %v4392_v5 = vpop.f32.mrf.mxu2 }
0x1b7a   :  { %v4395_v22 = vadd.f32 %v4392_v5, %v3878_v7  ;;  %v3880_v7 = vpop.f32.mrf.mxu0 }
0x1b7c   :  { %6586 = vtanh.f32 %v4395_v22  ;;  %v6139_v1 = vmul.f32 -1.442695, %v4395_v22 }
0x1b7e   :  { %6588 = vpow2.f32 %v6139_v1 }
0x1b82   :  { %v6587_v23 = vpop.eup %6586 }
0x1b83   :  { %4418 = vrot.lane.b32.xlu1 %v6587_v23, %s6752_s16 }
0x1b84   :  { %v6589_v34 = vpop.eup %6588 }
0x1b85   :  { %v4399_v29 = vadd.f32 1.0, %v6589_v34 }
0x1b87   :  { %6590 = vrcp.f32 %v4399_v29  ;;  %v4411_v62 = vand.u32 2147483648, %v4399_v29  ;;  %vm4405_vm2 = vweird.f32 %v4399_v29  ;;  %v4409_v53 = vand.u32 2147483647, %v4399_v29 }
0x1b89   :  { %v4412_v55 = vor.u32 1.1754944e-38, %v4411_v62  ;;  %vm4410_vm4 = vcmp.eq.f32.partialorder %v4409_v53, 8.507059e+37 }
0x1b8d   :  { %v6591_v59 = vpop.eup %6590 }
0x1b8e   :  { %v4401_v46 = vmul.f32 %v6591_v59, %v4399_v29  ;;  %vm4406_vm1 = vweird.f32 %v6591_v59 }
0x1b8f   :  { %vm4407_vm3 = vmor %vm4405_vm2, %vm4406_vm1 }
0x1b90   :  { %v4402_v45 = vsub.f32 1.0, %v4401_v46 }
0x1b92   :  { %v4403_v19 = vmul.f32 %v6591_v59, %v4402_v45 }
0x1b94   :  { %v4404_v24 = vadd.f32 %v6591_v59, %v4403_v19 }
0x1b96   :  { %v4408_v35 = vsel %vm4407_vm3, %v6591_v59, %v4404_v24 }
0x1b97   :  { %v4413_v17 = vsel %vm4410_vm4, %v4412_v55, %v4408_v35 }
0x1b98   :  { %v4416_v61 = vmul.f32 %v4413_v17, %v8143_v30 }
0x1be1   :  { %v4456_v36 = vpop.f32.mrf.mxu3 }
0x1be2   :  { %v4459_v31 = vadd.f32 %v4456_v36, %v8079_v48 }
0x1be4   :  { %6592 = vtanh.f32 %v4459_v31  ;;  %v6141_v48 = vmul.f32 -1.442695, %v4459_v31 }
0x1be6   :  { %6594 = vpow2.f32 %v6141_v48 }
0x1bea   :  { %v6593_v18 = vpop.eup %6592 }
0x1beb   :  { %4482 = vrot.lane.b32.xlu2 %v6593_v18, %s6752_s16 }
0x1bec   :  { %v6595_v27 = vpop.eup %6594 }
0x1bed   :  { %v4463_v2 = vadd.f32 1.0, %v6595_v27 }
0x1bef   :  { %6596 = vrcp.f32 %v4463_v2  ;;  %v4475_v6 = vand.u32 2147483648, %v4463_v2  ;;  %vm4469_vm7 = vweird.f32 %v4463_v2  ;;  %v4473_v20 = vand.u32 2147483647, %v4463_v2 }
0x1bf1   :  { %v4476_v21 = vor.u32 1.1754944e-38, %v4475_v6  ;;  %vm4474_vm9 = vcmp.eq.f32.partialorder %v4473_v20, 8.507059e+37 }
0x1bf5   :  { %v4419_v52 = vpop.permute.xlu1 %4418  ;;  %v6597_v49 = vpop.eup %6596 }
0x1bf6   :  { %v4421_v33 = vmul.f32 %v4419_v52, %v4413_v17  ;;  %v4465_v25 = vmul.f32 %v6597_v49, %v4463_v2  ;;  %vm4470_vm6 = vweird.f32 %v6597_v49 }
0x1bf7   :  { %vm4471_vm8 = vmor %vm4469_vm7, %vm4470_vm6 }
0x1bf8   :  { %4423 = vrot.lane.b32.xlu0 %v4421_v33, %s6755_s25  ;;  %v4466_v50 = vsub.f32 1.0, %v4465_v25 }
0x1bfa   :  { %v4467_v44 = vmul.f32 %v6597_v49, %v4466_v50 }
0x1bfc   :  { %v4468_v9 = vadd.f32 %v6597_v49, %v4467_v44 }
0x1bfe   :  { %v4472_v26 = vsel %vm4471_vm8, %v6597_v49, %v4468_v9 }
0x1bff   :  { %v4477_v40 = vsel %vm4474_vm9, %v4476_v21, %v4472_v26 }
0x1c00   :  { %v4480_v43 = vmul.f32 %v4477_v40, %v8148_v47 }
0x1c45   :  { %v4483_v58 = vpop.permute.xlu2 %4482 }
0x1c46   :  { %v4485_v42 = vmul.f32 %v4483_v58, %v4477_v40 }
0x1c48   :  { %4487 = vrot.lane.b32.xlu1 %v4485_v42, %s6755_s25 }
0x1c6a   :  { %v4424_v8 = vpop.permute.xlu0 %4423 }
0x1c6b   :  { %v8171_v38 = vadd.f32 %v4424_v8, %v4416_v61 }
0x1c6d   :  { %6598 = vtanh.f32 %v8171_v38 }
0x1c73   :  { %v6599_v56 = vpop.eup %6598 }
0x1c74   :  { %4429 = vrot.lane.b32.xlu2 %v6599_v56, %s6752_s16 }
0x1cba   :  { %v4488_v0 = vpop.permute.xlu1 %4487 }
0x1cbb   :  { %v8176_v4 = vadd.f32 %v4488_v0, %v4480_v43 }
0x1cbd   :  { %6600 = vtanh.f32 %v8176_v4 }
0x1cc3   :  { %v6601_v12 = vpop.eup %6600 }
0x1cc4   :  { %4493 = vrot.lane.b32.xlu0 %v6601_v12, %s6752_s16 }
0x1cce   :  { %v4430_v13 = vpop.permute.xlu2 %4429 }
0x1ccf   :  { %v4432_v30 = vmul.f32 %v4430_v13, %v4413_v17 }
0x1cd1   :  { %4499 = vrot.lane.b32.xlu1 %v4432_v30, %s6755_s25 }
0x1d36   :  { %v4494_v41 = vpop.permute.xlu0 %4493 }
0x1d37   :  { %v4496_v14 = vmul.f32 %v4494_v41, %v4477_v40  ;;  %v6669_v41 = vld [vmem:[%s8324_s7 + $0x50] sm:$0xff] }
0x1d39   :  { %4563 = vrot.lane.b32.xlu2 %v4496_v14, %s6755_s25  ;;  %v6670_v14 = vld [vmem:[%s8324_s7 + $0x48] sm:$0xff] }
0x1d43   :  { %v4500_v54 = vpop.permute.xlu1 %4499 }
0x1d44   :  { %6142 = vmatmul.msk.f32.vlgmr.msrb.gmra.mxu2 %vm2690_vm0, %v4500_v54  ;;  %v6671_v54 = vld [vmem:[%s8324_s7 + $0x40] sm:$0xff] }
0x1d45   :  { %4771 = vmatpush.msrb.mxu2 %v7922_v15  ;;  %v3881_v15 = vadd.f32 %v8060_v10, %v3880_v7  ;;  %v3883_v7 = vpop.f32.mrf.mxu0 }
0x1d47   :  { %4772 = vmatpush.msrb.mxu2 %v7931_v51 }
0x1d49   :  { %4773 = vmatpush.msrb.mxu2 %v7939_v3 }
0x1d4b   :  { %4774 = vmatpush.msrb.mxu2 %v7955_v63 }
0x1d93   :  { %v4564_v47 = vpop.permute.xlu2 %4563 }
0x1d94   :  { %6144 = vmatmul.msk.f32.vlgmr.msra.gmra.mxu3 %vm2690_vm0, %v4564_v47 }
0x1d95   :  { %4835 = vmatpush.msra.mxu3 %v8005_v11 }
0x1d97   :  { %4836 = vmatpush.msra.mxu3 %v8010_v60 }
0x1d99   :  { %4837 = vmatpush.msra.mxu3 %v8021_v39 }
0x1d9b   :  { %4838 = vmatpush.msra.mxu3 %v8026_v57 }
0x1dc7   :  { %v4520_v5 = vpop.f32.mrf.mxu2 }
0x1dc8   :  { %v4523_v51 = vadd.f32 %v4520_v5, %v3881_v15  ;;  %v3884_v15 = vadd.f32 %v8060_v10, %v3883_v7 }
0x1dca   :  { %6602 = vtanh.f32 %v4523_v51  ;;  %v6143_v63 = vmul.f32 -1.442695, %v4523_v51 }
0x1dcc   :  { %6604 = vpow2.f32 %v6143_v63 }
0x1dd0   :  { %v6603_v3 = vpop.eup %6602 }
0x1dd1   :  { %4546 = vrot.lane.b32.xlu0 %v6603_v3, %s6752_s16 }
0x1dd2   :  { %v6605_v1 = vpop.eup %6604 }
0x1dd3   :  { %v4527_v29 = vadd.f32 1.0, %v6605_v1 }
0x1dd5   :  { %v4539_v18 = vand.u32 2147483648, %v4527_v29  ;;  %vm4533_vm11 = vweird.f32 %v4527_v29  ;;  %v4537_v19 = vand.u32 2147483647, %v4527_v29 }
0x1dd7   :  { %vm4538_vm13 = vcmp.eq.f32.partialorder %v4537_v19, 8.507059e+37 }
0x1e17   :  { %v4584_v22 = vpop.f32.mrf.mxu3 }
0x1e18   :  { %v4587_v23 = vadd.f32 %v4584_v22, %v8077_v32  ;;  %v4540_v32 = vor.u32 1.1754944e-38, %v4539_v18 }
0x1e1a   :  { %6606 = vtanh.f32 %v4587_v23  ;;  %v6145_v55 = vmul.f32 -1.442695, %v4587_v23 }
0x1e1b   :  { %6608 = vrcp.f32 %v4527_v29 }
0x1e1c   :  { %6610 = vpow2.f32 %v6145_v55 }
0x1e20   :  { %v6607_v34 = vpop.eup %6606 }
0x1e21   :  { %4610 = vrot.lane.b32.xlu1 %v6607_v34, %s6752_s16  ;;  %v6609_v59 = vpop.eup %6608 }
0x1e22   :  { %v4529_v36 = vmul.f32 %v6609_v59, %v4527_v29  ;;  %vm4534_vm10 = vweird.f32 %v6609_v59  ;;  %v6611_v17 = vpop.eup %6610 }
0x1e23   :  { %vm4535_vm12 = vmor %vm4533_vm11, %vm4534_vm10  ;;  %v4591_v52 = vadd.f32 1.0, %v6611_v17 }
0x1e24   :  { %v4530_v31 = vsub.f32 1.0, %v4529_v36 }
0x1e25   :  { %6612 = vrcp.f32 %v4591_v52  ;;  %v4603_v25 = vand.u32 2147483648, %v4591_v52  ;;  %vm4597_vm15 = vweird.f32 %v4591_v52  ;;  %v4601_v50 = vand.u32 2147483647, %v4591_v52 }
0x1e26   :  { %v4531_v46 = vmul.f32 %v6609_v59, %v4530_v31 }
0x1e27   :  { %v4604_v9 = vor.u32 1.1754944e-38, %v4603_v25  ;;  %vm4602_vm2 = vcmp.eq.f32.partialorder %v4601_v50, 8.507059e+37 }
0x1e28   :  { %v4532_v45 = vadd.f32 %v6609_v59, %v4531_v46 }
0x1e2a   :  { %v4536_v24 = vsel %vm4535_vm12, %v6609_v59, %v4532_v45 }
0x1e2b   :  { %v4541_v53 = vsel %vm4538_vm13, %v4540_v32, %v4536_v24  ;;  %v6613_v33 = vpop.eup %6612 }
0x1e2c   :  { %v4593_v48 = vmul.f32 %v6613_v33, %v4591_v52  ;;  %vm4598_vm14 = vweird.f32 %v6613_v33  ;;  %v4544_v21 = vmul.f32 %v4541_v53, %v8171_v38 }
0x1e2d   :  { %vm4599_vm1 = vmor %vm4597_vm15, %vm4598_vm14 }
0x1e2e   :  { %v4594_v27 = vsub.f32 1.0, %v4593_v48 }
0x1e30   :  { %v4595_v2 = vmul.f32 %v6613_v33, %v4594_v27 }
0x1e32   :  { %v4596_v49 = vadd.f32 %v6613_v33, %v4595_v2 }
0x1e34   :  { %v4600_v44 = vsel %vm4599_vm1, %v6613_v33, %v4596_v49 }
0x1e35   :  { %v4605_v6 = vsel %vm4602_vm2, %v4604_v9, %v4600_v44 }
0x1e36   :  { %v4608_v61 = vmul.f32 %v4605_v6, %v8176_v4  ;;  %v6668_v4 = vld [vmem:[%s8324_s7 + $0x58] sm:$0xff] }
0x1e43   :  { %v4547_v62 = vpop.permute.xlu0 %4546 }
0x1e44   :  { %v4549_v35 = vmul.f32 %v4547_v62, %v4541_v53 }
0x1e46   :  { %4551 = vrot.lane.b32.xlu2 %v4549_v35, %s6755_s25 }
0x1e93   :  { %v4611_v20 = vpop.permute.xlu1 %4610 }
0x1e94   :  { %v4613_v26 = vmul.f32 %v4611_v20, %v4605_v6 }
0x1e96   :  { %4615 = vrot.lane.b32.xlu0 %v4613_v26, %s6755_s25 }
0x1ea0   :  { %v4552_v58 = vpop.permute.xlu2 %4551 }
0x1ea1   :  { %v8199_v40 = vadd.f32 %v4552_v58, %v4544_v21 }
0x1ea3   :  { %6614 = vtanh.f32 %v8199_v40 }
0x1ea9   :  { %v6615_v42 = vpop.eup %6614 }
0x1eaa   :  { %4557 = vrot.lane.b32.xlu1 %v6615_v42, %s6752_s16 }
0x1f08   :  { %v4616_v8 = vpop.permute.xlu0 %4615 }
0x1f09   :  { %v8204_v56 = vadd.f32 %v4616_v8, %v4608_v61 }
0x1f0b   :  { %6616 = vtanh.f32 %v8204_v56 }
0x1f11   :  { %v6617_v43 = vpop.eup %6616 }
0x1f12   :  { %4621 = vrot.lane.b32.xlu2 %v6617_v43, %s6752_s16 }
0x1f1c   :  { %v4558_v0 = vpop.permute.xlu1 %4557 }
0x1f1d   :  { %v4560_v38 = vmul.f32 %v4558_v0, %v4541_v53  ;;  %v3886_v0 = vpop.f32.mrf.mxu0 }
0x1f1f   :  { %4627 = vrot.lane.b32.xlu0 %v4560_v38, %s6755_s25  ;;  %v8251_v38 = vld [vmem:[%s8325_s8 + $0x2] ss:$0 sm:$0xff] }
0x1f6c   :  { %v4622_v12 = vpop.permute.xlu2 %4621 }
0x1f6d   :  { %v4624_v13 = vmul.f32 %v4622_v12, %v4605_v6  ;;  %v3887_v12 = vadd.f32 %v8251_v38, %v3886_v0 }
0x1f6f   :  { %4691 = vrot.lane.b32.xlu1 %v4624_v13, %s6755_s25 }
0x1f91   :  { %v4628_v30 = vpop.permute.xlu0 %4627 }
0x1f92   :  { %6146 = vmatmul.msk.f32.vlgmr.msra.gmra.mxu2 %vm2690_vm0, %v4628_v30 }
0x1f93   :  { %4899 = vmatpush.msra.mxu2 %v6668_v4 }
0x1f95   :  { %4900 = vmatpush.msra.mxu2 %v6669_v41 }
0x1f97   :  { %4901 = vmatpush.msra.mxu2 %v6670_v14 }
0x1f99   :  { %4902 = vmatpush.msra.mxu2 %v6671_v54 }
0x1fe1   :  { %v4692_v47 = vpop.permute.xlu1 %4691 }
0x1fe2   :  { %6148 = vmatmul.msk.f32.vlgmr.msrb.gmra.mxu3 %vm2690_vm0, %v4692_v47 }
0x1fe3   :  { %4963 = vmatpush.msrb.mxu3 %v8005_v11 }
0x1fe5   :  { %4964 = vmatpush.msrb.mxu3 %v8010_v60 }
0x1fe7   :  { %4965 = vmatpush.msrb.mxu3 %v8021_v39 }
0x1fe9   :  { %4966 = vmatpush.msrb.mxu3 %v8026_v57 }
0x2015   :  { %v4648_v5 = vpop.f32.mrf.mxu2 }
0x2016   :  { %v4651_v51 = vadd.f32 %v4648_v5, %v3884_v15 }
0x2018   :  { %6618 = vtanh.f32 %v4651_v51  ;;  %v6147_v63 = vmul.f32 -1.442695, %v4651_v51 }
0x201a   :  { %6620 = vpow2.f32 %v6147_v63 }
0x201e   :  { %v6619_v3 = vpop.eup %6618 }
0x201f   :  { %4674 = vrot.lane.b32.xlu2 %v6619_v3, %s6752_s16 }
0x2020   :  { %v6621_v22 = vpop.eup %6620 }
0x2021   :  { %v4655_v23 = vadd.f32 1.0, %v6621_v22 }
0x2023   :  { %6622 = vrcp.f32 %v4655_v23  ;;  %v4667_v59 = vand.u32 2147483648, %v4655_v23  ;;  %vm4661_vm4 = vweird.f32 %v4655_v23  ;;  %v4665_v36 = vand.u32 2147483647, %v4655_v23 }
0x2025   :  { %v4668_v46 = vor.u32 1.1754944e-38, %v4667_v59  ;;  %vm4666_vm7 = vcmp.eq.f32.partialorder %v4665_v36, 8.507059e+37 }
0x2029   :  { %v6623_v11 = vpop.eup %6622 }
0x202a   :  { %v4657_v1 = vmul.f32 %v6623_v11, %v4655_v23  ;;  %vm4662_vm3 = vweird.f32 %v6623_v11 }
0x202b   :  { %vm4663_vm6 = vmor %vm4661_vm4, %vm4662_vm3 }
0x202c   :  { %v4658_v57 = vsub.f32 1.0, %v4657_v1 }
0x202e   :  { %v4659_v10 = vmul.f32 %v6623_v11, %v4658_v57 }
0x2030   :  { %v4660_v29 = vadd.f32 %v6623_v11, %v4659_v10 }
0x2032   :  { %v4664_v31 = vsel %vm4663_vm6, %v6623_v11, %v4660_v29 }
0x2033   :  { %v4669_v18 = vsel %vm4666_vm7, %v4668_v46, %v4664_v31 }
0x2034   :  { %v4672_v50 = vmul.f32 %v4669_v18, %v8199_v40 }
0x2065   :  { %v4712_v60 = vpop.f32.mrf.mxu3 }
0x2066   :  { %v4715_v39 = vadd.f32 %v4712_v60, %v8071_v16 }
0x2068   :  { %6624 = vtanh.f32 %v4715_v39  ;;  %v6149_v16 = vmul.f32 -1.442695, %v4715_v39 }
0x206a   :  { %6626 = vpow2.f32 %v6149_v16 }
0x206e   :  { %v6625_v34 = vpop.eup %6624 }
0x206f   :  { %4738 = vrot.lane.b32.xlu0 %v6625_v34, %s6752_s16 }
0x2070   :  { %v6627_v24 = vpop.eup %6626 }
0x2071   :  { %v4719_v32 = vadd.f32 1.0, %v6627_v24 }
0x2073   :  { %6628 = vrcp.f32 %v4719_v32  ;;  %v4731_v52 = vand.u32 2147483648, %v4719_v32  ;;  %vm4725_vm9 = vweird.f32 %v4719_v32  ;;  %v4729_v33 = vand.u32 2147483647, %v4719_v32 }
0x2075   :  { %v4732_v27 = vor.u32 1.1754944e-38, %v4731_v52  ;;  %vm4730_vm11 = vcmp.eq.f32.partialorder %v4729_v33, 8.507059e+37 }
0x2079   :  { %v4675_v45 = vpop.permute.xlu2 %4674  ;;  %v6629_v62 = vpop.eup %6628 }
0x207a   :  { %v4677_v19 = vmul.f32 %v4675_v45, %v4669_v18  ;;  %v4721_v53 = vmul.f32 %v6629_v62, %v4719_v32  ;;  %vm4726_vm8 = vweird.f32 %v6629_v62 }
0x207b   :  { %vm4727_vm10 = vmor %vm4725_vm9, %vm4726_vm8 }
0x207c   :  { %4679 = vrot.lane.b32.xlu1 %v4677_v19, %s6755_s25  ;;  %v4722_v35 = vsub.f32 1.0, %v4721_v53 }
0x207e   :  { %v4723_v55 = vmul.f32 %v6629_v62, %v4722_v35 }
0x2080   :  { %v4724_v17 = vadd.f32 %v6629_v62, %v4723_v55 }
0x2082   :  { %v4728_v48 = vsel %vm4727_vm10, %v6629_v62, %v4724_v17 }
0x2083   :  { %v4733_v49 = vsel %vm4730_vm11, %v4732_v27, %v4728_v48 }
0x2084   :  { %v4736_v20 = vmul.f32 %v4733_v49, %v8204_v56 }
0x20e1   :  { %v4739_v2 = vpop.permute.xlu0 %4738 }
0x20e2   :  { %v4741_v25 = vmul.f32 %v4739_v2, %v4733_v49 }
0x20e4   :  { %4743 = vrot.lane.b32.xlu2 %v4741_v25, %s6755_s25 }
0x20ee   :  { %v4680_v44 = vpop.permute.xlu1 %4679 }
0x20ef   :  { %v8235_v9 = vadd.f32 %v4680_v44, %v4672_v50 }
0x20f1   :  { %6630 = vtanh.f32 %v8235_v9 }
0x20f7   :  { %v6631_v6 = vpop.eup %6630 }
0x20f8   :  { %4685 = vrot.lane.b32.xlu0 %v6631_v6, %s6752_s16 }
0x213e   :  { %v4744_v26 = vpop.permute.xlu2 %4743 }
0x213f   :  { %v8240_v21 = vadd.f32 %v4744_v26, %v4736_v20  ;;  %v3889_v20 = vpop.f32.mrf.mxu0 }
0x2140   :  { %v3890_v26 = vadd.f32 %v8251_v38, %v3889_v20 }
0x2141   :  { %6632 = vtanh.f32 %v8240_v21 }
0x2147   :  { %v6633_v58 = vpop.eup %6632 }
0x2148   :  { %4749 = vrot.lane.b32.xlu1 %v6633_v58, %s6752_s16 }
0x216a   :  { %v4686_v42 = vpop.permute.xlu0 %4685 }
0x216b   :  { %v4688_v40 = vmul.f32 %v4686_v42, %v4669_v18 }
0x216d   :  { %4755 = vrot.lane.b32.xlu2 %v4688_v40, %s6755_s25 }
0x21ba   :  { %v4750_v61 = vpop.permute.xlu1 %4749 }
0x21bb   :  { %v4752_v8 = vmul.f32 %v4750_v61, %v4733_v49 }
0x21bd   :  { %4819 = vrot.lane.b32.xlu0 %v4752_v8, %s6755_s25 }
0x21c7   :  { %v4756_v43 = vpop.permute.xlu2 %4755 }
0x21c8   :  { %6150 = vmatmul.msk.f32.vlgmr.msrb.gmra.mxu2 %vm2690_vm0, %v4756_v43 }
0x222f   :  { %v4820_v56 = vpop.permute.xlu0 %4819 }
0x2230   :  { %6152 = vmatmul.msk.f32.vlgmr.msra.gmra.mxu3 %vm2690_vm0, %v4820_v56 }
0x224b   :  { %v4776_v13 = vpop.f32.mrf.mxu2 }
0x224c   :  { %v4779_v30 = vadd.f32 %v4776_v13, %v3887_v12 }
0x224e   :  { %6634 = vtanh.f32 %v4779_v30  ;;  %v6151_v41 = vmul.f32 -1.442695, %v4779_v30 }
0x2250   :  { %6636 = vpow2.f32 %v6151_v41 }
0x2254   :  { %v6635_v4 = vpop.eup %6634 }
0x2255   :  { %4802 = vrot.lane.b32.xlu1 %v6635_v4, %s6752_s16 }
0x2256   :  { %v6637_v14 = vpop.eup %6636 }
0x2257   :  { %v4783_v54 = vadd.f32 1.0, %v6637_v14 }
0x2259   :  { %6638 = vrcp.f32 %v4783_v54  ;;  %v4795_v23 = vand.u32 2147483648, %v4783_v54  ;;  %vm4789_vm13 = vweird.f32 %v4783_v54  ;;  %v4793_v11 = vand.u32 2147483647, %v4783_v54 }
0x225b   :  { %v4796_v39 = vor.u32 1.1754944e-38, %v4795_v23  ;;  %vm4794_vm15 = vcmp.eq.f32.partialorder %v4793_v11, 8.507059e+37 }
0x225f   :  { %v6639_v47 = vpop.eup %6638 }
0x2260   :  { %v4785_v5 = vmul.f32 %v6639_v47, %v4783_v54  ;;  %vm4790_vm12 = vweird.f32 %v6639_v47 }
0x2261   :  { %vm4791_vm14 = vmor %vm4789_vm13, %vm4790_vm12 }
0x2262   :  { %v4786_v51 = vsub.f32 1.0, %v4785_v5 }
0x2264   :  { %v4787_v63 = vmul.f32 %v6639_v47, %v4786_v51 }
0x2266   :  { %v4788_v22 = vadd.f32 %v6639_v47, %v4787_v63 }
0x2268   :  { %v4792_v60 = vsel %vm4791_vm14, %v6639_v47, %v4788_v22  ;;  %vm5053_vm14 = vcmask 25600  }
0x2269   :  { %v4797_v1 = vsel %vm4794_vm15, %v4796_v39, %v4792_v60 }
0x226a   :  { %v4800_v35 = vmul.f32 %v4797_v1, %v8235_v9 }
0x22b3   :  { %v4840_v7 = vpop.f32.mrf.mxu3 }
0x22b4   :  { %v4843_v15 = vadd.f32 %v4840_v7, %v8068_v37 }
0x22b6   :  { %6640 = vtanh.f32 %v4843_v15  ;;  %v6153_v37 = vmul.f32 -1.442695, %v4843_v15 }
0x22b8   :  { %6642 = vpow2.f32 %v6153_v37 }
0x22bc   :  { %v6641_v3 = vpop.eup %6640 }
0x22bd   :  { %4866 = vrot.lane.b32.xlu2 %v6641_v3, %s6752_s16 }
0x22be   :  { %v6643_v10 = vpop.eup %6642 }
0x22bf   :  { %v4847_v29 = vadd.f32 1.0, %v6643_v10 }
0x22c1   :  { %6644 = vrcp.f32 %v4847_v29  ;;  %v4859_v18 = vand.u32 2147483648, %v4847_v29  ;;  %vm4853_vm2 = vweird.f32 %v4847_v29  ;;  %v4857_v19 = vand.u32 2147483647, %v4847_v29 }
0x22c3   :  { %v4860_v24 = vor.u32 1.1754944e-38, %v4859_v18  ;;  %vm4858_vm4 = vcmp.eq.f32.partialorder %v4857_v19, 8.507059e+37 }
0x22c7   :  { %v4803_v57 = vpop.permute.xlu1 %4802  ;;  %v6645_v59 = vpop.eup %6644 }
0x22c8   :  { %v4805_v34 = vmul.f32 %v4803_v57, %v4797_v1  ;;  %v4849_v36 = vmul.f32 %v6645_v59, %v4847_v29  ;;  %vm4854_vm1 = vweird.f32 %v6645_v59 }
0x22c9   :  { %vm4855_vm3 = vmor %vm4853_vm2, %vm4854_vm1 }
0x22ca   :  { %4807 = vrot.lane.b32.xlu0 %v4805_v34, %s6755_s25  ;;  %v4850_v31 = vsub.f32 1.0, %v4849_v36 }
0x22cc   :  { %v4851_v46 = vmul.f32 %v6645_v59, %v4850_v31 }
0x22ce   :  { %v4852_v45 = vadd.f32 %v6645_v59, %v4851_v46 }
0x22d0   :  { %v4856_v16 = vsel %vm4855_vm3, %v6645_v59, %v4852_v45 }
0x22d1   :  { %v4861_v62 = vsel %vm4858_vm4, %v4860_v24, %v4856_v16 }
0x22d2   :  { %v4864_v33 = vmul.f32 %v4861_v62, %v8240_v21 }
0x2317   :  { %v4867_v32 = vpop.permute.xlu2 %4866 }
0x2318   :  { %v4869_v53 = vmul.f32 %v4867_v32, %v4861_v62 }
0x231a   :  { %4871 = vrot.lane.b32.xlu1 %v4869_v53, %s6755_s25 }
0x233c   :  { %v4808_v55 = vpop.permute.xlu0 %4807 }
0x233d   :  { %v8260_v17 = vadd.f32 %v4808_v55, %v4800_v35  ;;  %v5025_v35 = vld [vmem:[%s8328_s11 + $0x38] sm:$0xff]  ;;  %v5024_v55 = vld [vmem:[%s8328_s11 + $0x30] sm:$0xff] }
0x233e   :  { %5041 = vmatpush.msra.mxu0 %v5025_v35 }
0x233f   :  { %6646 = vtanh.f32 %v8260_v17 }
0x2340   :  { %5042 = vmatpush.msra.mxu0 %v5024_v55 }
0x2345   :  { %v6647_v52 = vpop.eup %6646 }
0x2346   :  { %4813 = vrot.lane.b32.xlu2 %v6647_v52, %s6752_s16  ;;  %v5022_v52 = vld [vmem:[%s8328_s11 + $0x20] sm:$0xff] }
0x238c   :  { %v4872_v48 = vpop.permute.xlu1 %4871 }
0x238d   :  { %v8265_v27 = vadd.f32 %v4872_v48, %v4864_v33  ;;  %v5021_v33 = vld [vmem:[%s8328_s11 + $0x18] sm:$0xff]  ;;  %v5020_v48 = vld [vmem:[%s8328_s11 + $0x10] sm:$0xff] }
0x238f   :  { %6648 = vtanh.f32 %v8265_v27 }
0x2395   :  { %v6649_v2 = vpop.eup %6648 }
0x2396   :  { %4877 = vrot.lane.b32.xlu0 %v6649_v2, %s6752_s16  ;;  %v5018_v2 = vld [vmem:[%s8328_s11] sm:$0xff] }
0x23a0   :  { %v4814_v49 = vpop.permute.xlu2 %4813 }
0x23a1   :  { %v4816_v25 = vmul.f32 %v4814_v49, %v4797_v1 }
0x23a3   :  { %4883 = vrot.lane.b32.xlu1 %v4816_v25, %s6755_s25 }
0x2408   :  { %v4878_v50 = vpop.permute.xlu0 %4877 }
0x2409   :  { %v4880_v44 = vmul.f32 %v4878_v50, %v4861_v62 }
0x240b   :  { %4947 = vrot.lane.b32.xlu2 %v4880_v44, %s6755_s25  ;;  %v6409_v44 = vld [vmem:[%s8329_s12] ss:$0 sm:$0xff] }
0x2415   :  { %v4884_v9 = vpop.permute.xlu1 %4883 }
0x2416   :  { %6154 = vmatmul.msk.f32.vlgmr.msra.gmra.mxu2 %vm2690_vm0, %v4884_v9 }
0x2465   :  { %v4948_v6 = vpop.permute.xlu2 %4947 }
0x2466   :  { %6156 = vmatmul.msk.f32.vlgmr.msrb.gmra.mxu3 %vm2690_vm0, %v4948_v6 }
0x2499   :  { %v4904_v21 = vpop.f32.mrf.mxu2 }
0x249a   :  { %v4907_v58 = vadd.f32 %v4904_v21, %v3890_v26 }
0x249c   :  { %6650 = vtanh.f32 %v4907_v58  ;;  %v6155_v40 = vmul.f32 -1.442695, %v4907_v58 }
0x249e   :  { %6652 = vpow2.f32 %v6155_v40 }
0x24a2   :  { %v6651_v42 = vpop.eup %6650 }
0x24a3   :  { %4930 = vrot.lane.b32.xlu0 %v6651_v42, %s6752_s16 }
0x24a4   :  { %v6653_v43 = vpop.eup %6652 }
0x24a5   :  { %v4911_v0 = vadd.f32 1.0, %v6653_v43 }
0x24a7   :  { %v4923_v41 = vand.u32 2147483648, %v4911_v0  ;;  %vm4917_vm7 = vweird.f32 %v4911_v0  ;;  %v4921_v14 = vand.u32 2147483647, %v4911_v0 }
0x24a9   :  { %vm4922_vm9 = vcmp.eq.f32.partialorder %v4921_v14, 8.507059e+37 }
0x24e9   :  { %v4968_v61 = vpop.f32.mrf.mxu3 }
0x24ea   :  { %v4971_v8 = vadd.f32 %v4968_v61, %v8066_v28  ;;  %v4924_v28 = vor.u32 1.1754944e-38, %v4923_v41 }
0x24ec   :  { %6654 = vtanh.f32 %v4971_v8  ;;  %v6157_v5 = vmul.f32 -1.442695, %v4971_v8 }
0x24ed   :  { %6656 = vrcp.f32 %v4911_v0 }
0x24ee   :  { %6658 = vpow2.f32 %v6157_v5 }
0x24f2   :  { %v6655_v56 = vpop.eup %6654 }
0x24f3   :  { %4994 = vrot.lane.b32.xlu1 %v6655_v56, %s6752_s16  ;;  %v6657_v12 = vpop.eup %6656 }
0x24f4   :  { %v4913_v38 = vmul.f32 %v6657_v12, %v4911_v0  ;;  %vm4918_vm6 = vweird.f32 %v6657_v12  ;;  %v6659_v51 = vpop.eup %6658 }
0x24f5   :  { %vm4919_vm8 = vmor %vm4917_vm7, %vm4918_vm6  ;;  %v4975_v3 = vadd.f32 1.0, %v6659_v51 }
0x24f6   :  { %v4914_v13 = vsub.f32 1.0, %v4913_v38 }
0x24f7   :  { %6660 = vrcp.f32 %v4975_v3  ;;  %v4987_v39 = vand.u32 2147483648, %v4975_v3  ;;  %vm4981_vm11 = vweird.f32 %v4975_v3  ;;  %v4985_v1 = vand.u32 2147483647, %v4975_v3 }
0x24f8   :  { %v4915_v30 = vmul.f32 %v6657_v12, %v4914_v13 }
0x24f9   :  { %v4988_v34 = vor.u32 1.1754944e-38, %v4987_v39  ;;  %vm4986_vm13 = vcmp.eq.f32.partialorder %v4985_v1, 8.507059e+37 }
0x24fa   :  { %v4916_v4 = vadd.f32 %v6657_v12, %v4915_v30 }
0x24fc   :  { %v4920_v54 = vsel %vm4919_vm8, %v6657_v12, %v4916_v4 }
0x24fd   :  { %v4925_v7 = vsel %vm4922_vm9, %v4924_v28, %v4920_v54  ;;  %v6661_v63 = vpop.eup %6660 }
0x24fe   :  { %v4977_v22 = vmul.f32 %v6661_v63, %v4975_v3  ;;  %vm4982_vm10 = vweird.f32 %v6661_v63  ;;  %v4928_v59 = vmul.f32 %v4925_v7, %v8260_v17  ;;  %v5023_v17 = vld [vmem:[%s8328_s11 + $0x28] sm:$0xff] }
0x24ff   :  { %vm4983_vm12 = vmor %vm4981_vm11, %vm4982_vm10  ;;  %5043 = vmatpush.msra.mxu0 %v5023_v17 }
0x2500   :  { %v4978_v23 = vsub.f32 1.0, %v4977_v22 }
0x2501   :  { %5044 = vmatpush.msra.mxu0 %v5022_v52 }
0x2502   :  { %v4979_v11 = vmul.f32 %v6661_v63, %v4978_v23 }
0x2503   :  { %5045 = vmatpush.msra.mxu0 %v5021_v33 }
0x2504   :  { %v4980_v60 = vadd.f32 %v6661_v63, %v4979_v11 }
0x2505   :  { %5046 = vmatpush.msra.mxu0 %v5020_v48 }
0x2506   :  { %v4984_v57 = vsel %vm4983_vm12, %v6661_v63, %v4980_v60 }
0x2507   :  { %v4989_v37 = vsel %vm4986_vm13, %v4988_v34, %v4984_v57 }
0x2508   :  { %v4992_v45 = vmul.f32 %v4989_v37, %v8265_v27  ;;  %v5019_v27 = vld [vmem:[%s8328_s11 + $0x8] sm:$0xff] }
0x2509   :  { %5047 = vmatpush.msra.mxu0 %v5019_v27 }
0x250b   :  { %5048 = vmatpush.msra.mxu0 %v5018_v2 }
0x2515   :  { %v4931_v47 = vpop.permute.xlu0 %4930 }
0x2516   :  { %v4933_v15 = vmul.f32 %v4931_v47, %v4925_v7 }
0x2518   :  { %4935 = vrot.lane.b32.xlu2 %v4933_v15, %s6755_s25 }
0x2565   :  { %v4995_v10 = vpop.permute.xlu1 %4994 }
0x2566   :  { %v4997_v29 = vmul.f32 %v4995_v10, %v4989_v37 }
0x2568   :  { %4999 = vrot.lane.b32.xlu0 %v4997_v29, %s6755_s25 }
0x2572   :  { %v4936_v36 = vpop.permute.xlu2 %4935 }
0x2573   :  { %v4938_v31 = vadd.f32 %v4936_v36, %v4928_v59 }
0x2575   :  { %6662 = vtanh.f32 %v4938_v31 }
0x257b   :  { %v6663_v46 = vpop.eup %6662 }
0x257c   :  { %4941 = vrot.lane.b32.xlu1 %v6663_v46, %s6752_s16 }
0x25da   :  { %v5000_v18 = vpop.permute.xlu0 %4999 }
0x25db   :  { %v5002_v19 = vadd.f32 %v5000_v18, %v4992_v45 }
0x25dd   :  { %6664 = vtanh.f32 %v5002_v19 }
0x25e3   :  { %v6665_v16 = vpop.eup %6664 }
0x25e4   :  { %5005 = vrot.lane.b32.xlu2 %v6665_v16, %s6752_s16 }
0x25ee   :  { %v4942_v24 = vpop.permute.xlu1 %4941 }
0x25ef   :  { %v4944_v32 = vmul.f32 %v4942_v24, %v4925_v7 }
0x25f1   :  { %5010 = vrot.lane.b32.xlu0 %v4944_v32, %s6755_s25 }
0x263e   :  { %v5006_v62 = vpop.permute.xlu2 %5005 }
0x263f   :  { %v5008_v53 = vmul.f32 %v5006_v62, %v4989_v37 }
0x2641   :  { %5014 = vrot.lane.b32.xlu1 %v5008_v53, %s6752_s16 }
0x2663   :  { %v5011_v49 = vpop.permute.xlu0 %5010 }
0x26b3   :  { %v5015_v25 = vpop.permute.xlu1 %5014 }
0x26b4   :  { %v5017_v50 = vsel %vm2690_vm0, %v5011_v49, %v5015_v25 }
0x26b5   :  { %6158 = vmatmul.msk.f32.vlgmr.msra.gmra.mxu0 %vm3826_vm5, %v5017_v50 }
0x2732   :  { %v5050_v9 = vpop.f32.mrf.mxu0 }
0x2733   :  { %v5051_v6 = vadd.f32 %v6409_v44, %v5050_v9 }
0x2735   :  { %5054 = vst.msk [vmem:[#allocation9] sm:$0x3] %vm5053_vm14, %v5051_v6 }
0x2736   :  { %5065 = dma.vmem_to_hbm [thread:$0]  %s5061_s27, 32, %s5063_s29, [#allocation6]  }
0x2737   :  { %6749 = dma.done.wait [#allocation6], 32  }
0x2738   :  { %6750 = vsyncadd [#allocation6], 4294967264 }
0x2739   :  { %5070 = vsyncpa [#allocation5], 1 }
0x273a   :  { %5071 = vsyncpa [#allocation8], 1 }
0x273b   :  { %5072 = vsyncpa [#allocation6], 1 }

</bundles_post_ra>
